<compile_context>
chip_gen: v7x
topology: tpu7x:2x2x1
jax: 0.10.0
libtpu: 0.0.40
codegen_flags: <defaults>
</compile_context>

<pallas_src>
import jax
import jax.numpy as jnp
import numpy as np
from jax import lax
from jax.experimental import pallas as pl
from jax.experimental.pallas import tpu as pltpu

DEPTH = 3        # default depth=3
N_SAMPLES = 4    # default n_samples=4
B = 8            # batch
F = 128          # in_features == out_features (residual add forces this)
N_BISECT = 24    # sparsemax tau-bisection steps (error <= 2^-24 before refinement)


def _softplus(x):
    # Numerically stable softplus: max(x, 0) + log1p(exp(-|x|)).
    return jnp.maximum(x, 0.0) + jnp.log1p(jnp.exp(-jnp.abs(x)))


def _sparsemax_bisect(z):
    """Sparsemax along the last axis of z: (R, F).

    tau solves sum_j max(z_j - tau, 0) = 1 and lies in [max(z) - 1, max(z)].
    Bisection localises tau (1 cross-lane reduce + a few VALU ops per step),
    then one exact refinement on the recovered support {j : z_j > tau_b} removes
    the residual error:  tau = (sum_supp z - 1) / |supp|.
    """
    z_max = jnp.max(z, axis=-1, keepdims=True)                    # (R, 1)

    def body(_, carry):
        lo, hi = carry
        mid = 0.5 * (lo + hi)
        mass = jnp.sum(jnp.maximum(z - mid, 0.0), axis=-1, keepdims=True)
        too_low = mass > 1.0            # tau too small -> raise lo
        lo = jnp.where(too_low, mid, lo)
        hi = jnp.where(too_low, hi, mid)
        return lo, hi

    lo, hi = lax.fori_loop(0, N_BISECT, body, (z_max - 1.0, z_max), unroll=True)
    tau_b = 0.5 * (lo + hi)
    supp = (z > tau_b).astype(jnp.float32)                        # (R, F)
    k = jnp.sum(supp, axis=-1, keepdims=True)                     # (R, 1), >= 1
    s = jnp.sum(supp * z, axis=-1, keepdims=True)                 # (R, 1)
    tau = (s - 1.0) / jnp.maximum(k, 1.0)
    return jnp.maximum(z - tau, 0.0)


def bayes_block_kernel(x_ref, wmu_ref, wrho_ref, weps_ref,
                       bmu_ref, brho_ref, beps_ref, o_ref, h_ref):
    l = pl.program_id(0)          # layer index; weights for layer l are resident

    # Initialise every sample's hidden state with the input on the first step.
    @pl.when(l == 0)
    def _init():
        for s in range(N_SAMPLES):
            h_ref[s] = x_ref[...]

    # softplus(rho) computed ONCE per layer as values (no scratch round-trip),
    # reused for all N_SAMPLES weight draws (sample loop is statically unrolled).
    sig_w = _softplus(wrho_ref[0])                                # (F, F)
    sig_b = _softplus(brho_ref[0])                                # (1, F)
    for s in range(N_SAMPLES):
        w = wmu_ref[0] + sig_w * weps_ref[0, s].astype(jnp.float32)   # (F, F)
        b = bmu_ref[0] + sig_b * beps_ref[0, s]                       # (1, F)
        h = jnp.dot(h_ref[s], w, preferred_element_type=jnp.float32) + b
        h_ref[s] = jnp.maximum(h, 0.0)                            # ReLU

    # After the last layer: sparsemax per sample (all samples stacked into one
    # (N_SAMPLES*B, F) slab), Monte-Carlo mean, residual add.
    @pl.when(l == DEPTH - 1)
    def _finalize():
        z = h_ref[...].reshape(N_SAMPLES * B, F)                  # (32, 128)
        p = _sparsemax_bisect(z).reshape(N_SAMPLES, B, F)
        acc = p[0]
        for s in range(1, N_SAMPLES):
            acc = acc + p[s]
        o_ref[...] = acc * (1.0 / float(N_SAMPLES)) + x_ref[...]


def bayes_block(x, w_mu, w_rho, w_eps, b_mu, b_rho, b_eps):
    return pl.pallas_call(
        bayes_block_kernel,
        out_shape=jax.ShapeDtypeStruct((B, F), jnp.float32),
        grid_spec=pltpu.PrefetchScalarGridSpec(
            num_scalar_prefetch=0,
            grid=(DEPTH,),                       # layer axis -> pipelined weight DMA
            in_specs=[
                pl.BlockSpec((B, F), lambda l: (0, 0)),                        # x (resident)
                pl.BlockSpec((1, F, F), lambda l: (l, 0, 0)),                  # w_mu[l]
                pl.BlockSpec((1, F, F), lambda l: (l, 0, 0)),                  # w_rho[l]
                pl.BlockSpec((1, N_SAMPLES, F, F), lambda l: (l, 0, 0, 0)),    # w_eps[l] (bf16)
                pl.BlockSpec((1, 1, F), lambda l: (l, 0, 0)),                  # b_mu[l]
                pl.BlockSpec((1, 1, F), lambda l: (l, 0, 0)),                  # b_rho[l]
                pl.BlockSpec((1, N_SAMPLES, 1, F), lambda l: (l, 0, 0, 0)),    # b_eps[l]
            ],
            out_specs=pl.BlockSpec((B, F), lambda l: (0, 0)),
            scratch_shapes=[
                pltpu.VMEM((N_SAMPLES, B, F), jnp.float32),   # per-sample hidden states
            ]),
        compiler_params=pltpu.CompilerParams(
            dimension_semantics=("arbitrary",)),   # layer axis is sequential
    )(x, w_mu, w_rho, w_eps, b_mu, b_rho, b_eps)


# ---------------- pure-JAX reference for a sanity check ----------------
def _sparsemax_ref(z):
    z_sorted = jnp.sort(z, axis=-1)[..., ::-1]
    k = jnp.arange(1, z.shape[-1] + 1, dtype=jnp.float32)
    cssv = jnp.cumsum(z_sorted, axis=-1)
    cond = (1.0 + k * z_sorted) > cssv
    k_z = jnp.sum(cond.astype(jnp.float32), axis=-1, keepdims=True)
    s_k = jnp.take_along_axis(cssv, (k_z - 1).astype(jnp.int32), axis=-1)
    tau = (s_k - 1.0) / k_z
    return jnp.maximum(z - tau, 0.0)


def bayes_block_ref(x, w_mu, w_rho, w_eps, b_mu, b_rho, b_eps):
    outs = []
    for s in range(N_SAMPLES):
        h = x
        for l in range(DEPTH):
            w = w_mu[l] + jnp.log1p(jnp.exp(w_rho[l])) * w_eps[l, s].astype(jnp.float32)
            b = b_mu[l] + jnp.log1p(jnp.exp(b_rho[l])) * b_eps[l, s]
            h = jnp.maximum(h @ w + b, 0.0)
        outs.append(_sparsemax_ref(h))
    return jnp.mean(jnp.stack(outs, 0), axis=0) + x


if __name__ == "__main__":
    key = jax.random.PRNGKey(0)
    kx, kwm, kwr, kwe, kbm, kbe = jax.random.split(key, 6)

    x = jax.random.normal(kx, (B, F), dtype=jnp.float32)

    # Deterministic Bayesian-linear parameters (mu / rho) and MC noise eps.
    w_mu = 0.1 * jax.random.normal(kwm, (DEPTH, F, F), dtype=jnp.float32)
    w_rho = -4.0 + 0.1 * jax.random.normal(kwr, (DEPTH, F, F), dtype=jnp.float32)
    # MC noise shipped as bf16 (halves the largest HBM transfer); both the kernel
    # and the reference widen the SAME bf16 values, so there is no eps-induced
    # divergence between kernel and reference.
    w_eps = jax.random.normal(kwe, (DEPTH, N_SAMPLES, F, F),
                              dtype=jnp.float32).astype(jnp.bfloat16)

    b_mu = 0.1 * jax.random.normal(kbm, (DEPTH, 1, F), dtype=jnp.float32)
    b_rho = jnp.full((DEPTH, 1, F), -4.0, dtype=jnp.float32)
    b_eps = jax.random.normal(kbe, (DEPTH, N_SAMPLES, 1, F), dtype=jnp.float32)

    out = bayes_block(x, w_mu, w_rho, w_eps, b_mu, b_rho, b_eps)
    out = jax.block_until_ready(out)

    ref = bayes_block_ref(x, w_mu, w_rho, w_eps, b_mu, b_rho, b_eps)
    np.testing.assert_allclose(np.asarray(out), np.asarray(ref), rtol=1e-2, atol=1e-2)

    print("KERNEL_OK")
</pallas_src>

<mosaic_0001>
module attributes {stable_mosaic.version = 11 : i64} {
  func.func @bayes_block_kernel(%arg0: i32, %arg1: memref<8x128xf32, #tpu.memory_space<vmem>>, %arg2: memref<1x128x128xf32, #tpu.memory_space<vmem>>, %arg3: memref<1x128x128xf32, #tpu.memory_space<vmem>>, %arg4: memref<1x4x128x128xbf16, #tpu.memory_space<vmem>>, %arg5: memref<1x1x128xf32, #tpu.memory_space<vmem>>, %arg6: memref<1x1x128xf32, #tpu.memory_space<vmem>>, %arg7: memref<1x4x1x128xf32, #tpu.memory_space<vmem>>, %arg8: memref<8x128xf32, #tpu.memory_space<vmem>>, %arg9: memref<4x8x128xf32, #tpu.memory_space<vmem>>) attributes {dimension_semantics = [#tpu.dimension_semantics<arbitrary>], iteration_bounds = array<i64: 3>, scalar_prefetch = 0 : i64, scratch_operands = 1 : i64, tpu.core_type = #tpu.core_type<tc>, window_params = [{pipeline_mode = #tpu.pipeline_mode<synchronous>, transform_indices = @transform_0, window_bounds = array<i64: 8, 128>}, {transform_indices = @transform_1, window_bounds = array<i64: 1, 128, 128>}, {transform_indices = @transform_2, window_bounds = array<i64: 1, 128, 128>}, {transform_indices = @transform_3, window_bounds = array<i64: 1, 4, 128, 128>}, {transform_indices = @transform_4, window_bounds = array<i64: 1, 1, 128>}, {transform_indices = @transform_5, window_bounds = array<i64: 1, 1, 128>}, {transform_indices = @transform_6, window_bounds = array<i64: 1, 4, 1, 128>}, {pipeline_mode = #tpu.pipeline_mode<synchronous>, transform_indices = @transform_7, window_bounds = array<i64: 8, 128>}]} {
    %c0_i32 = arith.constant 0 : i32
    %0 = arith.cmpi eq, %arg0, %c0_i32 : i32
    %1 = arith.extui %0 : i1 to i32
    %c0_i32_0 = arith.constant 0 : i32
    %2 = arith.cmpi ne, %1, %c0_i32_0 : i32
    scf.if %2 {
      %c0_95 = arith.constant 0 : index
      %c0_96 = arith.constant 0 : index
      %118 = vector.load %arg1[%c0_95, %c0_96] : memref<8x128xf32, #tpu.memory_space<vmem>>, vector<8x128xf32>
      %c0_97 = arith.constant 0 : index
      %c0_98 = arith.constant 0 : index
      %c0_99 = arith.constant 0 : index
      %119 = vector.load %arg9[%c0_97, %c0_98, %c0_99] : memref<4x8x128xf32, #tpu.memory_space<vmem>>, vector<1x8x128xf32>
      %120 = vector.shape_cast %119 : vector<1x8x128xf32> to vector<8x128xf32>
      %121 = vector.shape_cast %118 : vector<8x128xf32> to vector<1x8x128xf32>
      tpu.vector_store %arg9[%c0_97, %c0_98, %c0_99], %121 {strides = array<i32>} : memref<4x8x128xf32, #tpu.memory_space<vmem>>, vector<1x8x128xf32>,
      %c0_100 = arith.constant 0 : index
      %c0_101 = arith.constant 0 : index
      %122 = vector.load %arg1[%c0_100, %c0_101] : memref<8x128xf32, #tpu.memory_space<vmem>>, vector<8x128xf32>
      %c1_102 = arith.constant 1 : index
      %c0_103 = arith.constant 0 : index
      %c0_104 = arith.constant 0 : index
      %123 = vector.load %arg9[%c1_102, %c0_103, %c0_104] : memref<4x8x128xf32, #tpu.memory_space<vmem>>, vector<1x8x128xf32>
      %124 = vector.shape_cast %123 : vector<1x8x128xf32> to vector<8x128xf32>
      %125 = vector.shape_cast %122 : vector<8x128xf32> to vector<1x8x128xf32>
      tpu.vector_store %arg9[%c1_102, %c0_103, %c0_104], %125 {strides = array<i32>} : memref<4x8x128xf32, #tpu.memory_space<vmem>>, vector<1x8x128xf32>,
      %c0_105 = arith.constant 0 : index
      %c0_106 = arith.constant 0 : index
      %126 = vector.load %arg1[%c0_105, %c0_106] : memref<8x128xf32, #tpu.memory_space<vmem>>, vector<8x128xf32>
      %c2_107 = arith.constant 2 : index
      %c0_108 = arith.constant 0 : index
      %c0_109 = arith.constant 0 : index
      %127 = vector.load %arg9[%c2_107, %c0_108, %c0_109] : memref<4x8x128xf32, #tpu.memory_space<vmem>>, vector<1x8x128xf32>
      %128 = vector.shape_cast %127 : vector<1x8x128xf32> to vector<8x128xf32>
      %129 = vector.shape_cast %126 : vector<8x128xf32> to vector<1x8x128xf32>
      tpu.vector_store %arg9[%c2_107, %c0_108, %c0_109], %129 {strides = array<i32>} : memref<4x8x128xf32, #tpu.memory_space<vmem>>, vector<1x8x128xf32>,
      %c0_110 = arith.constant 0 : index
      %c0_111 = arith.constant 0 : index
      %130 = vector.load %arg1[%c0_110, %c0_111] : memref<8x128xf32, #tpu.memory_space<vmem>>, vector<8x128xf32>
      %c3_112 = arith.constant 3 : index
      %c0_113 = arith.constant 0 : index
      %c0_114 = arith.constant 0 : index
      %131 = vector.load %arg9[%c3_112, %c0_113, %c0_114] : memref<4x8x128xf32, #tpu.memory_space<vmem>>, vector<1x8x128xf32>
      %132 = vector.shape_cast %131 : vector<1x8x128xf32> to vector<8x128xf32>
      %133 = vector.shape_cast %130 : vector<8x128xf32> to vector<1x8x128xf32>
      tpu.vector_store %arg9[%c3_112, %c0_113, %c0_114], %133 {strides = array<i32>} : memref<4x8x128xf32, #tpu.memory_space<vmem>>, vector<1x8x128xf32>,
    } else {
    }
    %c0 = arith.constant 0 : index
    %c0_1 = arith.constant 0 : index
    %c0_2 = arith.constant 0 : index
    %3 = vector.load %arg3[%c0, %c0_1, %c0_2] : memref<1x128x128xf32, #tpu.memory_space<vmem>>, vector<1x128x128xf32>
    %4 = vector.shape_cast %3 : vector<1x128x128xf32> to vector<128x128xf32>
    %cst = arith.constant 0.000000e+00 : f32
    %5 = vector.broadcast %cst : f32 to vector<128x128xf32>
    %6 = arith.maximumf %4, %5 : vector<128x128xf32>
    %7 = math.absf %4 : vector<128x128xf32>
    %cst_3 = arith.constant 0.000000e+00 : f32
    %8 = vector.broadcast %cst_3 : f32 to vector<128x128xf32>
    %9 = arith.subf %8, %7 : vector<128x128xf32>
    %10 = math.exp %9 : vector<128x128xf32>
    %11 = math.log1p %10 : vector<128x128xf32>
    %12 = arith.addf %6, %11 : vector<128x128xf32>
    %c0_4 = arith.constant 0 : index
    %c0_5 = arith.constant 0 : index
    %c0_6 = arith.constant 0 : index
    %13 = vector.load %arg6[%c0_4, %c0_5, %c0_6] : memref<1x1x128xf32, #tpu.memory_space<vmem>>, vector<1x1x128xf32>
    %14 = vector.shape_cast %13 : vector<1x1x128xf32> to vector<1x128xf32>
    %cst_7 = arith.constant 0.000000e+00 : f32
    %15 = vector.broadcast %cst_7 : f32 to vector<1x128xf32>
    %16 = arith.maximumf %14, %15 : vector<1x128xf32>
    %17 = math.absf %14 : vector<1x128xf32>
    %cst_8 = arith.constant 0.000000e+00 : f32
    %18 = vector.broadcast %cst_8 : f32 to vector<1x128xf32>
    %19 = arith.subf %18, %17 : vector<1x128xf32>
    %20 = math.exp %19 : vector<1x128xf32>
    %21 = math.log1p %20 : vector<1x128xf32>
    %22 = arith.addf %16, %21 : vector<1x128xf32>
    %c0_9 = arith.constant 0 : index
    %c0_10 = arith.constant 0 : index
    %c0_11 = arith.constant 0 : index
    %23 = vector.load %arg2[%c0_9, %c0_10, %c0_11] : memref<1x128x128xf32, #tpu.memory_space<vmem>>, vector<1x128x128xf32>
    %24 = vector.shape_cast %23 : vector<1x128x128xf32> to vector<128x128xf32>
    %c0_12 = arith.constant 0 : index
    %c0_13 = arith.constant 0 : index
    %c0_14 = arith.constant 0 : index
    %c0_15 = arith.constant 0 : index
    %25 = vector.load %arg4[%c0_12, %c0_13, %c0_14, %c0_15] : memref<1x4x128x128xbf16, #tpu.memory_space<vmem>>, vector<1x1x128x128xbf16>
    %26 = vector.shape_cast %25 : vector<1x1x128x128xbf16> to vector<128x128xbf16>
    %27 = arith.extf %26 : vector<128x128xbf16> to vector<128x128xf32>
    %28 = arith.mulf %12, %27 : vector<128x128xf32>
    %29 = arith.addf %24, %28 : vector<128x128xf32>
    %c0_16 = arith.constant 0 : index
    %c0_17 = arith.constant 0 : index
    %c0_18 = arith.constant 0 : index
    %30 = vector.load %arg5[%c0_16, %c0_17, %c0_18] : memref<1x1x128xf32, #tpu.memory_space<vmem>>, vector<1x1x128xf32>
    %31 = vector.shape_cast %30 : vector<1x1x128xf32> to vector<1x128xf32>
    %c0_19 = arith.constant 0 : index
    %c0_20 = arith.constant 0 : index
    %c0_21 = arith.constant 0 : index
    %c0_22 = arith.constant 0 : index
    %32 = vector.load %arg7[%c0_19, %c0_20, %c0_21, %c0_22] : memref<1x4x1x128xf32, #tpu.memory_space<vmem>>, vector<1x1x1x128xf32>
    %33 = vector.shape_cast %32 : vector<1x1x1x128xf32> to vector<1x128xf32>
    %34 = arith.mulf %22, %33 : vector<1x128xf32>
    %35 = arith.addf %31, %34 : vector<1x128xf32>
    %c0_23 = arith.constant 0 : index
    %c0_24 = arith.constant 0 : index
    %c0_25 = arith.constant 0 : index
    %36 = vector.load %arg9[%c0_23, %c0_24, %c0_25] : memref<4x8x128xf32, #tpu.memory_space<vmem>>, vector<1x8x128xf32>
    %37 = vector.shape_cast %36 : vector<1x8x128xf32> to vector<8x128xf32>
    %cst_26 = arith.constant dense<0.000000e+00> : vector<8x128xf32>
    %38 = tpu.matmul %37, %29, %cst_26 {dimension_numbers = #tpu.dot_dimension_numbers<[1], [0], [0], [1], [0, 0, 1, 1], [], []>} : vector<8x128xf32>, vector<128x128xf32>, vector<8x128xf32> -> vector<8x128xf32>
    %39 = vector.broadcast %35 : vector<1x128xf32> to vector<8x128xf32>
    %40 = arith.addf %38, %39 : vector<8x128xf32>
    %cst_27 = arith.constant 0.000000e+00 : f32
    %41 = vector.broadcast %cst_27 : f32 to vector<8x128xf32>
    %42 = arith.maximumf %40, %41 : vector<8x128xf32>
    %c0_28 = arith.constant 0 : index
    %c0_29 = arith.constant 0 : index
    %c0_30 = arith.constant 0 : index
    %43 = vector.load %arg9[%c0_28, %c0_29, %c0_30] : memref<4x8x128xf32, #tpu.memory_space<vmem>>, vector<1x8x128xf32>
    %44 = vector.shape_cast %43 : vector<1x8x128xf32> to vector<8x128xf32>
    %45 = vector.shape_cast %42 : vector<8x128xf32> to vector<1x8x128xf32>
    tpu.vector_store %arg9[%c0_28, %c0_29, %c0_30], %45 {strides = array<i32>} : memref<4x8x128xf32, #tpu.memory_space<vmem>>, vector<1x8x128xf32>,
    %c0_31 = arith.constant 0 : index
    %c0_32 = arith.constant 0 : index
    %c0_33 = arith.constant 0 : index
    %46 = vector.load %arg2[%c0_31, %c0_32, %c0_33] : memref<1x128x128xf32, #tpu.memory_space<vmem>>, vector<1x128x128xf32>
    %47 = vector.shape_cast %46 : vector<1x128x128xf32> to vector<128x128xf32>
    %c0_34 = arith.constant 0 : index
    %c1 = arith.constant 1 : index
    %c0_35 = arith.constant 0 : index
    %c0_36 = arith.constant 0 : index
    %48 = vector.load %arg4[%c0_34, %c1, %c0_35, %c0_36] : memref<1x4x128x128xbf16, #tpu.memory_space<vmem>>, vector<1x1x128x128xbf16>
    %49 = vector.shape_cast %48 : vector<1x1x128x128xbf16> to vector<128x128xbf16>
    %50 = arith.extf %49 : vector<128x128xbf16> to vector<128x128xf32>
    %51 = arith.mulf %12, %50 : vector<128x128xf32>
    %52 = arith.addf %47, %51 : vector<128x128xf32>
    %c0_37 = arith.constant 0 : index
    %c0_38 = arith.constant 0 : index
    %c0_39 = arith.constant 0 : index
    %53 = vector.load %arg5[%c0_37, %c0_38, %c0_39] : memref<1x1x128xf32, #tpu.memory_space<vmem>>, vector<1x1x128xf32>
    %54 = vector.shape_cast %53 : vector<1x1x128xf32> to vector<1x128xf32>
    %c0_40 = arith.constant 0 : index
    %c1_41 = arith.constant 1 : index
    %c0_42 = arith.constant 0 : index
    %c0_43 = arith.constant 0 : index
    %55 = vector.load %arg7[%c0_40, %c1_41, %c0_42, %c0_43] : memref<1x4x1x128xf32, #tpu.memory_space<vmem>>, vector<1x1x1x128xf32>
    %56 = vector.shape_cast %55 : vector<1x1x1x128xf32> to vector<1x128xf32>
    %57 = arith.mulf %22, %56 : vector<1x128xf32>
    %58 = arith.addf %54, %57 : vector<1x128xf32>
    %c1_44 = arith.constant 1 : index
    %c0_45 = arith.constant 0 : index
    %c0_46 = arith.constant 0 : index
    %59 = vector.load %arg9[%c1_44, %c0_45, %c0_46] : memref<4x8x128xf32, #tpu.memory_space<vmem>>, vector<1x8x128xf32>
    %60 = vector.shape_cast %59 : vector<1x8x128xf32> to vector<8x128xf32>
    %cst_47 = arith.constant dense<0.000000e+00> : vector<8x128xf32>
    %61 = tpu.matmul %60, %52, %cst_47 {dimension_numbers = #tpu.dot_dimension_numbers<[1], [0], [0], [1], [0, 0, 1, 1], [], []>} : vector<8x128xf32>, vector<128x128xf32>, vector<8x128xf32> -> vector<8x128xf32>
    %62 = vector.broadcast %58 : vector<1x128xf32> to vector<8x128xf32>
    %63 = arith.addf %61, %62 : vector<8x128xf32>
    %cst_48 = arith.constant 0.000000e+00 : f32
    %64 = vector.broadcast %cst_48 : f32 to vector<8x128xf32>
    %65 = arith.maximumf %63, %64 : vector<8x128xf32>
    %c1_49 = arith.constant 1 : index
    %c0_50 = arith.constant 0 : index
    %c0_51 = arith.constant 0 : index
    %66 = vector.load %arg9[%c1_49, %c0_50, %c0_51] : memref<4x8x128xf32, #tpu.memory_space<vmem>>, vector<1x8x128xf32>
    %67 = vector.shape_cast %66 : vector<1x8x128xf32> to vector<8x128xf32>
    %68 = vector.shape_cast %65 : vector<8x128xf32> to vector<1x8x128xf32>
    tpu.vector_store %arg9[%c1_49, %c0_50, %c0_51], %68 {strides = array<i32>} : memref<4x8x128xf32, #tpu.memory_space<vmem>>, vector<1x8x128xf32>,
    %c0_52 = arith.constant 0 : index
    %c0_53 = arith.constant 0 : index
    %c0_54 = arith.constant 0 : index
    %69 = vector.load %arg2[%c0_52, %c0_53, %c0_54] : memref<1x128x128xf32, #tpu.memory_space<vmem>>, vector<1x128x128xf32>
    %70 = vector.shape_cast %69 : vector<1x128x128xf32> to vector<128x128xf32>
    %c0_55 = arith.constant 0 : index
    %c2 = arith.constant 2 : index
    %c0_56 = arith.constant 0 : index
    %c0_57 = arith.constant 0 : index
    %71 = vector.load %arg4[%c0_55, %c2, %c0_56, %c0_57] : memref<1x4x128x128xbf16, #tpu.memory_space<vmem>>, vector<1x1x128x128xbf16>
    %72 = vector.shape_cast %71 : vector<1x1x128x128xbf16> to vector<128x128xbf16>
    %73 = arith.extf %72 : vector<128x128xbf16> to vector<128x128xf32>
    %74 = arith.mulf %12, %73 : vector<128x128xf32>
    %75 = arith.addf %70, %74 : vector<128x128xf32>
    %c0_58 = arith.constant 0 : index
    %c0_59 = arith.constant 0 : index
    %c0_60 = arith.constant 0 : index
    %76 = vector.load %arg5[%c0_58, %c0_59, %c0_60] : memref<1x1x128xf32, #tpu.memory_space<vmem>>, vector<1x1x128xf32>
    %77 = vector.shape_cast %76 : vector<1x1x128xf32> to vector<1x128xf32>
    %c0_61 = arith.constant 0 : index
    %c2_62 = arith.constant 2 : index
    %c0_63 = arith.constant 0 : index
    %c0_64 = arith.constant 0 : index
    %78 = vector.load %arg7[%c0_61, %c2_62, %c0_63, %c0_64] : memref<1x4x1x128xf32, #tpu.memory_space<vmem>>, vector<1x1x1x128xf32>
    %79 = vector.shape_cast %78 : vector<1x1x1x128xf32> to vector<1x128xf32>
    %80 = arith.mulf %22, %79 : vector<1x128xf32>
    %81 = arith.addf %77, %80 : vector<1x128xf32>
    %c2_65 = arith.constant 2 : index
    %c0_66 = arith.constant 0 : index
    %c0_67 = arith.constant 0 : index
    %82 = vector.load %arg9[%c2_65, %c0_66, %c0_67] : memref<4x8x128xf32, #tpu.memory_space<vmem>>, vector<1x8x128xf32>
    %83 = vector.shape_cast %82 : vector<1x8x128xf32> to vector<8x128xf32>
    %cst_68 = arith.constant dense<0.000000e+00> : vector<8x128xf32>
    %84 = tpu.matmul %83, %75, %cst_68 {dimension_numbers = #tpu.dot_dimension_numbers<[1], [0], [0], [1], [0, 0, 1, 1], [], []>} : vector<8x128xf32>, vector<128x128xf32>, vector<8x128xf32> -> vector<8x128xf32>
    %85 = vector.broadcast %81 : vector<1x128xf32> to vector<8x128xf32>
    %86 = arith.addf %84, %85 : vector<8x128xf32>
    %cst_69 = arith.constant 0.000000e+00 : f32
    %87 = vector.broadcast %cst_69 : f32 to vector<8x128xf32>
    %88 = arith.maximumf %86, %87 : vector<8x128xf32>
    %c2_70 = arith.constant 2 : index
    %c0_71 = arith.constant 0 : index
    %c0_72 = arith.constant 0 : index
    %89 = vector.load %arg9[%c2_70, %c0_71, %c0_72] : memref<4x8x128xf32, #tpu.memory_space<vmem>>, vector<1x8x128xf32>
    %90 = vector.shape_cast %89 : vector<1x8x128xf32> to vector<8x128xf32>
    %91 = vector.shape_cast %88 : vector<8x128xf32> to vector<1x8x128xf32>
    tpu.vector_store %arg9[%c2_70, %c0_71, %c0_72], %91 {strides = array<i32>} : memref<4x8x128xf32, #tpu.memory_space<vmem>>, vector<1x8x128xf32>,
    %c0_73 = arith.constant 0 : index
    %c0_74 = arith.constant 0 : index
    %c0_75 = arith.constant 0 : index
    %92 = vector.load %arg2[%c0_73, %c0_74, %c0_75] : memref<1x128x128xf32, #tpu.memory_space<vmem>>, vector<1x128x128xf32>
    %93 = vector.shape_cast %92 : vector<1x128x128xf32> to vector<128x128xf32>
    %c0_76 = arith.constant 0 : index
    %c3 = arith.constant 3 : index
    %c0_77 = arith.constant 0 : index
    %c0_78 = arith.constant 0 : index
    %94 = vector.load %arg4[%c0_76, %c3, %c0_77, %c0_78] : memref<1x4x128x128xbf16, #tpu.memory_space<vmem>>, vector<1x1x128x128xbf16>
    %95 = vector.shape_cast %94 : vector<1x1x128x128xbf16> to vector<128x128xbf16>
    %96 = arith.extf %95 : vector<128x128xbf16> to vector<128x128xf32>
    %97 = arith.mulf %12, %96 : vector<128x128xf32>
    %98 = arith.addf %93, %97 : vector<128x128xf32>
    %c0_79 = arith.constant 0 : index
    %c0_80 = arith.constant 0 : index
    %c0_81 = arith.constant 0 : index
    %99 = vector.load %arg5[%c0_79, %c0_80, %c0_81] : memref<1x1x128xf32, #tpu.memory_space<vmem>>, vector<1x1x128xf32>
    %100 = vector.shape_cast %99 : vector<1x1x128xf32> to vector<1x128xf32>
    %c0_82 = arith.constant 0 : index
    %c3_83 = arith.constant 3 : index
    %c0_84 = arith.constant 0 : index
    %c0_85 = arith.constant 0 : index
    %101 = vector.load %arg7[%c0_82, %c3_83, %c0_84, %c0_85] : memref<1x4x1x128xf32, #tpu.memory_space<vmem>>, vector<1x1x1x128xf32>
    %102 = vector.shape_cast %101 : vector<1x1x1x128xf32> to vector<1x128xf32>
    %103 = arith.mulf %22, %102 : vector<1x128xf32>
    %104 = arith.addf %100, %103 : vector<1x128xf32>
    %c3_86 = arith.constant 3 : index
    %c0_87 = arith.constant 0 : index
    %c0_88 = arith.constant 0 : index
    %105 = vector.load %arg9[%c3_86, %c0_87, %c0_88] : memref<4x8x128xf32, #tpu.memory_space<vmem>>, vector<1x8x128xf32>
    %106 = vector.shape_cast %105 : vector<1x8x128xf32> to vector<8x128xf32>
    %cst_89 = arith.constant dense<0.000000e+00> : vector<8x128xf32>
    %107 = tpu.matmul %106, %98, %cst_89 {dimension_numbers = #tpu.dot_dimension_numbers<[1], [0], [0], [1], [0, 0, 1, 1], [], []>} : vector<8x128xf32>, vector<128x128xf32>, vector<8x128xf32> -> vector<8x128xf32>
    %108 = vector.broadcast %104 : vector<1x128xf32> to vector<8x128xf32>
    %109 = arith.addf %107, %108 : vector<8x128xf32>
    %cst_90 = arith.constant 0.000000e+00 : f32
    %110 = vector.broadcast %cst_90 : f32 to vector<8x128xf32>
    %111 = arith.maximumf %109, %110 : vector<8x128xf32>
    %c3_91 = arith.constant 3 : index
    %c0_92 = arith.constant 0 : index
    %c0_93 = arith.constant 0 : index
    %112 = vector.load %arg9[%c3_91, %c0_92, %c0_93] : memref<4x8x128xf32, #tpu.memory_space<vmem>>, vector<1x8x128xf32>
    %113 = vector.shape_cast %112 : vector<1x8x128xf32> to vector<8x128xf32>
    %114 = vector.shape_cast %111 : vector<8x128xf32> to vector<1x8x128xf32>
    tpu.vector_store %arg9[%c3_91, %c0_92, %c0_93], %114 {strides = array<i32>} : memref<4x8x128xf32, #tpu.memory_space<vmem>>, vector<1x8x128xf32>,
    %c2_i32 = arith.constant 2 : i32
    %115 = arith.cmpi eq, %arg0, %c2_i32 : i32
    %116 = arith.extui %115 : i1 to i32
    %c0_i32_94 = arith.constant 0 : i32
    %117 = arith.cmpi ne, %116, %c0_i32_94 : i32
    scf.if %117 {
      %c0_95 = arith.constant 0 : index
      %c0_96 = arith.constant 0 : index
      %c0_97 = arith.constant 0 : index
      %118 = vector.load %arg9[%c0_95, %c0_96, %c0_97] : memref<4x8x128xf32, #tpu.memory_space<vmem>>, vector<4x8x128xf32>
      %119 = vector.shape_cast %118 : vector<4x8x128xf32> to vector<32x128xf32>
      %cst_98 = arith.constant dense<0xFF800000> : vector<32xf32>
      %120 = vector.multi_reduction <maximumf>, %119, %cst_98 [1] : vector<32x128xf32> to vector<32xf32>
      %121 = vector.shape_cast %120 : vector<32xf32> to vector<32x1xf32>
      %cst_99 = arith.constant 1.000000e+00 : f32
      %122 = vector.broadcast %cst_99 : f32 to vector<32x1xf32>
      %123 = arith.subf %121, %122 : vector<32x1xf32>
      %c0_i32_100 = arith.constant 0 : i32
      %124 = arith.addf %123, %121 : vector<32x1xf32>
      %cst_101 = arith.constant 5.000000e-01 : f32
      %125 = vector.broadcast %cst_101 : f32 to vector<32x1xf32>
      %126 = arith.mulf %125, %124 : vector<32x1xf32>
      %127 = vector.broadcast %126 : vector<32x1xf32> to vector<32x128xf32>
      %128 = arith.subf %119, %127 : vector<32x128xf32>
      %cst_102 = arith.constant 0.000000e+00 : f32
      %129 = vector.broadcast %cst_102 : f32 to vector<32x128xf32>
      %130 = arith.maximumf %128, %129 : vector<32x128xf32>
      %cst_103 = arith.constant dense<0.000000e+00> : vector<32xf32>
      %131 = vector.multi_reduction <add>, %130, %cst_103 [1] : vector<32x128xf32> to vector<32xf32>
      %132 = vector.shape_cast %131 : vector<32xf32> to vector<32x1xf32>
      %cst_104 = arith.constant 1.000000e+00 : f32
      %133 = vector.broadcast %cst_104 : f32 to vector<32x1xf32>
      %134 = arith.cmpf ogt, %132, %133 : vector<32x1xf32>
      %135 = arith.select %134, %126, %123 : vector<32x1xi1>, vector<32x1xf32>
      %136 = arith.select %134, %121, %126 : vector<32x1xi1>, vector<32x1xf32>
      %c1_i32 = arith.constant 1 : i32
      %137 = arith.addf %135, %136 : vector<32x1xf32>
      %cst_105 = arith.constant 5.000000e-01 : f32
      %138 = vector.broadcast %cst_105 : f32 to vector<32x1xf32>
      %139 = arith.mulf %138, %137 : vector<32x1xf32>
      %140 = vector.broadcast %139 : vector<32x1xf32> to vector<32x128xf32>
      %141 = arith.subf %119, %140 : vector<32x128xf32>
      %cst_106 = arith.constant 0.000000e+00 : f32
      %142 = vector.broadcast %cst_106 : f32 to vector<32x128xf32>
      %143 = arith.maximumf %141, %142 : vector<32x128xf32>
      %cst_107 = arith.constant dense<0.000000e+00> : vector<32xf32>
      %144 = vector.multi_reduction <add>, %143, %cst_107 [1] : vector<32x128xf32> to vector<32xf32>
      %145 = vector.shape_cast %144 : vector<32xf32> to vector<32x1xf32>
      %cst_108 = arith.constant 1.000000e+00 : f32
      %146 = vector.broadcast %cst_108 : f32 to vector<32x1xf32>
      %147 = arith.cmpf ogt, %145, %146 : vector<32x1xf32>
      %148 = arith.select %147, %139, %135 : vector<32x1xi1>, vector<32x1xf32>
      %149 = arith.select %147, %136, %139 : vector<32x1xi1>, vector<32x1xf32>
      %c2_i32_109 = arith.constant 2 : i32
      %150 = arith.addf %148, %149 : vector<32x1xf32>
      %cst_110 = arith.constant 5.000000e-01 : f32
      %151 = vector.broadcast %cst_110 : f32 to vector<32x1xf32>
      %152 = arith.mulf %151, %150 : vector<32x1xf32>
      %153 = vector.broadcast %152 : vector<32x1xf32> to vector<32x128xf32>
      %154 = arith.subf %119, %153 : vector<32x128xf32>
      %cst_111 = arith.constant 0.000000e+00 : f32
      %155 = vector.broadcast %cst_111 : f32 to vector<32x128xf32>
      %156 = arith.maximumf %154, %155 : vector<32x128xf32>
      %cst_112 = arith.constant dense<0.000000e+00> : vector<32xf32>
      %157 = vector.multi_reduction <add>, %156, %cst_112 [1] : vector<32x128xf32> to vector<32xf32>
      %158 = vector.shape_cast %157 : vector<32xf32> to vector<32x1xf32>
      %cst_113 = arith.constant 1.000000e+00 : f32
      %159 = vector.broadcast %cst_113 : f32 to vector<32x1xf32>
      %160 = arith.cmpf ogt, %158, %159 : vector<32x1xf32>
      %161 = arith.select %160, %152, %148 : vector<32x1xi1>, vector<32x1xf32>
      %162 = arith.select %160, %149, %152 : vector<32x1xi1>, vector<32x1xf32>
      %c3_i32 = arith.constant 3 : i32
      %163 = arith.addf %161, %162 : vector<32x1xf32>
      %cst_114 = arith.constant 5.000000e-01 : f32
      %164 = vector.broadcast %cst_114 : f32 to vector<32x1xf32>
      %165 = arith.mulf %164, %163 : vector<32x1xf32>
      %166 = vector.broadcast %165 : vector<32x1xf32> to vector<32x128xf32>
      %167 = arith.subf %119, %166 : vector<32x128xf32>
      %cst_115 = arith.constant 0.000000e+00 : f32
      %168 = vector.broadcast %cst_115 : f32 to vector<32x128xf32>
      %169 = arith.maximumf %167, %168 : vector<32x128xf32>
      %cst_116 = arith.constant dense<0.000000e+00> : vector<32xf32>
      %170 = vector.multi_reduction <add>, %169, %cst_116 [1] : vector<32x128xf32> to vector<32xf32>
      %171 = vector.shape_cast %170 : vector<32xf32> to vector<32x1xf32>
      %cst_117 = arith.constant 1.000000e+00 : f32
      %172 = vector.broadcast %cst_117 : f32 to vector<32x1xf32>
      %173 = arith.cmpf ogt, %171, %172 : vector<32x1xf32>
      %174 = arith.select %173, %165, %161 : vector<32x1xi1>, vector<32x1xf32>
      %175 = arith.select %173, %162, %165 : vector<32x1xi1>, vector<32x1xf32>
      %c4_i32 = arith.constant 4 : i32
      %176 = arith.addf %174, %175 : vector<32x1xf32>
      %cst_118 = arith.constant 5.000000e-01 : f32
      %177 = vector.broadcast %cst_118 : f32 to vector<32x1xf32>
      %178 = arith.mulf %177, %176 : vector<32x1xf32>
      %179 = vector.broadcast %178 : vector<32x1xf32> to vector<32x128xf32>
      %180 = arith.subf %119, %179 : vector<32x128xf32>
      %cst_119 = arith.constant 0.000000e+00 : f32
      %181 = vector.broadcast %cst_119 : f32 to vector<32x128xf32>
      %182 = arith.maximumf %180, %181 : vector<32x128xf32>
      %cst_120 = arith.constant dense<0.000000e+00> : vector<32xf32>
      %183 = vector.multi_reduction <add>, %182, %cst_120 [1] : vector<32x128xf32> to vector<32xf32>
      %184 = vector.shape_cast %183 : vector<32xf32> to vector<32x1xf32>
      %cst_121 = arith.constant 1.000000e+00 : f32
      %185 = vector.broadcast %cst_121 : f32 to vector<32x1xf32>
      %186 = arith.cmpf ogt, %184, %185 : vector<32x1xf32>
      %187 = arith.select %186, %178, %174 : vector<32x1xi1>, vector<32x1xf32>
      %188 = arith.select %186, %175, %178 : vector<32x1xi1>, vector<32x1xf32>
      %c5_i32 = arith.constant 5 : i32
      %189 = arith.addf %187, %188 : vector<32x1xf32>
      %cst_122 = arith.constant 5.000000e-01 : f32
      %190 = vector.broadcast %cst_122 : f32 to vector<32x1xf32>
      %191 = arith.mulf %190, %189 : vector<32x1xf32>
      %192 = vector.broadcast %191 : vector<32x1xf32> to vector<32x128xf32>
      %193 = arith.subf %119, %192 : vector<32x128xf32>
      %cst_123 = arith.constant 0.000000e+00 : f32
      %194 = vector.broadcast %cst_123 : f32 to vector<32x128xf32>
      %195 = arith.maximumf %193, %194 : vector<32x128xf32>
      %cst_124 = arith.constant dense<0.000000e+00> : vector<32xf32>
      %196 = vector.multi_reduction <add>, %195, %cst_124 [1] : vector<32x128xf32> to vector<32xf32>
      %197 = vector.shape_cast %196 : vector<32xf32> to vector<32x1xf32>
      %cst_125 = arith.constant 1.000000e+00 : f32
      %198 = vector.broadcast %cst_125 : f32 to vector<32x1xf32>
      %199 = arith.cmpf ogt, %197, %198 : vector<32x1xf32>
      %200 = arith.select %199, %191, %187 : vector<32x1xi1>, vector<32x1xf32>
      %201 = arith.select %199, %188, %191 : vector<32x1xi1>, vector<32x1xf32>
      %c6_i32 = arith.constant 6 : i32
      %202 = arith.addf %200, %201 : vector<32x1xf32>
      %cst_126 = arith.constant 5.000000e-01 : f32
      %203 = vector.broadcast %cst_126 : f32 to vector<32x1xf32>
      %204 = arith.mulf %203, %202 : vector<32x1xf32>
      %205 = vector.broadcast %204 : vector<32x1xf32> to vector<32x128xf32>
      %206 = arith.subf %119, %205 : vector<32x128xf32>
      %cst_127 = arith.constant 0.000000e+00 : f32
      %207 = vector.broadcast %cst_127 : f32 to vector<32x128xf32>
      %208 = arith.maximumf %206, %207 : vector<32x128xf32>
      %cst_128 = arith.constant dense<0.000000e+00> : vector<32xf32>
      %209 = vector.multi_reduction <add>, %208, %cst_128 [1] : vector<32x128xf32> to vector<32xf32>
      %210 = vector.shape_cast %209 : vector<32xf32> to vector<32x1xf32>
      %cst_129 = arith.constant 1.000000e+00 : f32
      %211 = vector.broadcast %cst_129 : f32 to vector<32x1xf32>
      %212 = arith.cmpf ogt, %210, %211 : vector<32x1xf32>
      %213 = arith.select %212, %204, %200 : vector<32x1xi1>, vector<32x1xf32>
      %214 = arith.select %212, %201, %204 : vector<32x1xi1>, vector<32x1xf32>
      %c7_i32 = arith.constant 7 : i32
      %215 = arith.addf %213, %214 : vector<32x1xf32>
      %cst_130 = arith.constant 5.000000e-01 : f32
      %216 = vector.broadcast %cst_130 : f32 to vector<32x1xf32>
      %217 = arith.mulf %216, %215 : vector<32x1xf32>
      %218 = vector.broadcast %217 : vector<32x1xf32> to vector<32x128xf32>
      %219 = arith.subf %119, %218 : vector<32x128xf32>
      %cst_131 = arith.constant 0.000000e+00 : f32
      %220 = vector.broadcast %cst_131 : f32 to vector<32x128xf32>
      %221 = arith.maximumf %219, %220 : vector<32x128xf32>
      %cst_132 = arith.constant dense<0.000000e+00> : vector<32xf32>
      %222 = vector.multi_reduction <add>, %221, %cst_132 [1] : vector<32x128xf32> to vector<32xf32>
      %223 = vector.shape_cast %222 : vector<32xf32> to vector<32x1xf32>
      %cst_133 = arith.constant 1.000000e+00 : f32
      %224 = vector.broadcast %cst_133 : f32 to vector<32x1xf32>
      %225 = arith.cmpf ogt, %223, %224 : vector<32x1xf32>
      %226 = arith.select %225, %217, %213 : vector<32x1xi1>, vector<32x1xf32>
      %227 = arith.select %225, %214, %217 : vector<32x1xi1>, vector<32x1xf32>
      %c8_i32 = arith.constant 8 : i32
      %228 = arith.addf %226, %227 : vector<32x1xf32>
      %cst_134 = arith.constant 5.000000e-01 : f32
      %229 = vector.broadcast %cst_134 : f32 to vector<32x1xf32>
      %230 = arith.mulf %229, %228 : vector<32x1xf32>
      %231 = vector.broadcast %230 : vector<32x1xf32> to vector<32x128xf32>
      %232 = arith.subf %119, %231 : vector<32x128xf32>
      %cst_135 = arith.constant 0.000000e+00 : f32
      %233 = vector.broadcast %cst_135 : f32 to vector<32x128xf32>
      %234 = arith.maximumf %232, %233 : vector<32x128xf32>
      %cst_136 = arith.constant dense<0.000000e+00> : vector<32xf32>
      %235 = vector.multi_reduction <add>, %234, %cst_136 [1] : vector<32x128xf32> to vector<32xf32>
      %236 = vector.shape_cast %235 : vector<32xf32> to vector<32x1xf32>
      %cst_137 = arith.constant 1.000000e+00 : f32
      %237 = vector.broadcast %cst_137 : f32 to vector<32x1xf32>
      %238 = arith.cmpf ogt, %236, %237 : vector<32x1xf32>
      %239 = arith.select %238, %230, %226 : vector<32x1xi1>, vector<32x1xf32>
      %240 = arith.select %238, %227, %230 : vector<32x1xi1>, vector<32x1xf32>
      %c9_i32 = arith.constant 9 : i32
      %241 = arith.addf %239, %240 : vector<32x1xf32>
      %cst_138 = arith.constant 5.000000e-01 : f32
      %242 = vector.broadcast %cst_138 : f32 to vector<32x1xf32>
      %243 = arith.mulf %242, %241 : vector<32x1xf32>
      %244 = vector.broadcast %243 : vector<32x1xf32> to vector<32x128xf32>
      %245 = arith.subf %119, %244 : vector<32x128xf32>
      %cst_139 = arith.constant 0.000000e+00 : f32
      %246 = vector.broadcast %cst_139 : f32 to vector<32x128xf32>
      %247 = arith.maximumf %245, %246 : vector<32x128xf32>
      %cst_140 = arith.constant dense<0.000000e+00> : vector<32xf32>
      %248 = vector.multi_reduction <add>, %247, %cst_140 [1] : vector<32x128xf32> to vector<32xf32>
      %249 = vector.shape_cast %248 : vector<32xf32> to vector<32x1xf32>
      %cst_141 = arith.constant 1.000000e+00 : f32
      %250 = vector.broadcast %cst_141 : f32 to vector<32x1xf32>
      %251 = arith.cmpf ogt, %249, %250 : vector<32x1xf32>
      %252 = arith.select %251, %243, %239 : vector<32x1xi1>, vector<32x1xf32>
      %253 = arith.select %251, %240, %243 : vector<32x1xi1>, vector<32x1xf32>
      %c10_i32 = arith.constant 10 : i32
      %254 = arith.addf %252, %253 : vector<32x1xf32>
      %cst_142 = arith.constant 5.000000e-01 : f32
      %255 = vector.broadcast %cst_142 : f32 to vector<32x1xf32>
      %256 = arith.mulf %255, %254 : vector<32x1xf32>
      %257 = vector.broadcast %256 : vector<32x1xf32> to vector<32x128xf32>
      %258 = arith.subf %119, %257 : vector<32x128xf32>
      %cst_143 = arith.constant 0.000000e+00 : f32
      %259 = vector.broadcast %cst_143 : f32 to vector<32x128xf32>
      %260 = arith.maximumf %258, %259 : vector<32x128xf32>
      %cst_144 = arith.constant dense<0.000000e+00> : vector<32xf32>
      %261 = vector.multi_reduction <add>, %260, %cst_144 [1] : vector<32x128xf32> to vector<32xf32>
      %262 = vector.shape_cast %261 : vector<32xf32> to vector<32x1xf32>
      %cst_145 = arith.constant 1.000000e+00 : f32
      %263 = vector.broadcast %cst_145 : f32 to vector<32x1xf32>
      %264 = arith.cmpf ogt, %262, %263 : vector<32x1xf32>
      %265 = arith.select %264, %256, %252 : vector<32x1xi1>, vector<32x1xf32>
      %266 = arith.select %264, %253, %256 : vector<32x1xi1>, vector<32x1xf32>
      %c11_i32 = arith.constant 11 : i32
      %267 = arith.addf %265, %266 : vector<32x1xf32>
      %cst_146 = arith.constant 5.000000e-01 : f32
      %268 = vector.broadcast %cst_146 : f32 to vector<32x1xf32>
      %269 = arith.mulf %268, %267 : vector<32x1xf32>
      %270 = vector.broadcast %269 : vector<32x1xf32> to vector<32x128xf32>
      %271 = arith.subf %119, %270 : vector<32x128xf32>
      %cst_147 = arith.constant 0.000000e+00 : f32
      %272 = vector.broadcast %cst_147 : f32 to vector<32x128xf32>
      %273 = arith.maximumf %271, %272 : vector<32x128xf32>
      %cst_148 = arith.constant dense<0.000000e+00> : vector<32xf32>
      %274 = vector.multi_reduction <add>, %273, %cst_148 [1] : vector<32x128xf32> to vector<32xf32>
      %275 = vector.shape_cast %274 : vector<32xf32> to vector<32x1xf32>
      %cst_149 = arith.constant 1.000000e+00 : f32
      %276 = vector.broadcast %cst_149 : f32 to vector<32x1xf32>
      %277 = arith.cmpf ogt, %275, %276 : vector<32x1xf32>
      %278 = arith.select %277, %269, %265 : vector<32x1xi1>, vector<32x1xf32>
      %279 = arith.select %277, %266, %269 : vector<32x1xi1>, vector<32x1xf32>
      %c12_i32 = arith.constant 12 : i32
      %280 = arith.addf %278, %279 : vector<32x1xf32>
      %cst_150 = arith.constant 5.000000e-01 : f32
      %281 = vector.broadcast %cst_150 : f32 to vector<32x1xf32>
      %282 = arith.mulf %281, %280 : vector<32x1xf32>
      %283 = vector.broadcast %282 : vector<32x1xf32> to vector<32x128xf32>
      %284 = arith.subf %119, %283 : vector<32x128xf32>
      %cst_151 = arith.constant 0.000000e+00 : f32
      %285 = vector.broadcast %cst_151 : f32 to vector<32x128xf32>
      %286 = arith.maximumf %284, %285 : vector<32x128xf32>
      %cst_152 = arith.constant dense<0.000000e+00> : vector<32xf32>
      %287 = vector.multi_reduction <add>, %286, %cst_152 [1] : vector<32x128xf32> to vector<32xf32>
      %288 = vector.shape_cast %287 : vector<32xf32> to vector<32x1xf32>
      %cst_153 = arith.constant 1.000000e+00 : f32
      %289 = vector.broadcast %cst_153 : f32 to vector<32x1xf32>
      %290 = arith.cmpf ogt, %288, %289 : vector<32x1xf32>
      %291 = arith.select %290, %282, %278 : vector<32x1xi1>, vector<32x1xf32>
      %292 = arith.select %290, %279, %282 : vector<32x1xi1>, vector<32x1xf32>
      %c13_i32 = arith.constant 13 : i32
      %293 = arith.addf %291, %292 : vector<32x1xf32>
      %cst_154 = arith.constant 5.000000e-01 : f32
      %294 = vector.broadcast %cst_154 : f32 to vector<32x1xf32>
      %295 = arith.mulf %294, %293 : vector<32x1xf32>
      %296 = vector.broadcast %295 : vector<32x1xf32> to vector<32x128xf32>
      %297 = arith.subf %119, %296 : vector<32x128xf32>
      %cst_155 = arith.constant 0.000000e+00 : f32
      %298 = vector.broadcast %cst_155 : f32 to vector<32x128xf32>
      %299 = arith.maximumf %297, %298 : vector<32x128xf32>
      %cst_156 = arith.constant dense<0.000000e+00> : vector<32xf32>
      %300 = vector.multi_reduction <add>, %299, %cst_156 [1] : vector<32x128xf32> to vector<32xf32>
      %301 = vector.shape_cast %300 : vector<32xf32> to vector<32x1xf32>
      %cst_157 = arith.constant 1.000000e+00 : f32
      %302 = vector.broadcast %cst_157 : f32 to vector<32x1xf32>
      %303 = arith.cmpf ogt, %301, %302 : vector<32x1xf32>
      %304 = arith.select %303, %295, %291 : vector<32x1xi1>, vector<32x1xf32>
      %305 = arith.select %303, %292, %295 : vector<32x1xi1>, vector<32x1xf32>
      %c14_i32 = arith.constant 14 : i32
      %306 = arith.addf %304, %305 : vector<32x1xf32>
      %cst_158 = arith.constant 5.000000e-01 : f32
      %307 = vector.broadcast %cst_158 : f32 to vector<32x1xf32>
      %308 = arith.mulf %307, %306 : vector<32x1xf32>
      %309 = vector.broadcast %308 : vector<32x1xf32> to vector<32x128xf32>
      %310 = arith.subf %119, %309 : vector<32x128xf32>
      %cst_159 = arith.constant 0.000000e+00 : f32
      %311 = vector.broadcast %cst_159 : f32 to vector<32x128xf32>
      %312 = arith.maximumf %310, %311 : vector<32x128xf32>
      %cst_160 = arith.constant dense<0.000000e+00> : vector<32xf32>
      %313 = vector.multi_reduction <add>, %312, %cst_160 [1] : vector<32x128xf32> to vector<32xf32>
      %314 = vector.shape_cast %313 : vector<32xf32> to vector<32x1xf32>
      %cst_161 = arith.constant 1.000000e+00 : f32
      %315 = vector.broadcast %cst_161 : f32 to vector<32x1xf32>
      %316 = arith.cmpf ogt, %314, %315 : vector<32x1xf32>
      %317 = arith.select %316, %308, %304 : vector<32x1xi1>, vector<32x1xf32>
      %318 = arith.select %316, %305, %308 : vector<32x1xi1>, vector<32x1xf32>
      %c15_i32 = arith.constant 15 : i32
      %319 = arith.addf %317, %318 : vector<32x1xf32>
      %cst_162 = arith.constant 5.000000e-01 : f32
      %320 = vector.broadcast %cst_162 : f32 to vector<32x1xf32>
      %321 = arith.mulf %320, %319 : vector<32x1xf32>
      %322 = vector.broadcast %321 : vector<32x1xf32> to vector<32x128xf32>
      %323 = arith.subf %119, %322 : vector<32x128xf32>
      %cst_163 = arith.constant 0.000000e+00 : f32
      %324 = vector.broadcast %cst_163 : f32 to vector<32x128xf32>
      %325 = arith.maximumf %323, %324 : vector<32x128xf32>
      %cst_164 = arith.constant dense<0.000000e+00> : vector<32xf32>
      %326 = vector.multi_reduction <add>, %325, %cst_164 [1] : vector<32x128xf32> to vector<32xf32>
      %327 = vector.shape_cast %326 : vector<32xf32> to vector<32x1xf32>
      %cst_165 = arith.constant 1.000000e+00 : f32
      %328 = vector.broadcast %cst_165 : f32 to vector<32x1xf32>
      %329 = arith.cmpf ogt, %327, %328 : vector<32x1xf32>
      %330 = arith.select %329, %321, %317 : vector<32x1xi1>, vector<32x1xf32>
      %331 = arith.select %329, %318, %321 : vector<32x1xi1>, vector<32x1xf32>
      %c16_i32 = arith.constant 16 : i32
      %332 = arith.addf %330, %331 : vector<32x1xf32>
      %cst_166 = arith.constant 5.000000e-01 : f32
      %333 = vector.broadcast %cst_166 : f32 to vector<32x1xf32>
      %334 = arith.mulf %333, %332 : vector<32x1xf32>
      %335 = vector.broadcast %334 : vector<32x1xf32> to vector<32x128xf32>
      %336 = arith.subf %119, %335 : vector<32x128xf32>
      %cst_167 = arith.constant 0.000000e+00 : f32
      %337 = vector.broadcast %cst_167 : f32 to vector<32x128xf32>
      %338 = arith.maximumf %336, %337 : vector<32x128xf32>
      %cst_168 = arith.constant dense<0.000000e+00> : vector<32xf32>
      %339 = vector.multi_reduction <add>, %338, %cst_168 [1] : vector<32x128xf32> to vector<32xf32>
      %340 = vector.shape_cast %339 : vector<32xf32> to vector<32x1xf32>
      %cst_169 = arith.constant 1.000000e+00 : f32
      %341 = vector.broadcast %cst_169 : f32 to vector<32x1xf32>
      %342 = arith.cmpf ogt, %340, %341 : vector<32x1xf32>
      %343 = arith.select %342, %334, %330 : vector<32x1xi1>, vector<32x1xf32>
      %344 = arith.select %342, %331, %334 : vector<32x1xi1>, vector<32x1xf32>
      %c17_i32 = arith.constant 17 : i32
      %345 = arith.addf %343, %344 : vector<32x1xf32>
      %cst_170 = arith.constant 5.000000e-01 : f32
      %346 = vector.broadcast %cst_170 : f32 to vector<32x1xf32>
      %347 = arith.mulf %346, %345 : vector<32x1xf32>
      %348 = vector.broadcast %347 : vector<32x1xf32> to vector<32x128xf32>
      %349 = arith.subf %119, %348 : vector<32x128xf32>
      %cst_171 = arith.constant 0.000000e+00 : f32
      %350 = vector.broadcast %cst_171 : f32 to vector<32x128xf32>
      %351 = arith.maximumf %349, %350 : vector<32x128xf32>
      %cst_172 = arith.constant dense<0.000000e+00> : vector<32xf32>
      %352 = vector.multi_reduction <add>, %351, %cst_172 [1] : vector<32x128xf32> to vector<32xf32>
      %353 = vector.shape_cast %352 : vector<32xf32> to vector<32x1xf32>
      %cst_173 = arith.constant 1.000000e+00 : f32
      %354 = vector.broadcast %cst_173 : f32 to vector<32x1xf32>
      %355 = arith.cmpf ogt, %353, %354 : vector<32x1xf32>
      %356 = arith.select %355, %347, %343 : vector<32x1xi1>, vector<32x1xf32>
      %357 = arith.select %355, %344, %347 : vector<32x1xi1>, vector<32x1xf32>
      %c18_i32 = arith.constant 18 : i32
      %358 = arith.addf %356, %357 : vector<32x1xf32>
      %cst_174 = arith.constant 5.000000e-01 : f32
      %359 = vector.broadcast %cst_174 : f32 to vector<32x1xf32>
      %360 = arith.mulf %359, %358 : vector<32x1xf32>
      %361 = vector.broadcast %360 : vector<32x1xf32> to vector<32x128xf32>
      %362 = arith.subf %119, %361 : vector<32x128xf32>
      %cst_175 = arith.constant 0.000000e+00 : f32
      %363 = vector.broadcast %cst_175 : f32 to vector<32x128xf32>
      %364 = arith.maximumf %362, %363 : vector<32x128xf32>
      %cst_176 = arith.constant dense<0.000000e+00> : vector<32xf32>
      %365 = vector.multi_reduction <add>, %364, %cst_176 [1] : vector<32x128xf32> to vector<32xf32>
      %366 = vector.shape_cast %365 : vector<32xf32> to vector<32x1xf32>
      %cst_177 = arith.constant 1.000000e+00 : f32
      %367 = vector.broadcast %cst_177 : f32 to vector<32x1xf32>
      %368 = arith.cmpf ogt, %366, %367 : vector<32x1xf32>
      %369 = arith.select %368, %360, %356 : vector<32x1xi1>, vector<32x1xf32>
      %370 = arith.select %368, %357, %360 : vector<32x1xi1>, vector<32x1xf32>
      %c19_i32 = arith.constant 19 : i32
      %371 = arith.addf %369, %370 : vector<32x1xf32>
      %cst_178 = arith.constant 5.000000e-01 : f32
      %372 = vector.broadcast %cst_178 : f32 to vector<32x1xf32>
      %373 = arith.mulf %372, %371 : vector<32x1xf32>
      %374 = vector.broadcast %373 : vector<32x1xf32> to vector<32x128xf32>
      %375 = arith.subf %119, %374 : vector<32x128xf32>
      %cst_179 = arith.constant 0.000000e+00 : f32
      %376 = vector.broadcast %cst_179 : f32 to vector<32x128xf32>
      %377 = arith.maximumf %375, %376 : vector<32x128xf32>
      %cst_180 = arith.constant dense<0.000000e+00> : vector<32xf32>
      %378 = vector.multi_reduction <add>, %377, %cst_180 [1] : vector<32x128xf32> to vector<32xf32>
      %379 = vector.shape_cast %378 : vector<32xf32> to vector<32x1xf32>
      %cst_181 = arith.constant 1.000000e+00 : f32
      %380 = vector.broadcast %cst_181 : f32 to vector<32x1xf32>
      %381 = arith.cmpf ogt, %379, %380 : vector<32x1xf32>
      %382 = arith.select %381, %373, %369 : vector<32x1xi1>, vector<32x1xf32>
      %383 = arith.select %381, %370, %373 : vector<32x1xi1>, vector<32x1xf32>
      %c20_i32 = arith.constant 20 : i32
      %384 = arith.addf %382, %383 : vector<32x1xf32>
      %cst_182 = arith.constant 5.000000e-01 : f32
      %385 = vector.broadcast %cst_182 : f32 to vector<32x1xf32>
      %386 = arith.mulf %385, %384 : vector<32x1xf32>
      %387 = vector.broadcast %386 : vector<32x1xf32> to vector<32x128xf32>
      %388 = arith.subf %119, %387 : vector<32x128xf32>
      %cst_183 = arith.constant 0.000000e+00 : f32
      %389 = vector.broadcast %cst_183 : f32 to vector<32x128xf32>
      %390 = arith.maximumf %388, %389 : vector<32x128xf32>
      %cst_184 = arith.constant dense<0.000000e+00> : vector<32xf32>
      %391 = vector.multi_reduction <add>, %390, %cst_184 [1] : vector<32x128xf32> to vector<32xf32>
      %392 = vector.shape_cast %391 : vector<32xf32> to vector<32x1xf32>
      %cst_185 = arith.constant 1.000000e+00 : f32
      %393 = vector.broadcast %cst_185 : f32 to vector<32x1xf32>
      %394 = arith.cmpf ogt, %392, %393 : vector<32x1xf32>
      %395 = arith.select %394, %386, %382 : vector<32x1xi1>, vector<32x1xf32>
      %396 = arith.select %394, %383, %386 : vector<32x1xi1>, vector<32x1xf32>
      %c21_i32 = arith.constant 21 : i32
      %397 = arith.addf %395, %396 : vector<32x1xf32>
      %cst_186 = arith.constant 5.000000e-01 : f32
      %398 = vector.broadcast %cst_186 : f32 to vector<32x1xf32>
      %399 = arith.mulf %398, %397 : vector<32x1xf32>
      %400 = vector.broadcast %399 : vector<32x1xf32> to vector<32x128xf32>
      %401 = arith.subf %119, %400 : vector<32x128xf32>
      %cst_187 = arith.constant 0.000000e+00 : f32
      %402 = vector.broadcast %cst_187 : f32 to vector<32x128xf32>
      %403 = arith.maximumf %401, %402 : vector<32x128xf32>
      %cst_188 = arith.constant dense<0.000000e+00> : vector<32xf32>
      %404 = vector.multi_reduction <add>, %403, %cst_188 [1] : vector<32x128xf32> to vector<32xf32>
      %405 = vector.shape_cast %404 : vector<32xf32> to vector<32x1xf32>
      %cst_189 = arith.constant 1.000000e+00 : f32
      %406 = vector.broadcast %cst_189 : f32 to vector<32x1xf32>
      %407 = arith.cmpf ogt, %405, %406 : vector<32x1xf32>
      %408 = arith.select %407, %399, %395 : vector<32x1xi1>, vector<32x1xf32>
      %409 = arith.select %407, %396, %399 : vector<32x1xi1>, vector<32x1xf32>
      %c22_i32 = arith.constant 22 : i32
      %410 = arith.addf %408, %409 : vector<32x1xf32>
      %cst_190 = arith.constant 5.000000e-01 : f32
      %411 = vector.broadcast %cst_190 : f32 to vector<32x1xf32>
      %412 = arith.mulf %411, %410 : vector<32x1xf32>
      %413 = vector.broadcast %412 : vector<32x1xf32> to vector<32x128xf32>
      %414 = arith.subf %119, %413 : vector<32x128xf32>
      %cst_191 = arith.constant 0.000000e+00 : f32
      %415 = vector.broadcast %cst_191 : f32 to vector<32x128xf32>
      %416 = arith.maximumf %414, %415 : vector<32x128xf32>
      %cst_192 = arith.constant dense<0.000000e+00> : vector<32xf32>
      %417 = vector.multi_reduction <add>, %416, %cst_192 [1] : vector<32x128xf32> to vector<32xf32>
      %418 = vector.shape_cast %417 : vector<32xf32> to vector<32x1xf32>
      %cst_193 = arith.constant 1.000000e+00 : f32
      %419 = vector.broadcast %cst_193 : f32 to vector<32x1xf32>
      %420 = arith.cmpf ogt, %418, %419 : vector<32x1xf32>
      %421 = arith.select %420, %412, %408 : vector<32x1xi1>, vector<32x1xf32>
      %422 = arith.select %420, %409, %412 : vector<32x1xi1>, vector<32x1xf32>
      %c23_i32 = arith.constant 23 : i32
      %423 = arith.addf %421, %422 : vector<32x1xf32>
      %cst_194 = arith.constant 5.000000e-01 : f32
      %424 = vector.broadcast %cst_194 : f32 to vector<32x1xf32>
      %425 = arith.mulf %424, %423 : vector<32x1xf32>
      %426 = vector.broadcast %425 : vector<32x1xf32> to vector<32x128xf32>
      %427 = arith.subf %119, %426 : vector<32x128xf32>
      %cst_195 = arith.constant 0.000000e+00 : f32
      %428 = vector.broadcast %cst_195 : f32 to vector<32x128xf32>
      %429 = arith.maximumf %427, %428 : vector<32x128xf32>
      %cst_196 = arith.constant dense<0.000000e+00> : vector<32xf32>
      %430 = vector.multi_reduction <add>, %429, %cst_196 [1] : vector<32x128xf32> to vector<32xf32>
      %431 = vector.shape_cast %430 : vector<32xf32> to vector<32x1xf32>
      %cst_197 = arith.constant 1.000000e+00 : f32
      %432 = vector.broadcast %cst_197 : f32 to vector<32x1xf32>
      %433 = arith.cmpf ogt, %431, %432 : vector<32x1xf32>
      %434 = arith.select %433, %425, %421 : vector<32x1xi1>, vector<32x1xf32>
      %435 = arith.select %433, %422, %425 : vector<32x1xi1>, vector<32x1xf32>
      %436 = arith.addf %434, %435 : vector<32x1xf32>
      %cst_198 = arith.constant 5.000000e-01 : f32
      %437 = vector.broadcast %cst_198 : f32 to vector<32x1xf32>
      %438 = arith.mulf %437, %436 : vector<32x1xf32>
      %439 = vector.broadcast %438 : vector<32x1xf32> to vector<32x128xf32>
      %440 = arith.cmpf ogt, %119, %439 : vector<32x128xf32>
      %441 = arith.extui %440 : vector<32x128xi1> to vector<32x128xi32>
      %442 = arith.sitofp %441 : vector<32x128xi32> to vector<32x128xf32>
      %cst_199 = arith.constant dense<0.000000e+00> : vector<32xf32>
      %443 = vector.multi_reduction <add>, %442, %cst_199 [1] : vector<32x128xf32> to vector<32xf32>
      %444 = vector.shape_cast %443 : vector<32xf32> to vector<32x1xf32>
      %445 = arith.mulf %442, %119 : vector<32x128xf32>
      %cst_200 = arith.constant dense<0.000000e+00> : vector<32xf32>
      %446 = vector.multi_reduction <add>, %445, %cst_200 [1] : vector<32x128xf32> to vector<32xf32>
      %447 = vector.shape_cast %446 : vector<32xf32> to vector<32x1xf32>
      %cst_201 = arith.constant 1.000000e+00 : f32
      %448 = vector.broadcast %cst_201 : f32 to vector<32x1xf32>
      %449 = arith.subf %447, %448 : vector<32x1xf32>
      %cst_202 = arith.constant 1.000000e+00 : f32
      %450 = vector.broadcast %cst_202 : f32 to vector<32x1xf32>
      %451 = arith.maximumf %444, %450 : vector<32x1xf32>
      %452 = arith.divf %449, %451 : vector<32x1xf32>
      %453 = vector.broadcast %452 : vector<32x1xf32> to vector<32x128xf32>
      %454 = arith.subf %119, %453 : vector<32x128xf32>
      %cst_203 = arith.constant 0.000000e+00 : f32
      %455 = vector.broadcast %cst_203 : f32 to vector<32x128xf32>
      %456 = arith.maximumf %454, %455 : vector<32x128xf32>
      %457 = vector.shape_cast %456 : vector<32x128xf32> to vector<4x8x128xf32>
      %458 = vector.extract_strided_slice %457 {offsets = [0, 0, 0], sizes = [1, 8, 128], strides = [1, 1, 1]} : vector<4x8x128xf32> to vector<1x8x128xf32>
      %459 = vector.shape_cast %458 : vector<1x8x128xf32> to vector<8x128xf32>
      %460 = vector.extract_strided_slice %457 {offsets = [1, 0, 0], sizes = [1, 8, 128], strides = [1, 1, 1]} : vector<4x8x128xf32> to vector<1x8x128xf32>
      %461 = vector.shape_cast %460 : vector<1x8x128xf32> to vector<8x128xf32>
      %462 = arith.addf %459, %461 : vector<8x128xf32>
      %463 = vector.extract_strided_slice %457 {offsets = [2, 0, 0], sizes = [1, 8, 128], strides = [1, 1, 1]} : vector<4x8x128xf32> to vector<1x8x128xf32>
      %464 = vector.shape_cast %463 : vector<1x8x128xf32> to vector<8x128xf32>
      %465 = arith.addf %462, %464 : vector<8x128xf32>
      %466 = vector.extract_strided_slice %457 {offsets = [3, 0, 0], sizes = [1, 8, 128], strides = [1, 1, 1]} : vector<4x8x128xf32> to vector<1x8x128xf32>
      %467 = vector.shape_cast %466 : vector<1x8x128xf32> to vector<8x128xf32>
      %468 = arith.addf %465, %467 : vector<8x128xf32>
      %cst_204 = arith.constant 2.500000e-01 : f32
      %469 = vector.broadcast %cst_204 : f32 to vector<8x128xf32>
      %470 = arith.mulf %468, %469 : vector<8x128xf32>
      %c0_205 = arith.constant 0 : index
      %c0_206 = arith.constant 0 : index
      %471 = vector.load %arg1[%c0_205, %c0_206] : memref<8x128xf32, #tpu.memory_space<vmem>>, vector<8x128xf32>
      %472 = arith.addf %470, %471 : vector<8x128xf32>
      %c0_207 = arith.constant 0 : index
      %c0_208 = arith.constant 0 : index
      %473 = vector.load %arg8[%c0_207, %c0_208] : memref<8x128xf32, #tpu.memory_space<vmem>>, vector<8x128xf32>
      tpu.vector_store %arg8[%c0_207, %c0_208], %472 {strides = array<i32>} : memref<8x128xf32, #tpu.memory_space<vmem>>, vector<8x128xf32>,
    } else {
    }
    return
  }
  func.func @transform_0(%arg0: i32) -> (i32, i32) {
    %c0_i32 = arith.constant 0 : i32
    %c0_i32_0 = arith.constant 0 : i32
    %c0_i32_1 = arith.constant 0 : i32
    return %c0_i32, %c0_i32_0 : i32, i32
  }
  func.func @transform_1(%arg0: i32) -> (i32, i32, i32) {
    %c0_i32 = arith.constant 0 : i32
    %c0_i32_0 = arith.constant 0 : i32
    %c0_i32_1 = arith.constant 0 : i32
    return %arg0, %c0_i32, %c0_i32_0 : i32, i32, i32
  }
  func.func @transform_2(%arg0: i32) -> (i32, i32, i32) {
    %c0_i32 = arith.constant 0 : i32
    %c0_i32_0 = arith.constant 0 : i32
    %c0_i32_1 = arith.constant 0 : i32
    return %arg0, %c0_i32, %c0_i32_0 : i32, i32, i32
  }
  func.func @transform_3(%arg0: i32) -> (i32, i32, i32, i32) {
    %c0_i32 = arith.constant 0 : i32
    %c0_i32_0 = arith.constant 0 : i32
    %c0_i32_1 = arith.constant 0 : i32
    %c0_i32_2 = arith.constant 0 : i32
    return %arg0, %c0_i32, %c0_i32_0, %c0_i32_1 : i32, i32, i32, i32
  }
  func.func @transform_4(%arg0: i32) -> (i32, i32, i32) {
    %c0_i32 = arith.constant 0 : i32
    %c0_i32_0 = arith.constant 0 : i32
    %c0_i32_1 = arith.constant 0 : i32
    return %arg0, %c0_i32, %c0_i32_0 : i32, i32, i32
  }
  func.func @transform_5(%arg0: i32) -> (i32, i32, i32) {
    %c0_i32 = arith.constant 0 : i32
    %c0_i32_0 = arith.constant 0 : i32
    %c0_i32_1 = arith.constant 0 : i32
    return %arg0, %c0_i32, %c0_i32_0 : i32, i32, i32
  }
  func.func @transform_6(%arg0: i32) -> (i32, i32, i32, i32) {
    %c0_i32 = arith.constant 0 : i32
    %c0_i32_0 = arith.constant 0 : i32
    %c0_i32_1 = arith.constant 0 : i32
    %c0_i32_2 = arith.constant 0 : i32
    return %arg0, %c0_i32, %c0_i32_0, %c0_i32_1 : i32, i32, i32, i32
  }
  func.func @transform_7(%arg0: i32) -> (i32, i32) {
    %c0_i32 = arith.constant 0 : i32
    %c0_i32_0 = arith.constant 0 : i32
    %c0_i32_1 = arith.constant 0 : i32
    return %c0_i32, %c0_i32_0 : i32, i32
  }
}

</mosaic_0001>

<bundles_post_ra>
// kernel: tpu_custom_call.1
= control target key start
LH: loop header
LB: loop body
LE: loop exit
PB: predicated region body
PF: predicated region fallthrough
CT: control target
= control target key end

     0   :  { %s4562_s0 = inlined_call_operand.hbm [shape: f32[8,128], index: 0, kind: input, shape index: {}]   ;;  %s4563_s1 = inlined_call_operand.hbm [shape: f32[3,128,128], index: 1, kind: input, shape index: {}]   ;;  %s4564_s2 = inlined_call_operand.hbm [shape: f32[3,128,128], index: 2, kind: input, shape index: {}]   ;;  %s4565_s3 = inlined_call_operand.hbm [shape: bf16[3,4,128,128], index: 3, kind: input, shape index: {}]   ;;  %s4566_s4 = inlined_call_operand.vmem [shape: f32[3,1,128], index: 4, kind: input, shape index: {}]   ;;  %s4567_s5 = inlined_call_operand.vmem [shape: f32[3,1,128], index: 5, kind: input, shape index: {}]   ;;  %s4568_s6 = inlined_call_operand.vmem [shape: f32[3,4,1,128], index: 6, kind: input, shape index: {}]   ;;  %s4569_s7 = inlined_call_operand.hbm [shape: f32[8,128], index: 7, kind: output, shape index: {}]  }
   0x1   :  { %4584 = sst [smem:[#allocation18_spill]] %s4563_s1 }
   0x2   :  { %4585 = sst [smem:[#allocation19_spill]] %s4564_s2 }
   0x3   :  { %12 = vsyncpa [#allocation4], 0 }
   0x4   :  { %13 = vsyncpa [#allocation7], 0 }
   0x5   :  { %15 = vsyncpa [#allocation7 + $0x1], 0 }
   0x6   :  { %16 = vsyncpa [#allocation10], 0 }
   0x7   :  { %18 = vsyncpa [#allocation10 + $0x1], 0 }
   0x8   :  { %19 = vsyncpa [#allocation5], 0  ;;  %s3419_s24 = smov 0   ;;  %s3421_s25 = smov 0  }
   0x9   :  { %s3423_s26 = smov 0   ;;  %s3425_s27 = smov 0  }
   0xa LB: > { %4586 = sst [smem:[#allocation16_spill]] %s3360_s26  ;;  %s3440_s28 = sadd.s32 1, %s3364_s27   ;;  %s3364_s27 = sphi %s3425_s27, %s4684_s27   ;;  %s3360_s26 = sphi %s3423_s26, %s4681_s26   ;;  %s3356_s25 = sphi %s3421_s25, %s4683_s25   ;;  %s3352_s24 = sphi %s3419_s24, %s4682_s24  }
   0xb   : > { %s53_s29 = sadd.s32 1, %s3360_s26  ;;  %s50_s30 = ssub.s32 %s3364_s27, %s3440_s28 }
   0xc   : > { %p60_p0 = scmp.ne.s32.totalorder %s3360_s26, %s3356_s25  ;;  %p51_p1 = scmp.eq.s32.totalorder %s50_s30, 0 }
   0xd   : > { %p61_p2 = scmp.eq.s32.totalorder %s3364_s27, 0  ;;  %p3048_p3 = scmp.lt.s32.totalorder %s3364_s27, 3 }
   0xe   : > { %s3450_s8 = scalar_select %p51_p1, %s3360_s26, %s53_s29  }
   0xf   : > { %p62_p4 = por %p61_p2, %p60_p0  ;;  %s252_s9 = sand.u32 1, %s3364_s27  }
  0x10   : > { %4587 = sst [smem:[#allocation17_spill]] %s3450_s8  ;;  %s3454_s10 = sand.u32 1, %s3360_s26  }
  0x11   : > { %s2469_s11 = sshll.u32 %s3454_s10, 7  ;;  %s2553_s12 = sshll.u32 %s3364_s27, 11 }
  0x12   : > { %s4588_s1 = sld [smem:[#allocation18_spill]]  ;;  %s256_s16 = scalar_lea.vmem [#allocation6], %s2469_s11 }
  0x13   : > { %s263_s17 = sshll.u32 %s256_s16, 4  ;;  %p3467_p5 = pnand %p3048_p3, %p62_p4  ;;  %s3471_s17 = int_to_ptr.vmem [resolvable:$true] %s263_s17 }
  0x14   : > { %s3473_s19 = scalar_lea.sflag [#allocation7], %s252_s9 }
  0x15   : > { %s4589_s18 = scalar_select %p3467_p5, 1, 0 }
  0x16   : > { %p3479_p7 = pneg %p3467_p5 }
  0x18   : > { %s3463_s15 = scalar_lea.hbm %s4588_s1, %s2553_s12  ;;  %s3179_s29 = scalar_lea.hbm %s4588_s1, 6144 }
  0x19   : > { %s3174_s20 = scalar_lea.hbm %s3463_s15, 2048  ;;  %p3180_p10 = scmp.lt.u32.totalorder %s3463_s15, %s4588_s1 }
  0x1a   : > { %p3175_p6 = scmp.ne.s32.totalorder %s3463_s15, %s3174_s20  ;;  %p3181_p11 = scmp.lt.u32.totalorder %s3179_s29, %s3174_s20 }
  0x1b   : > { %s4590_s21 = scalar_select %p3479_p7, 1, 0 }
  0x1c   : > { %p3177_p8 = pnand %p3479_p7, %p3175_p6  ;;  %p3182_p12 = por %p3181_p11, %p3180_p10 }
  0x1d   : > { %p3183_p13 = scmp.lt.u32.totalorder %s3174_s20, %s3463_s15 }
  0x1e   : > { %p3178_p9 = pneg %p3177_p8 }
  0x1f   : > { %p3184_p0 = por %p3183_p13, %p3182_p12 }
  0x21   : > { %p3185_p1 = pnand %p3184_p0, %p3178_p9 }
  0x23   : > { %3188 = shalt.err (!%p3185_p1)
}
  0x24   : > { %s3189_s9 = scalar_lea.vmem %s3471_s17, 2048  ;;  %s3366_s14 = smov [#allocation6]  }
  0x25   : > { %p3190_p2 = scmp.ne.s32.totalorder %s3471_s17, %s3189_s9  ;;  %s3194_s16 = sshll.u32 %s3366_s14, 4  ;;  %s3195_s16 = int_to_ptr.vmem [resolvable:$false] %s3194_s16 }
  0x26   : > { %s3196_s22 = scalar_lea.vmem %s3195_s16, 4096  ;;  %p3197_p6 = scmp.lt.s32.totalorder %s3471_s17, %s3195_s16 }
  0x27   : > { %p3192_p3 = pnand %p3190_p2, %p3479_p7  ;;  %p3198_p8 = scmp.lt.s32.totalorder %s3196_s22, %s3189_s9 }
  0x29   : > { %p3193_p4 = pneg %p3192_p3  ;;  %p3199_p10 = por %p3198_p8, %p3197_p6 }
  0x2b   : > { %p3200_p11 = pnand %p3199_p10, %p3193_p4 }
  0x2d   : > { %3203 = shalt.err (!%p3200_p11)
}
  0x2e   : > { %s4570_s20 = smov 128   ;;  %s4571_s23 = smov 8  }
  0x2f   : > { %3040 = dma.hbm_to_vmem [thread:$0]  (!%p3467_p5), %s3463_s15, 2048, %s3471_s17, %s3473_s19, %s4570_s20, %s4570_s20, %s4571_s23  }
  0x30   : > { %s4591_s2 = sld [smem:[#allocation19_spill]]  ;;  %s277_s9 = scalar_lea.vmem [#allocation8], %s2469_s11 }
  0x31   : > { %s284_s14 = sshll.u32 %s277_s9, 4  ;;  %s3518_s16 = sadd.s32 4294967295, %s3364_s27   ;;  %s3515_s14 = int_to_ptr.vmem [resolvable:$true] %s284_s14 }
  0x32   : > { %p66_p9 = scmp.ne.s32.totalorder %s3356_s25, %s3352_s24  ;;  %p4572_p12 = scmp.eq.s32.totalorder %s3518_s16, 0 }
  0x33   : > { %p2466_p13 = scmp.ge.s32.totalorder %s3364_s27, 1  ;;  %p228_p0 = scmp.lt.s32.totalorder %s3364_s27, 4 }
  0x34   : > { %p3528_p2 = por %p4572_p12, %p66_p9  ;;  %s3369_s15 = smov [#allocation3]  }
  0x35   : > { %p3532_p3 = pnand %p2466_p13, %p228_p0  ;;  %s241_s17 = sshll.u32 %s3369_s15, 4  ;;  %s3536_s17 = int_to_ptr.vmem [resolvable:$true] %s241_s17 }
  0x36   : > { %s3511_s13 = scalar_lea.hbm %s4591_s2, %s2553_s12  ;;  %s2475_s24 = sshll.u32 %s3454_s10, 8 }
  0x37   : > { %s4592_s11 = scalar_select %p3528_p2, 1, 0 }
  0x38   : > { %s4593_s12 = scalar_select %p3532_p3, 1, 0 }
  0x39   : > { %s3204_s22 = scalar_lea.hbm %s3511_s13, 2048  ;;  %s3209_s9 = scalar_lea.hbm %s4591_s2, 6144 }
  0x3a   : > { %p3205_p6 = scmp.ne.s32.totalorder %s3511_s13, %s3204_s22  ;;  %p3210_p11 = scmp.lt.u32.totalorder %s3511_s13, %s4591_s2 }
  0x3b   : > { %p3211_p9 = scmp.lt.u32.totalorder %s3209_s9, %s3204_s22  ;;  %p3213_p0 = scmp.lt.u32.totalorder %s3204_s22, %s3511_s13 }
  0x3c   : > { %p3207_p8 = pnand %p3205_p6, %p3479_p7 }
  0x3d   : > { %p3212_p13 = por %p3211_p9, %p3210_p11 }
  0x3e   : > { %p3208_p10 = pneg %p3207_p8 }
  0x3f   : > { %p3214_p1 = por %p3213_p0, %p3212_p13 }
  0x41   : > { %p3215_p12 = pnand %p3214_p1, %p3208_p10 }
  0x43   : > { %3218 = shalt.err (!%p3215_p12)
}
  0x44   : > { %s3219_s15 = scalar_lea.vmem %s3515_s14, 2048  ;;  %s3370_s29 = smov [#allocation8]  }
  0x45   : > { %p3220_p6 = scmp.ne.s32.totalorder %s3515_s14, %s3219_s15  ;;  %s3224_s30 = sshll.u32 %s3370_s29, 4  ;;  %s3225_s30 = int_to_ptr.vmem [resolvable:$false] %s3224_s30 }
  0x46   : > { %s3226_s20 = scalar_lea.vmem %s3225_s30, 4096  ;;  %p3227_p2 = scmp.lt.s32.totalorder %s3515_s14, %s3225_s30 }
  0x47   : > { %p3222_p8 = pnand %p3220_p6, %p3479_p7  ;;  %p3228_p3 = scmp.lt.s32.totalorder %s3226_s20, %s3219_s15 }
  0x49   : > { %p3223_p4 = pneg %p3222_p8  ;;  %p3229_p11 = por %p3228_p3, %p3227_p2 }
  0x4b   : > { %p3230_p9 = pnand %p3229_p11, %p3223_p4 }
  0x4d   : > { %3233 = shalt.err (!%p3230_p9)
}
  0x4e   : > { %s4594_s23 = smov 8   ;;  %s4595_s22 = smov 128  }
  0x4f   : > { %3043 = dma.hbm_to_vmem [thread:$0]  (!%p3467_p5), %s3511_s13, 2048, %s3515_s14, %s3473_s19, %s4595_s22, %s4595_s22, %s4594_s23  }
  0x50   : > { %p4596_p12 = scmp.eq.s32.totalorder %s3518_s16, 0  ;;  %p4597_p1 = scmp.ne.s32.totalorder %s4593_s12, 0 }
  0x51   : > { %s2555_s15 = sshll.u32 %s3364_s27, 12  ;;  %s298_s29 = scalar_lea.vmem [#allocation9], %s2475_s24 }
  0x52   : > { %p4598_p10 = pneg %p4597_p1  ;;  %s305_s30 = sshll.u32 %s298_s29, 4  ;;  %s3604_s30 = int_to_ptr.vmem [resolvable:$true] %s305_s30 }
  0x53   : > { %s3581_s2 = scalar_lea.hbm %s4565_s3, %s2555_s15  ;;  %s3234_s19 = scalar_lea.hbm %s4562_s0, 128 }
  0x54   : > { %p3571_p13 = pnand %p4598_p10, %p4596_p12  ;;  %p3235_p2 = scmp.ne.s32.totalorder %s4562_s0, %s3234_s19 }
  0x55   : > { %p3241_p6 = scmp.lt.u32.totalorder %s3234_s19, %s4562_s0 }
  0x56   : > { %p3236_p3 = pneg %p3571_p13 }
  0x58   : > { %p3237_p4 = pnand %p3236_p3, %p3235_p2 }
  0x5a   : > { %p3238_p0 = pneg %p3237_p4 }
  0x5c   : > { %p3243_p8 = pnand %p3241_p6, %p3238_p0 }
  0x5e   : > { %3246 = shalt.err (!%p3243_p8)
}
  0x5f   : > { %s3247_s1 = scalar_lea.vmem %s3536_s17, 128  ;;  %p3255_p10 = scmp.lt.s32.totalorder %s3536_s17, %s3536_s17 }
  0x60   : > { %p3248_p11 = scmp.ne.s32.totalorder %s3536_s17, %s3247_s1  ;;  %p3256_p1 = scmp.lt.s32.totalorder %s3247_s1, %s3247_s1 }
  0x62   : > { %p3250_p9 = pnand %p3248_p11, %p3236_p3  ;;  %p3257_p5 = por %p3256_p1, %p3255_p10 }
  0x64   : > { %p3251_p12 = pneg %p3250_p9 }
  0x66   : > { %p3258_p7 = pnand %p3257_p5, %p3251_p12 }
  0x68   : > { %3261 = shalt.err (!%p3258_p7)
}
  0x69   : > { %3036 = dma.hbm_to_vmem [thread:$0]  (!%p3571_p13), %s4562_s0, 128, %s3536_s17, [#allocation4]  }
  0x6a   : > { %s295_s23 = scalar_lea.sflag [#allocation10], %s3454_s10  ;;  %s3262_s22 = scalar_lea.hbm %s3581_s2, 4096 }
  0x6b   : > { %p3263_p1 = scmp.ne.s32.totalorder %s3581_s2, %s3262_s22  ;;  %p4600_p5 = scmp.ne.s32.totalorder %s4590_s21, 0 }
  0x6c   : > { %s3267_s29 = scalar_lea.hbm %s4565_s3, 12288  ;;  %p3268_p3 = scmp.lt.u32.totalorder %s3581_s2, %s4565_s3 }
  0x6d   : > { %p3265_p7 = pnand %p3263_p1, %p4600_p5  ;;  %p3269_p4 = scmp.lt.u32.totalorder %s3267_s29, %s3262_s22 }
  0x6e   : > { %p3271_p6 = scmp.lt.u32.totalorder %s3262_s22, %s3581_s2 }
  0x6f   : > { %p3266_p2 = pneg %p3265_p7  ;;  %p3270_p0 = por %p3269_p4, %p3268_p3 }
  0x71   : > { %p3272_p13 = por %p3271_p6, %p3270_p0 }
  0x73   : > { %p3273_p8 = pnand %p3272_p13, %p3266_p2 }
  0x75   : > { %3276 = shalt.err (!%p3273_p8)
}
  0x76   : > { %s3277_s17 = scalar_lea.vmem %s3604_s30, 4096  ;;  %s3371_s13 = smov [#allocation9]  }
  0x77   : > { %p3278_p11 = scmp.ne.s32.totalorder %s3604_s30, %s3277_s17  ;;  %s3282_s14 = sshll.u32 %s3371_s13, 4  ;;  %s3283_s14 = int_to_ptr.vmem [resolvable:$false] %s3282_s14 }
  0x78   : > { %s3284_s27 = scalar_lea.vmem %s3283_s14, 8192  ;;  %p3285_p10 = scmp.lt.s32.totalorder %s3604_s30, %s3283_s14 }
  0x79   : > { %p3280_p9 = pnand %p3278_p11, %p4600_p5  ;;  %p3286_p1 = scmp.lt.s32.totalorder %s3284_s27, %s3277_s17 }
  0x7b   : > { %p3281_p12 = pneg %p3280_p9  ;;  %p3287_p7 = por %p3286_p1, %p3285_p10 }
  0x7d   : > { %p3288_p3 = pnand %p3287_p7, %p3281_p12 }
  0x7f   : > { %3291 = shalt.err (!%p3288_p3)
}
  0x80   : > { %s3372_s24 = smov 64   ;;  %s3373_s1 = smov 4  }
  0x81   : > { %p4601_p2 = scmp.ne.s32.totalorder %s4589_s18, 0  ;;  %p4602_p5 = scmp.ne.s32.totalorder %s4593_s12, 0 }
  0x82   : > { %p4603_p4 = scmp.eq.s32.totalorder (!%p4602_p5), %s3518_s16, 0 }
  0x83   : > { %3046 = dma.hbm_to_vmem [thread:$0]  (!%p4601_p2), %s3581_s2, 4096, %s3604_s30, %s295_s23, %s3372_s24, %s3372_s24, %s3373_s1  }
  0x84   : > { %336 = sbr.rel (%p4602_p5) target bundleno = 4522 (0x11aa), region = 48 }
  0x8b   : > { %3335 = dma.done.wait (%p4603_p4), [#allocation4], 128   ;;  %p4604_p0 = pmov %p4603_p4 }
  0x8c   : > { %s342_s21 = sand.u32 1, %s3518_s16   ;;  %s344_s26 = sand.u32 1, %s3356_s25  }
  0x8d   : > { %3337 = vsyncadd (%p4604_p0), [#allocation4], 4294967168  ;;  %s2480_s8 = sshll.u32 %s344_s26, 7  ;;  %s343_s22 = scalar_lea.sflag [#allocation7], %s342_s21 }
  0x8e   : > { %s3638_s9 = scalar_lea.vmem [#allocation6], %s2480_s8  ;;  %p4605_p6 = scmp.ne.s32.totalorder %s4592_s11, 0 }
  0x90   : > { %3339 = dma.done.wait (%p4605_p6), %s343_s22, 4096  }
  0x91   : > { %3341 = vsyncadd (%p4605_p6), %s343_s22, 4294963200  ;;  %s2482_s2 = sshll.u32 %s344_s26, 8  ;;  %s3644_s10 = scalar_lea.vmem [#allocation8], %s2480_s8 }
  0x92   : > { %s361_s18 = scalar_lea.sflag [#allocation10], %s344_s26  ;;  %s3646_s12 = scalar_lea.vmem [#allocation9], %s2482_s2 }
  0x93   : > { %3343 = dma.done.wait (%p4605_p6), %s361_s18, 4096  }
  0x94   : > { %3345 = vsyncadd (%p4605_p6), %s361_s18, 4294963200  ;;  %p410_p13 = scmp.lt.s32.totalorder %s3518_s16, 2  ;;  %p4606_p8 = scmp.ne.s32.totalorder %s3518_s16, 0 }
  0x95   : > { %v424_v0 = vld [vmem:[#allocation3] sm:$0xff] (!%p4606_p8) }
  0x96   : > { %s3654_s30 = scalar_select %p410_p13, %s3518_s16, 2 }
  0x97   : > { %423 = sbr.rel (%p4606_p8) target bundleno = 158 (0x9e), region = 68  ;;  %425 = vst [vmem:[#allocation2] sm:$0xff] (!%p4606_p8), %v424_v0  ;;  %428 = vst [vmem:[#allocation2 + $0x8] sm:$0xff] (!%p4606_p8), %v424_v0 }
  0x98   : > { %s3660_s29 = scalar_lea.vmem %s4566_s4, %s3654_s30  ;;  %s415_s17 = scalar_lea.vmem %s4567_s5, %s3654_s30  ;;  %431 = vst [vmem:[#allocation2 + $0x10] sm:$0xff] (!%p4606_p8), %v424_v0  ;;  %434 = vst [vmem:[#allocation2 + $0x18] sm:$0xff] (!%p4606_p8), %v424_v0 }
  0x99   : > { %s2483_s13 = sshll.u32 %s3654_s30, 2 }
  0x9a   : > { %s3670_s27 = scalar_lea.vmem %s4568_s6, %s2483_s13 }
  0x9e PF: > { %v3675_v1 = vld [vmem:[%s3644_s10] sm:$0xff]  ;;  %v3678_v2 = vld [vmem:[%s3644_s10 + $0x8] sm:$0xff]  ;;  %v4582_v3 = vmov 0.0|0.0   ;;  %vm3375_vm0 = vmmov 0   ;;  %v4580_v7 = vmov 0.0   ;;  %v3695_v11 = vld [vmem:[%s3644_s10 + $0x10] sm:$0xff] }
  0x9f   : > { %2923 = vmatprep.subr.bf16.mxu0 %v4582_v3  ;;  %2947 = vmatprep.subr.bf16.mxu1 %v4582_v3  ;;  %v467_v4 = vand.u32 2147483647, %v3675_v1  ;;  %v468_v5 = vand.u32 2147483647, %v3678_v2  ;;  %v3685_v6 = vld [vmem:[%s3646_s12] sm:$0xff]   ;;  %v3698_v12 = vld [vmem:[%s3644_s10 + $0x18] sm:$0xff] }
  0xa0   : > { %2815 = vmatprep.mubr.msk.f32.mxu0 %vm3375_vm0, %v4580_v7  ;;  %2850 = vmatprep.mubr.msk.f32.mxu1 %vm3375_vm0, %v4580_v7  ;;  %v3692_v10 = vld [vmem:[%s3646_s12 + $0x40] sm:$0xff]   ;;  %v451_v13 = vmax.f32 %v3675_v1, 0.0  ;;  %v452_v14 = vmax.f32 %v3678_v2, 0.0  ;;  %v3703_v15 = vld [vmem:[%s3646_s12 + $0x8] sm:$0xff]   ;;  %v2558_v18 = vunpack.c.l.bf16 %v3685_v6  ;;  %v469_v19 = vand.u32 2147483647, %v3695_v11 }
  0xa1   : > { %v483_v8 = vsub.f32 0.0, %v467_v4  ;;  %v484_v9 = vsub.f32 0.0, %v468_v5  ;;  %v2559_v20 = vunpack.c.h.bf16 %v3685_v6  ;;  %v2590_v21 = vunpack.c.l.bf16 %v3692_v10  ;;  %v3712_v24 = vld [vmem:[%s3646_s12 + $0x48] sm:$0xff]   ;;  %v3715_v25 = vld [vmem:[%s3644_s10 + $0x20] sm:$0xff]  ;;  %v3725_v33 = vld [vmem:[%s3644_s10 + $0x30] sm:$0xff]  ;;  %p2536_p11 = scmp.ne.s32.totalorder %s3518_s16, 2 }
  0xa2   : > { %v2591_v22 = vunpack.c.h.bf16 %v3692_v10  ;;  %v470_v23 = vand.u32 2147483647, %v3698_v12  ;;  %v3718_v26 = vld [vmem:[%s3644_s10 + $0x28] sm:$0xff]  ;;  %v453_v27 = vmax.f32 %v3695_v11, 0.0  ;;  %v454_v28 = vmax.f32 %v3698_v12, 0.0  ;;  %v3731_v38 = vld [vmem:[%s3644_s10 + $0x38] sm:$0xff] }
  0xa3   : > { %v499_v16 = vmul.f32 1.442695, %v483_v8  ;;  %v501_v17 = vmul.f32 1.442695, %v484_v9  ;;  %v485_v29 = vsub.f32 0.0, %v469_v19  ;;  %v2562_v35 = vunpack.c.l.bf16 %v3703_v15  ;;  %v3735_v43 = vld [vmem:[%s3646_s12 + $0x10] sm:$0xff]  }
  0xa4   : > { %v486_v30 = vsub.f32 0.0, %v470_v23  ;;  %v471_v31 = vand.u32 2147483647, %v3715_v25  ;;  %v472_v32 = vand.u32 2147483647, %v3718_v26  ;;  %v2594_v37 = vunpack.c.l.bf16 %v3712_v24  ;;  %v3738_v44 = vld [vmem:[%s3646_s12 + $0x50] sm:$0xff]  }
  0xa5   : > { %3094 = vpow2.f32 %v499_v16  ;;  %v503_v34 = vmul.f32 1.442695, %v485_v29  ;;  %v473_v47 = vand.u32 2147483647, %v3725_v33  ;;  %v3744_v48 = vld [vmem:[%s3644_s10 + $0x40] sm:$0xff]  ;;  %v3751_v56 = vld [vmem:[%s3646_s12 + $0x18] sm:$0xff]  }
  0xa6   : > { %3096 = vpow2.f32 %v501_v17  ;;  %v505_v39 = vmul.f32 1.442695, %v486_v30  ;;  %v487_v41 = vsub.f32 0.0, %v471_v31  ;;  %v488_v42 = vsub.f32 0.0, %v472_v32  ;;  %v3754_v57 = vld [vmem:[%s3644_s10 + $0x48] sm:$0xff]  ;;  %v3759_v61 = vld [vmem:[%s3646_s12 + $0x58] sm:$0xff]  }
  0xa7   : > { %3098 = vpow2.f32 %v503_v34  ;;  %v474_v51 = vand.u32 2147483647, %v3731_v38  ;;  %v489_v55 = vsub.f32 0.0, %v473_v47  ;;  %v475_v0 = vand.u32 2147483647, %v3744_v48  ;;  %v3770_v29 = vld [vmem:[%s3646_s12 + $0x20] sm:$0xff]  }
  0xa8   : > { %3100 = vpow2.f32 %v505_v39  ;;  %v507_v49 = vmul.f32 1.442695, %v487_v41  ;;  %v509_v50 = vmul.f32 1.442695, %v488_v42  ;;  %v476_v9 = vand.u32 2147483647, %v3754_v57 }
  0xa9   : > { %v490_v60 = vsub.f32 0.0, %v474_v51  ;;  %v511_v63 = vmul.f32 1.442695, %v489_v55  ;;  %v3773_v39 = vld [vmem:[%s3646_s12 + $0x60] sm:$0xff]   ;;  %v3955_v1 = vld [vmem:[%s3638_s9 + $0x30] sm:$0xff] }
  0xaa   : > { %3102 = vpow2.f32 %v507_v49  ;;  %v491_v49 = vsub.f32 0.0, %v475_v0  ;;  %v492_v51 = vsub.f32 0.0, %v476_v9 }
  0xab   : > { %3104 = vpow2.f32 %v509_v50  ;;  %v513_v4 = vmul.f32 1.442695, %v490_v60 }
  0xac   : > { %3106 = vpow2.f32 %v511_v63  ;;  %v515_v55 = vmul.f32 1.442695, %v491_v49  ;;  %v517_v7 = vmul.f32 1.442695, %v492_v51 }
  0xad   : > { %3108 = vpow2.f32 %v513_v4 }
  0xaf   : > { %v3095_v16 = vpop.eup %3094 }
  0xb0   : > { %v3097_v30 = vpop.eup %3096  ;;  %v531_v31 = vadd.f32 1.0, %v3095_v16  ;;  %v534_v32 = vmul.f32 -0.5, %v3095_v16  ;;  %v537_v34 = vand.u32 2147483647, %v3095_v16 }
  0xb1   : > { %v540_v41 = vadd.f32 1.0, %v3097_v30  ;;  %v543_v42 = vmul.f32 -0.5, %v3097_v30  ;;  %v546_v50 = vand.u32 2147483647, %v3097_v30  ;;  %v3099_v60 = vpop.eup %3098 }
  0xb2   : > { %3110 = vlog2.f32 %v531_v31  ;;  %v535_v63 = vadd.f32 1.0, %v534_v32  ;;  %v3101_v4 = vpop.eup %3100  ;;  %vm3779_vm1 = vcmp.lt.f32.partialorder %v537_v34, 0.0004427343  ;;  %v549_v8 = vadd.f32 1.0, %v3099_v60 }
  0xb3   : > { %3112 = vlog2.f32 %v540_v41  ;;  %v552_v47 = vmul.f32 -0.5, %v3099_v60  ;;  %v544_v31 = vadd.f32 1.0, %v543_v42  ;;  %v558_v9 = vadd.f32 1.0, %v3101_v4 }
  0xb4   : > { %v561_v17 = vmul.f32 -0.5, %v3101_v4  ;;  %v3103_v5 = vpop.eup %3102  ;;  %vm3784_vm2 = vcmp.lt.f32.partialorder %v546_v50, 0.0004427343  ;;  %3114 = vlog2.f32 %v549_v8  ;;  %v555_v41 = vand.u32 2147483647, %v3099_v60  ;;  %v3873_v8 = vld [vmem:[%s3638_s9 + $0x10] sm:$0xff] }
  0xb5   : > { %v3105_v34 = vpop.eup %3104  ;;  %v536_v23 = vmul.f32 %v3095_v16, %v535_v63  ;;  %3116 = vlog2.f32 %v558_v9  ;;  %v564_v62 = vand.u32 2147483647, %v3101_v4  ;;  %v567_v59 = vadd.f32 1.0, %v3103_v5 }
  0xb6   : > { %v553_v58 = vadd.f32 1.0, %v552_v47  ;;  %v562_v53 = vadd.f32 1.0, %v561_v17  ;;  %v570_v0 = vmul.f32 -0.5, %v3103_v5  ;;  %v576_v42 = vadd.f32 1.0, %v3105_v34  ;;  %v3107_v54 = vpop.eup %3106 }
  0xb7   : > { %3118 = vlog2.f32 %v567_v59  ;;  %v573_v49 = vand.u32 2147483647, %v3103_v5  ;;  %v579_v52 = vmul.f32 -0.5, %v3105_v34  ;;  %v582_v50 = vand.u32 2147483647, %v3105_v34  ;;  %v3109_v46 = vpop.eup %3108 }
  0xb8   : > { %v545_v3 = vmul.f32 %v3097_v30, %v544_v31  ;;  %vm3788_vm3 = vcmp.lt.f32.partialorder %v555_v41, 0.0004427343  ;;  %3120 = vlog2.f32 %v576_v42  ;;  %v585_v16 = vadd.f32 1.0, %v3107_v54 }
  0xb9   : > { %vm3792_vm4 = vcmp.lt.f32.partialorder %v564_v62, 0.0004427343  ;;  %v571_v17 = vadd.f32 1.0, %v570_v0  ;;  %v580_v47 = vadd.f32 1.0, %v579_v52  ;;  %v588_v63 = vmul.f32 -0.5, %v3107_v54 }
  0xba   : > { %v554_v59 = vmul.f32 %v3099_v60, %v553_v58  ;;  %3122 = vlog2.f32 %v585_v16  ;;  %v594_v45 = vadd.f32 1.0, %v3109_v46  ;;  %v597_v40 = vmul.f32 -0.5, %v3109_v46  ;;  %v3805_v16 = vld [vmem:[%s3644_s10 + $0x50] sm:$0xff] }
  0xbb   : > { %v563_v41 = vmul.f32 %v3101_v4, %v562_v53  ;;  %vm3796_vm5 = vcmp.lt.f32.partialorder %v573_v49, 0.0004427343  ;;  %vm3800_vm6 = vcmp.lt.f32.partialorder %v582_v50, 0.0004427343  ;;  %v589_v52 = vadd.f32 1.0, %v588_v63  ;;  %v3810_v50 = vld [vmem:[%s3644_s10 + $0x58] sm:$0xff] }
  0xbc   : > { %v3111_v9 = vpop.eup %3110  ;;  %v591_v0 = vand.u32 2147483647, %v3107_v54  ;;  %3124 = vlog2.f32 %v594_v45  ;;  %v598_v58 = vadd.f32 1.0, %v597_v40  ;;  %v600_v60 = vand.u32 2147483647, %v3109_v46 }
  0xbd   : > { %v3113_v30 = vpop.eup %3112  ;;  %v533_v31 = vmul.f32 0.6931472, %v3111_v9  ;;  %v572_v4 = vmul.f32 %v3103_v5, %v571_v17  ;;  %v581_v49 = vmul.f32 %v3105_v34, %v580_v47  ;;  %3126 = vpow2.f32 %v515_v55 }
  0xbe   : > { %v542_v36 = vmul.f32 0.6931472, %v3113_v30  ;;  %v3115_v9 = vpop.eup %3114  ;;  %v3818_v40 = vmul.f32 %v3107_v54, %v589_v52  ;;  %v3820_v30 = vmul.f32 %v3109_v46, %v598_v58  ;;  %vm3829_vm7 = vcmp.lt.f32.partialorder %v591_v0, 0.0004427343  ;;  %v3876_v58 = vld [vmem:[%s3638_s9 + $0x18] sm:$0xff] }
  0xbf   : > { %v539_v53 = vsel %vm3779_vm1, %v536_v23, %v533_v31  ;;  %v3117_v19 = vpop.eup %3116  ;;  %v3827_v23 = vld [vmem:[%s3638_s9] sm:$0xff]  ;;  %v551_v55 = vmul.f32 0.6931472, %v3115_v9  ;;  %vm3833_vm8 = vcmp.lt.f32.partialorder %v600_v60, 0.0004427343  ;;  %3128 = vpow2.f32 %v517_v7 }
  0xc0   : > { %v548_v63 = vsel %vm3784_vm2, %v545_v3, %v542_v36  ;;  %v3816_v45 = vadd.f32 %v539_v53, %v451_v13  ;;  %v477_v3 = vand.u32 2147483647, %v3805_v16  ;;  %v3839_v13 = vld [vmem:[%s3638_s9 + $0x8] sm:$0xff]  ;;  %v560_v36 = vmul.f32 0.6931472, %v3117_v19 }
  0xc1   : > { %v3824_v5 = vadd.f32 %v548_v63, %v452_v14  ;;  %v478_v46 = vand.u32 2147483647, %v3810_v50  ;;  %v3119_v54 = vpop.eup %3118  ;;  %v4623_v60 = vunpack.c.h.bf16 %v3703_v15  ;;  %v4624_v9 = vunpack.c.h.bf16 %v3712_v24 }
  0xc2   : > { %v755_v2 = vmul.f32 %v2558_v18, %v3816_v45  ;;  %v919_v14 = vmul.f32 %v2590_v21, %v3816_v45  ;;  %v557_v18 = vsel %vm3788_vm3, %v554_v59, %v551_v55  ;;  %v3856_v17 = vsub.f32 0.0, %v477_v3  ;;  %v3121_v21 = vpop.eup %3120 }
  0xc3   : > { %v756_v7 = vmul.f32 %v2559_v20, %v3824_v5  ;;  %v920_v32 = vmul.f32 %v2591_v22, %v3824_v5  ;;  %v566_v52 = vsel %vm3792_vm4, %v563_v41, %v560_v36  ;;  %v3864_v6 = vadd.f32 %v557_v18, %v453_v27 }
  0xc4   : > { %v771_v47 = vadd.f32 %v755_v2, %v3827_v23  ;;  %v935_v31 = vadd.f32 %v919_v14, %v3827_v23  ;;  %v3870_v22 = vadd.f32 %v566_v52, %v454_v28  ;;  %v569_v59 = vmul.f32 0.6931472, %v3119_v54  ;;  %v3123_v0 = vpop.eup %3122 }
  0xc5   : > { %v772_v10 = vadd.f32 %v756_v7, %v3839_v13  ;;  %v936_v20 = vadd.f32 %v920_v32, %v3839_v13  ;;  %v757_v11 = vmul.f32 %v2562_v35, %v3864_v6  ;;  %v921_v27 = vmul.f32 %v2594_v37, %v3864_v6 }
  0xc6   : > { %v578_v51 = vmul.f32 0.6931472, %v3121_v21  ;;  %v3884_v41 = vsub.f32 0.0, %v478_v46  ;;  %v758_v53 = vmul.f32 %v4623_v60, %v3870_v22  ;;  %v922_v63 = vmul.f32 %v4624_v9, %v3870_v22  ;;  %v3125_v19 = vpop.eup %3124  ;;  %v3958_v9 = vld [vmem:[%s3638_s9 + $0x38] sm:$0xff] }
  0xc7   : > { %v2924_v12 = vpack.c.bf16 %v772_v10, %v771_v47  ;;  %v2948_v28 = vpack.c.bf16 %v936_v20, %v935_v31  ;;  %v773_v35 = vadd.f32 %v757_v11, %v3873_v8  ;;  %v937_v55 = vadd.f32 %v921_v27, %v3873_v8  ;;  %v3898_v2 = vpop.eup %3126  ;;  %v3920_v47 = vld [vmem:[%s3638_s9 + $0x28] sm:$0xff] }
  0xc8   : > { %v575_v37 = vsel %vm3796_vm5, %v572_v4, %v569_v59  ;;  %v584_v3 = vsel %vm3800_vm6, %v581_v49, %v578_v51  ;;  %v774_v15 = vadd.f32 %v758_v53, %v3876_v58  ;;  %v938_v24 = vadd.f32 %v922_v63, %v3876_v58  ;;  %v3913_v4 = vld [vmem:[%s3638_s9 + $0x20] sm:$0xff] }
  0xc9   : > { %2925 = vmatpush3.bf16.msra.mxu0 %v2924_v12  ;;  %2949 = vmatpush3.bf16.msra.mxu1 %v2948_v28  ;;  %v4625_v14 = vmax.f32 %v3715_v25, 0.0  ;;  %v587_v46 = vmul.f32 0.6931472, %v3123_v0  ;;  %v4626_v54 = vmov 0.0|0.0   ;;  %v4627_v42 = vmax.f32 %v3718_v26, 0.0  ;;  %v3917_v18 = vpop.eup %3128 }
  0xca   : > { %2926 = vmatprep.subr.bf16.mxu0 %v4626_v54  ;;  %2950 = vmatprep.subr.bf16.mxu1 %v4626_v54  ;;  %v596_v49 = vmul.f32 0.6931472, %v3125_v19  ;;  %v603_v7 = vadd.f32 1.0, %v3898_v2  ;;  %v606_v32 = vmul.f32 -0.5, %v3898_v2  ;;  %v2927_v25 = vpack.c.bf16 %v774_v15, %v773_v35 }
  0xcb   : > { %v3904_v36 = vadd.f32 %v575_v37, %v4625_v14  ;;  %v3910_v62 = vadd.f32 %v584_v3, %v4627_v42  ;;  %v2951_v21 = vpack.c.bf16 %v938_v24, %v937_v55  ;;  %v4628_v31 = vunpack.c.l.bf16 %v3735_v43 }
  0xcc   : > { %v4629_v26 = vunpack.c.l.bf16 %v3738_v44  ;;  %v4630_v20 = vunpack.c.h.bf16 %v3735_v43  ;;  %v4631_v0 = vunpack.c.h.bf16 %v3738_v44  ;;  %v593_v27 = vsel %vm3829_vm7, %v3818_v40, %v587_v46 }
  0xcd   : > { %v759_v52 = vmul.f32 %v4628_v31, %v3904_v36  ;;  %v602_v51 = vsel %vm3833_vm8, %v3820_v30, %v596_v49  ;;  %2928 = vmatpush3.bf16.msra.mxu0 %v2927_v25  ;;  %2952 = vmatpush3.bf16.msra.mxu1 %v2951_v21  ;;  %v4632_v28 = vmax.f32 %v3725_v33, 0.0  ;;  %3130 = vlog2.f32 %v603_v7  ;;  %v3982_v21 = vld [vmem:[%s3646_s12 + $0x28] sm:$0xff]  }
  0xce   : > { %v923_v10 = vmul.f32 %v4629_v26, %v3904_v36  ;;  %v760_v59 = vmul.f32 %v4630_v20, %v3910_v62  ;;  %v924_v11 = vmul.f32 %v4631_v0, %v3910_v62  ;;  %2929 = vmatprep.subr.bf16.mxu0 %v4626_v54  ;;  %2953 = vmatprep.subr.bf16.mxu1 %v4626_v54  ;;  %v4633_v30 = vmax.f32 %v3731_v38, 0.0  ;;  %v3985_v31 = vld [vmem:[%s3646_s12 + $0x68] sm:$0xff]  }
  0xcf   : > { %v775_v12 = vadd.f32 %v759_v52, %v3913_v4  ;;  %v3944_v60 = vadd.f32 %v593_v27, %v4632_v28  ;;  %v607_v53 = vadd.f32 1.0, %v606_v32  ;;  %v4634_v33 = vunpack.c.l.bf16 %v3751_v56  ;;  %v4013_v28 = vld [vmem:[%s3646_s12 + $0x70] sm:$0xff]  }
  0xd0   : > { %v939_v43 = vadd.f32 %v923_v10, %v3913_v4  ;;  %v776_v44 = vadd.f32 %v760_v59, %v3920_v47  ;;  %v940_v40 = vadd.f32 %v924_v11, %v3920_v47  ;;  %v3952_v34 = vadd.f32 %v602_v51, %v4633_v30  ;;  %v3998_v51 = vld [vmem:[%s3644_s10 + $0x60] sm:$0xff] }
  0xd1   : > { %v761_v63 = vmul.f32 %v4634_v33, %v3944_v60  ;;  %v4635_v19 = vunpack.c.l.bf16 %v3759_v61  ;;  %v609_v55 = vand.u32 2147483647, %v3898_v2  ;;  %v612_v38 = vadd.f32 1.0, %v3917_v18  ;;  %v4022_v33 = vld [vmem:[%s3644_s10 + $0x78] sm:$0xff] }
  0xd2   : > { %v2930_v37 = vpack.c.bf16 %v776_v44, %v775_v12  ;;  %v2954_v3 = vpack.c.bf16 %v940_v40, %v939_v43  ;;  %v4636_v15 = vunpack.c.h.bf16 %v3751_v56  ;;  %v4637_v14 = vunpack.c.h.bf16 %v3759_v61  ;;  %v4001_v12 = vld [vmem:[%s3644_s10 + $0x68] sm:$0xff]  ;;  %v4010_v43 = vld [vmem:[%s3646_s12 + $0x30] sm:$0xff]  }
  0xd3   : > { %v925_v35 = vmul.f32 %v4635_v19, %v3944_v60  ;;  %v777_v42 = vadd.f32 %v761_v63, %v3955_v1  ;;  %v461_v7 = vmax.f32 %v3805_v16, 0.0  ;;  %v462_v32 = vmax.f32 %v3810_v50, 0.0 }
  0xd4   : > { %v762_v24 = vmul.f32 %v4636_v15, %v3952_v34  ;;  %v926_v46 = vmul.f32 %v4637_v14, %v3952_v34  ;;  %2931 = vmatpush3.bf16.msra.mxu0 %v2930_v37  ;;  %2955 = vmatpush3.bf16.msra.mxu1 %v2954_v3  ;;  %3132 = vlog2.f32 %v612_v38  ;;  %v615_v61 = vmul.f32 -0.5, %v3917_v18  ;;  %v4072_v15 = vld [vmem:[%s3638_s9 + $0x48] sm:$0xff] }
  0xd5   : > { %v941_v49 = vadd.f32 %v925_v35, %v3955_v1  ;;  %2932 = vmatprep.subr.bf16.mxu0 %v4626_v54  ;;  %2956 = vmatprep.subr.bf16.mxu1 %v4626_v54  ;;  %v608_v52 = vmul.f32 %v3898_v2, %v607_v53  ;;  %v618_v26 = vand.u32 2147483647, %v3917_v18  ;;  %v519_v10 = vmul.f32 1.442695, %v3856_v17  ;;  %v4019_v53 = vld [vmem:[%s3644_s10 + $0x70] sm:$0xff] }
  0xd6   : > { %v778_v25 = vadd.f32 %v762_v24, %v3958_v9  ;;  %v942_v56 = vadd.f32 %v926_v46, %v3958_v9  ;;  %v521_v20 = vmul.f32 1.442695, %v3884_v41  ;;  %vm3993_vm9 = vcmp.lt.f32.partialorder %v609_v55, 0.0004427343 }
  0xd7   : > { %v616_v27 = vadd.f32 1.0, %v615_v61  ;;  %vm4003_vm10 = vcmp.lt.f32.partialorder %v618_v26, 0.0004427343  ;;  %3134 = vpow2.f32 %v519_v10  ;;  %v3131_v63 = vpop.eup %3130  ;;  %v479_v35 = vand.u32 2147483647, %v3998_v51 }
  0xd8   : > { %v2933_v59 = vpack.c.bf16 %v778_v25, %v777_v42  ;;  %v2957_v0 = vpack.c.bf16 %v942_v56, %v941_v49  ;;  %3136 = vpow2.f32 %v521_v20  ;;  %v480_v55 = vand.u32 2147483647, %v4001_v12  ;;  %v4036_v49 = vld [vmem:[%s3646_s12 + $0x38] sm:$0xff]   ;;  %v2699_v25 = vld [vmem:[%s3646_s12 + $0x80] sm:$0xff]  }
  0xd9   : > { %v617_v44 = vmul.f32 %v3917_v18, %v616_v27  ;;  %v605_v38 = vmul.f32 0.6931472, %v3131_v63  ;;  %v495_v24 = vsub.f32 0.0, %v479_v35  ;;  %v481_v42 = vand.u32 2147483647, %v4019_v53 }
  0xda   : > { %2934 = vmatpush3.bf16.msra.mxu0 %v2933_v59  ;;  %2958 = vmatpush3.bf16.msra.mxu1 %v2957_v0  ;;  %v496_v14 = vsub.f32 0.0, %v480_v55  ;;  %v482_v10 = vand.u32 2147483647, %v4022_v33  ;;  %v4642_v20 = vmax.f32 %v3744_v48, 0.0  ;;  %v4049_v55 = vld [vmem:[%s3638_s9 + $0x40] sm:$0xff]  ;;  %v4643_v26 = vunpack.c.l.bf16 %v3770_v29 }
  0xdb   : > { %2935 = vmatprep.subr.bf16.mxu0 %v4626_v54  ;;  %2959 = vmatprep.subr.bf16.mxu1 %v4626_v54  ;;  %v611_v56 = vsel %vm3993_vm9, %v608_v52, %v605_v38  ;;  %v523_v0 = vmul.f32 1.442695, %v495_v24  ;;  %v497_v63 = vsub.f32 0.0, %v481_v42  ;;  %v2622_v38 = vunpack.c.l.bf16 %v2699_v25 }
  0xdc   : > { %v4046_v59 = vadd.f32 %v611_v56, %v4642_v20  ;;  %v525_v27 = vmul.f32 1.442695, %v496_v14  ;;  %v498_v46 = vsub.f32 0.0, %v482_v10  ;;  %v4644_v48 = vunpack.c.l.bf16 %v3773_v39 }
  0xdd   : > { %3138 = vpow2.f32 %v523_v0  ;;  %v527_v14 = vmul.f32 1.442695, %v497_v63  ;;  %v2623_v56 = vunpack.c.h.bf16 %v2699_v25  ;;  %v4069_v25 = vld [vmem:[%s3646_s12 + $0x78] sm:$0xff]   ;;  %v4658_v16 = vunpack.c.l.bf16 %v3982_v21 }
  0xde   : > { %v3133_v35 = vpop.eup %3132  ;;  %v763_v3 = vmul.f32 %v4643_v26, %v4046_v59  ;;  %v927_v24 = vmul.f32 %v4644_v48, %v4046_v59  ;;  %3140 = vpow2.f32 %v525_v27  ;;  %v529_v42 = vmul.f32 1.442695, %v498_v46 }
  0xdf   : > { %v614_v61 = vmul.f32 0.6931472, %v3133_v35  ;;  %v1085_v26 = vmul.f32 %v2622_v38, %v3816_v45  ;;  %v4645_v48 = vmax.f32 %v3754_v57, 0.0  ;;  %3142 = vpow2.f32 %v527_v14 }
  0xe0   : > { %v779_v35 = vadd.f32 %v763_v3, %v4049_v55  ;;  %v943_v52 = vadd.f32 %v927_v24, %v4049_v55  ;;  %v4647_v57 = vunpack.c.h.bf16 %v3773_v39  ;;  %v2700_v39 = vld [vmem:[%s3646_s12 + $0x88] sm:$0xff]  }
  0xe1   : > { %v3135_v10 = vpop.eup %3134  ;;  %v620_v20 = vsel %vm4003_vm10, %v617_v44, %v614_v61  ;;  %v4646_v61 = vunpack.c.h.bf16 %v3770_v29  ;;  %v2626_v18 = vunpack.c.l.bf16 %v2700_v39  ;;  %v4146_v29 = vld [vmem:[%s3638_s9 + $0x50] sm:$0xff] }
  0xe2   : > { %v3137_v11 = vpop.eup %3136  ;;  %v4066_v0 = vadd.f32 %v620_v20, %v4645_v48  ;;  %v621_v27 = vadd.f32 1.0, %v3135_v10  ;;  %v624_v63 = vmul.f32 -0.5, %v3135_v10  ;;  %v627_v46 = vand.u32 2147483647, %v3135_v10  ;;  %v2707_v48 = vld [vmem:[%s3646_s12 + $0xc0] sm:$0xff]  }
  0xe3   : > { %v630_v2 = vadd.f32 1.0, %v3137_v11  ;;  %v633_v44 = vmul.f32 -0.5, %v3137_v11  ;;  %v636_v3 = vand.u32 2147483647, %v3137_v11  ;;  %v1087_v17 = vmul.f32 %v2626_v18, %v3864_v6 }
  0xe4   : > { %v764_v38 = vmul.f32 %v4646_v61, %v4066_v0  ;;  %v928_v24 = vmul.f32 %v4647_v57, %v4066_v0  ;;  %3144 = vlog2.f32 %v621_v27  ;;  %v625_v20 = vadd.f32 1.0, %v624_v63  ;;  %v4149_v27 = vld [vmem:[%s3638_s9 + $0x58] sm:$0xff] }
  0xe5   : > { %3146 = vlog2.f32 %v630_v2  ;;  %v634_v37 = vadd.f32 1.0, %v633_v44  ;;  %vm4085_vm11 = vcmp.lt.f32.partialorder %v627_v46, 0.0004427343  ;;  %vm4090_vm12 = vcmp.lt.f32.partialorder %v636_v3, 0.0004427343 }
  0xe6   : > { %v780_v30 = vadd.f32 %v764_v38, %v4072_v15  ;;  %v944_v14 = vadd.f32 %v928_v24, %v4072_v15  ;;  %3148 = vpow2.f32 %v529_v42  ;;  %v1086_v63 = vmul.f32 %v2623_v56, %v3824_v5 }
  0xe7   : > { %v4096_v2 = vadd.f32 %v1085_v26, %v3827_v23  ;;  %v2654_v44 = vunpack.c.l.bf16 %v2707_v48  ;;  %v626_v57 = vmul.f32 %v3135_v10, %v625_v20  ;;  %v2655_v46 = vunpack.c.h.bf16 %v2707_v48  ;;  %v3139_v24 = vpop.eup %3138 }
  0xe8   : > { %v2936_v61 = vpack.c.bf16 %v780_v30, %v779_v35  ;;  %v2960_v38 = vpack.c.bf16 %v944_v14, %v943_v52  ;;  %v635_v19 = vmul.f32 %v3137_v11, %v634_v37  ;;  %v4099_v42 = vadd.f32 %v1086_v63, %v3839_v13  ;;  %v3141_v41 = vpop.eup %3140  ;;  %v4104_v35 = vld [vmem:[%s3646_s12 + $0xc8] sm:$0xff]  }
  0xe9   : > { %v1251_v3 = vmul.f32 %v2654_v44, %v3816_v45  ;;  %v639_v56 = vadd.f32 1.0, %v3139_v24  ;;  %v642_v26 = vmul.f32 -0.5, %v3139_v24  ;;  %v645_v40 = vand.u32 2147483647, %v3139_v24  ;;  %v3143_v14 = vpop.eup %3142 }
  0xea   : > { %2937 = vmatpush3.bf16.msra.mxu0 %v2936_v61  ;;  %2961 = vmatpush3.bf16.msra.mxu1 %v2960_v38  ;;  %v1252_v30 = vmul.f32 %v2655_v46, %v3824_v5  ;;  %v648_v37 = vadd.f32 1.0, %v3141_v41  ;;  %v651_v11 = vmul.f32 -0.5, %v3141_v41  ;;  %v654_v52 = vand.u32 2147483647, %v3141_v41 }
  0xeb   : > { %2938 = vmatprep.subr.bf16.mxu0 %v4626_v54  ;;  %2962 = vmatprep.subr.bf16.mxu1 %v4626_v54  ;;  %3150 = vlog2.f32 %v639_v56  ;;  %v643_v10 = vadd.f32 1.0, %v642_v26  ;;  %v4111_v20 = vadd.f32 %v1251_v3, %v3827_v23  ;;  %v2627_v48 = vunpack.c.h.bf16 %v2700_v39 }
  0xec   : > { %3152 = vlog2.f32 %v648_v37  ;;  %v652_v5 = vadd.f32 1.0, %v651_v11  ;;  %v4114_v63 = vadd.f32 %v1252_v30, %v3839_v13  ;;  %v2658_v44 = vunpack.c.l.bf16 %v4104_v35 }
  0xed   : > { %vm4117_vm13 = vcmp.lt.f32.partialorder %v645_v40, 0.0004427343  ;;  %v657_v46 = vadd.f32 1.0, %v3143_v14  ;;  %v660_v56 = vmul.f32 -0.5, %v3143_v14  ;;  %v663_v26 = vand.u32 2147483647, %v3143_v14 }
  0xee   : > { %v3145_v61 = vpop.eup %3144  ;;  %v644_v3 = vmul.f32 %v3139_v24, %v643_v10  ;;  %v653_v39 = vmul.f32 %v3141_v41, %v652_v5  ;;  %vm4121_vm14 = vcmp.lt.f32.partialorder %v654_v52, 0.0004427343  ;;  %v4158_v50 = vadd.f32 %v1087_v17, %v3873_v8 }
  0xef   : > { %v3147_v45 = vpop.eup %3146  ;;  %v623_v23 = vmul.f32 0.6931472, %v3145_v61  ;;  %3154 = vlog2.f32 %v657_v46  ;;  %v661_v11 = vadd.f32 1.0, %v660_v56  ;;  %vm4136_vm15 = vcmp.lt.f32.partialorder %v663_v26, 0.0004427343 }
  0xf0   : > { %v3149_v30 = vpop.eup %3148  ;;  %v632_v40 = vmul.f32 0.6931472, %v3147_v45  ;;  %v1088_v46 = vmul.f32 %v2627_v48, %v3870_v22  ;;  %v4659_v56 = vunpack.c.l.bf16 %v3985_v31  ;;  %v2659_v17 = vunpack.c.h.bf16 %v4104_v35  ;;  %v4245_v45 = vld [vmem:[%s3638_s9 + $0x70] sm:$0xff] }
  0xf1   : > { %v629_v61 = vsel %vm4085_vm11, %v626_v57, %v623_v23  ;;  %v666_v24 = vadd.f32 1.0, %v3149_v30  ;;  %v669_v41 = vmul.f32 -0.5, %v3149_v30  ;;  %v672_v52 = vand.u32 2147483647, %v3149_v30 }
  0xf2   : > { %v638_v10 = vsel %vm4090_vm12, %v635_v19, %v632_v40  ;;  %v4134_v5 = vadd.f32 %v629_v61, %v461_v7  ;;  %v662_v57 = vmul.f32 %v3143_v14, %v661_v11  ;;  %v4660_v14 = vunpack.c.h.bf16 %v3982_v21 }
  0xf3   : > { %v4143_v18 = vadd.f32 %v638_v10, %v462_v32  ;;  %3156 = vlog2.f32 %v666_v24  ;;  %v670_v19 = vadd.f32 1.0, %v669_v41  ;;  %v4161_v32 = vadd.f32 %v1088_v46, %v3876_v58  ;;  %v2701_v24 = vld [vmem:[%s3646_s12 + $0x90] sm:$0xff]  }
  0xf4   : > { %v765_v7 = vmul.f32 %v4658_v16, %v4134_v5  ;;  %v929_v48 = vmul.f32 %v4659_v56, %v4134_v5  ;;  %v4661_v23 = vunpack.c.h.bf16 %v3985_v31  ;;  %vm4171_vm1 = vcmp.lt.f32.partialorder %v672_v52, 0.0004427343 }
  0xf5   : > { %v766_v26 = vmul.f32 %v4660_v14, %v4143_v18  ;;  %v4169_v11 = vmul.f32 %v3149_v30, %v670_v19  ;;  %v3151_v41 = vpop.eup %3150  ;;  %v1253_v31 = vmul.f32 %v2658_v44, %v3864_v6  ;;  %v1254_v35 = vmul.f32 %v2659_v17, %v3870_v22 }
  0xf6   : > { %v930_v40 = vmul.f32 %v4661_v23, %v4143_v18  ;;  %v781_v10 = vadd.f32 %v765_v7, %v4146_v29  ;;  %v945_v21 = vadd.f32 %v929_v48, %v4146_v29  ;;  %v3153_v30 = vpop.eup %3152  ;;  %v641_v16 = vmul.f32 0.6931472, %v3151_v41  ;;  %v2709_v23 = vld [vmem:[%s3646_s12 + $0xd0] sm:$0xff]  }
  0xf7   : > { %v782_v52 = vadd.f32 %v766_v26, %v4149_v27  ;;  %v650_v56 = vmul.f32 0.6931472, %v3153_v30  ;;  %v4186_v14 = vadd.f32 %v1253_v31, %v3873_v8  ;;  %v2630_v7 = vunpack.c.l.bf16 %v2701_v24 }
  0xf8   : > { %v946_v19 = vadd.f32 %v930_v40, %v4149_v27  ;;  %v2631_v48 = vunpack.c.h.bf16 %v2701_v24  ;;  %v647_v6 = vsel %vm4117_vm13, %v644_v3, %v641_v16  ;;  %v4192_v44 = vadd.f32 %v1254_v35, %v3876_v58  ;;  %v4207_v58 = vld [vmem:[%s3638_s9 + $0x60] sm:$0xff] }
  0xf9   : > { %v2939_v13 = vpack.c.bf16 %v782_v52, %v781_v10  ;;  %v3155_v26 = vpop.eup %3154  ;;  %v656_v22 = vsel %vm4121_vm14, %v653_v39, %v650_v56  ;;  %v4664_v8 = vmax.f32 %v3998_v51, 0.0  ;;  %v1089_v17 = vmul.f32 %v2630_v7, %v3904_v36  ;;  %v4214_v51 = vld [vmem:[%s3638_s9 + $0x68] sm:$0xff] }
  0xfa   : > { %v2963_v46 = vpack.c.bf16 %v946_v19, %v945_v21  ;;  %v1090_v24 = vmul.f32 %v2631_v48, %v3910_v62  ;;  %v4665_v38 = vmax.f32 %v4001_v12, 0.0  ;;  %v659_v41 = vmul.f32 0.6931472, %v3155_v26 }
  0xfb   : > { %v4198_v40 = vadd.f32 %v647_v6, %v4664_v8  ;;  %2940 = vmatpush3.bf16.msra.mxu0 %v2939_v13  ;;  %v2999_v39 = vpack.c.bf16 %v4192_v44, %v4186_v14  ;;  %v2662_v37 = vunpack.c.l.bf16 %v2709_v23  ;;  %v4666_v13 = vunpack.c.l.bf16 %v4010_v43 }
  0xfc   : > { %2964 = vmatpush3.bf16.msra.mxu1 %v2963_v46  ;;  %v4204_v3 = vadd.f32 %v656_v22, %v4665_v38  ;;  %2941 = vmatprep.subr.bf16.mxu0 %v4626_v54  ;;  %v4667_v10 = vunpack.c.l.bf16 %v4013_v28  ;;  %v4223_v46 = vadd.f32 %v1089_v17, %v3913_v4  ;;  %v2663_v31 = vunpack.c.h.bf16 %v2709_v23  ;;  %v2702_v17 = vld [vmem:[%s3646_s12 + $0x98] sm:$0xff]  }
  0xfd   : > { %2965 = vmatprep.subr.bf16.mxu1 %v4626_v54  ;;  %v767_v12 = vmul.f32 %v4666_v13, %v4198_v40  ;;  %v3157_v30 = vpop.eup %3156  ;;  %v4668_v52 = vunpack.c.h.bf16 %v4010_v43  ;;  %v4669_v16 = vunpack.c.h.bf16 %v4013_v28  ;;  %v665_v56 = vsel %vm4136_vm15, %v662_v57, %v659_v41 }
  0xfe   : > { %v931_v21 = vmul.f32 %v4667_v10, %v4198_v40  ;;  %v4234_v7 = vadd.f32 %v1090_v24, %v3920_v47  ;;  %v668_v6 = vmul.f32 0.6931472, %v3157_v30  ;;  %v4670_v26 = vmax.f32 %v4019_v53, 0.0  ;;  %v2710_v10 = vld [vmem:[%s3646_s12 + $0xd8] sm:$0xff]  }
  0xff   : > { %v768_v19 = vmul.f32 %v4668_v52, %v4204_v3  ;;  %v932_v35 = vmul.f32 %v4669_v16, %v4204_v3  ;;  %v783_v48 = vadd.f32 %v767_v12, %v4207_v58  ;;  %v1255_v8 = vmul.f32 %v2662_v37, %v3904_v36 }
 0x100   : > { %v947_v23 = vadd.f32 %v931_v21, %v4207_v58  ;;  %v4240_v43 = vadd.f32 %v665_v56, %v4670_v26  ;;  %v2978_v57 = vpack.c.bf16 %v4234_v7, %v4223_v46  ;;  %v674_v24 = vsel %vm4171_vm1, %v4169_v11, %v668_v6  ;;  %v4270_v11 = vld [vmem:[%s3638_s9 + $0x78] sm:$0xff] }
 0x101   : > { %v784_v28 = vadd.f32 %v768_v19, %v4214_v51  ;;  %v948_v22 = vadd.f32 %v932_v35, %v4214_v51  ;;  %v4671_v53 = vunpack.c.l.bf16 %v4036_v49  ;;  %v4672_v41 = vunpack.c.l.bf16 %v4069_v25 }
 0x102   : > { %v1256_v12 = vmul.f32 %v2663_v31, %v3910_v62  ;;  %v4673_v36 = vmax.f32 %v4022_v33, 0.0  ;;  %v4267_v61 = vadd.f32 %v1255_v8, %v3913_v4  ;;  %v2634_v62 = vunpack.c.l.bf16 %v2702_v17 }
 0x103   : > { %v769_v38 = vmul.f32 %v4671_v53, %v4240_v43  ;;  %v933_v13 = vmul.f32 %v4672_v41, %v4240_v43  ;;  %v2942_v21 = vpack.c.bf16 %v784_v28, %v783_v48  ;;  %v2966_v30 = vpack.c.bf16 %v948_v22, %v947_v23  ;;  %v2703_v41 = vld [vmem:[%s3646_s12 + $0xa0] sm:$0xff]  }
 0x104   : > { %v4264_v37 = vadd.f32 %v674_v24, %v4673_v36  ;;  %v4275_v16 = vadd.f32 %v1256_v12, %v3920_v47  ;;  %v4674_v33 = vunpack.c.h.bf16 %v4036_v49  ;;  %v4675_v4 = vunpack.c.h.bf16 %v4069_v25  ;;  %v957_v12 = vld [vmem:[#allocation2 + $0x8] sm:$0xff]  ;;  %v2704_v36 = vld [vmem:[%s3646_s12 + $0xa8] sm:$0xff]  }
 0x105   : > { %v785_v52 = vadd.f32 %v769_v38, %v4245_v45  ;;  %v949_v19 = vadd.f32 %v933_v13, %v4245_v45  ;;  %2943 = vmatpush3.bf16.msra.mxu0 %v2942_v21  ;;  %2967 = vmatpush3.bf16.msra.mxu1 %v2966_v30  ;;  %v2635_v56 = vunpack.c.h.bf16 %v2702_v17  ;;  %v2666_v48 = vunpack.c.l.bf16 %v2710_v10  ;;  %v2711_v30 = vld [vmem:[%s3646_s12 + $0xe0] sm:$0xff]  }
 0x106   : > { %v770_v31 = vmul.f32 %v4674_v33, %v4264_v37  ;;  %v934_v35 = vmul.f32 %v4675_v4, %v4264_v37  ;;  %2944 = vmatprep.subr.bf16.mxu0 %v4626_v54  ;;  %2968 = vmatprep.subr.bf16.mxu1 %v4626_v54  ;;  %v3002_v47 = vpack.c.bf16 %v4275_v16, %v4267_v61  ;;  %v2667_v6 = vunpack.c.h.bf16 %v2710_v10 }
 0x107   : > { %v1091_v23 = vmul.f32 %v2634_v62, %v3944_v60  ;;  %v1092_v25 = vmul.f32 %v2635_v56, %v3952_v34  ;;  %v1257_v28 = vmul.f32 %v2666_v48, %v3944_v60  ;;  %v791_v60 = vld [vmem:[#allocation2] sm:$0xff]  ;;  %v2638_v10 = vunpack.c.l.bf16 %v2703_v41 }
 0x108   : > { %v786_v49 = vadd.f32 %v770_v31, %v4270_v11  ;;  %v950_v26 = vadd.f32 %v934_v35, %v4270_v11  ;;  %v1258_v8 = vmul.f32 %v2667_v6, %v3952_v34  ;;  %v2639_v21 = vunpack.c.h.bf16 %v2703_v41 }
 0x109   : > { %v4293_v22 = vadd.f32 %v1091_v23, %v3955_v1  ;;  %v4297_v53 = vadd.f32 %v1092_v25, %v3958_v9  ;;  %v4300_v38 = vadd.f32 %v1257_v28, %v3955_v1  ;;  %v4676_v61 = vpack.c.bf16 %v4099_v42, %v4096_v2  ;;  %v2713_v23 = vld [vmem:[%s3646_s12 + $0xf0] sm:$0xff]  }
 0x10a   : > { %v2945_v17 = vpack.c.bf16 %v786_v49, %v785_v52  ;;  %v2969_v24 = vpack.c.bf16 %v950_v26, %v949_v19  ;;  %v4304_v13 = vadd.f32 %v1258_v8, %v3958_v9  ;;  %v2712_v9 = vld [vmem:[%s3646_s12 + $0xe8] sm:$0xff]   ;;  %v4677_v52 = vpack.c.bf16 %v4114_v63, %v4111_v20  ;;  %v2705_v20 = vld [vmem:[%s3646_s12 + $0xb0] sm:$0xff]  }
 0x10b   : > { %v2981_v34 = vpack.c.bf16 %v4297_v53, %v4293_v22  ;;  %v2670_v19 = vunpack.c.l.bf16 %v2711_v30  ;;  %v2671_v16 = vunpack.c.h.bf16 %v2711_v30  ;;  %v1093_v62 = vmul.f32 %v2638_v10, %v4046_v59  ;;  %v2706_v22 = vld [vmem:[%s3646_s12 + $0xb8] sm:$0xff]  }
 0x10c   : > { %2946 = vmatpush3.bf16.msra.mxu0 %v2945_v17  ;;  %2970 = vmatpush3.bf16.msra.mxu1 %v2969_v24  ;;  %v3005_v1 = vpack.c.bf16 %v4304_v13, %v4300_v38  ;;  %v1094_v33 = vmul.f32 %v2639_v21, %v4066_v0  ;;  %v2642_v31 = vunpack.c.l.bf16 %v2704_v36  ;;  %v2643_v4 = vunpack.c.h.bf16 %v2704_v36 }
 0x10d   : > { %2971 = vmatprep.subr.bf16.mxu0 %v4626_v54  ;;  %2995 = vmatprep.subr.bf16.mxu1 %v4626_v54  ;;  %v2674_v35 = vunpack.c.l.bf16 %v2712_v9  ;;  %v4678_v2 = vmov 0.0   ;;  %v2675_v42 = vunpack.c.h.bf16 %v2712_v9  ;;  %v4679_v63 = vpack.c.bf16 %v4161_v32, %v4158_v50 }
 0x10e   : > { %v1259_v56 = vmul.f32 %v2670_v19, %v4046_v59  ;;  %v1260_v48 = vmul.f32 %v2671_v16, %v4066_v0  ;;  %v1109_v6 = vadd.f32 %v1093_v62, %v4049_v55  ;;  %v1110_v49 = vadd.f32 %v1094_v33, %v4072_v15  ;;  %v1289_v19 = vld [vmem:[#allocation2 + $0x18] sm:$0xff] }
 0x10f   : > { %2816 = vmatmul.mubr.f32.vlgmr.msra.gmra.mrb[0].mxu0 %v791_v60  ;;  %2851 = vmatmul.mubr.f32.vlgmr.msra.gmra.mrb[0].mxu1 %v957_v12  ;;  %v1095_v50 = vmul.f32 %v2642_v31, %v4134_v5  ;;  %v1096_v32 = vmul.f32 %v2643_v4, %v4143_v18  ;;  %v1261_v14 = vmul.f32 %v2674_v35, %v4134_v5  ;;  %v2646_v59 = vunpack.c.l.bf16 %v2705_v20 }
 0x110   : > { %2973 = vmatpush3.bf16.msra.mxu0 %v4676_v61  ;;  %2997 = vmatpush3.bf16.msra.mxu1 %v4677_v52  ;;  %v2647_v44 = vunpack.c.h.bf16 %v2705_v20  ;;  %v1262_v0 = vmul.f32 %v2675_v42, %v4143_v18  ;;  %v2679_v26 = vunpack.c.h.bf16 %v2713_v23  ;;  %v1275_v25 = vadd.f32 %v1259_v56, %v4049_v55  ;;  %v2714_v18 = vld [vmem:[%s3646_s12 + $0xf8] sm:$0xff]   ;;  %v1123_v52 = vld [vmem:[#allocation2 + $0x10] sm:$0xff] }
 0x111   : > { %2974 = vmatprep.subr.bf16.mxu0 %v4626_v54  ;;  %2998 = vmatprep.subr.bf16.mxu1 %v4626_v54  ;;  %v1276_v28 = vadd.f32 %v1260_v48, %v4072_v15  ;;  %v2984_v5 = vpack.c.bf16 %v1110_v49, %v1109_v6  ;;  %v1111_v8 = vadd.f32 %v1095_v50, %v4146_v29  ;;  %v2651_v38 = vunpack.c.h.bf16 %v2706_v22  ;;  %v788_v6 = vld [vmem:[%s3670_s27] sm:$0x1]  ;;  %v2501_v49 = vld [vmem:[%s3670_s27 + $0x1] sm:$0x1] }
 0x112   : > { %2885 = vmatprep.mubr.msk.f32.mxu0 %vm3375_vm0, %v4678_v2  ;;  %2920 = vmatprep.mubr.msk.f32.mxu1 %vm3375_vm0, %v4678_v2  ;;  %v1112_v17 = vadd.f32 %v1096_v32, %v4149_v27  ;;  %v1277_v24 = vadd.f32 %v1261_v14, %v4146_v29  ;;  %v1097_v46 = vmul.f32 %v2646_v59, %v4198_v40  ;;  %v2682_v41 = vunpack.c.l.bf16 %v2714_v18  ;;  %v787_v59 = vld [vmem:[%s3660_s29] sm:$0x1] }
 0x113   : > { %v1098_v7 = vmul.f32 %v2647_v44, %v4204_v3  ;;  %v1278_v55 = vadd.f32 %v1262_v0, %v4149_v27  ;;  %v3008_v53 = vpack.c.bf16 %v1276_v28, %v1275_v25  ;;  %v2683_v13 = vunpack.c.h.bf16 %v2714_v18  ;;  %v951_v44 = vld [vmem:[%s3660_s29] sm:$0x1] }
 0x114   : > { %2976 = vmatpush3.bf16.msra.mxu0 %v4679_v63  ;;  %3000 = vmatpush3.bf16.msra.mxu1 %v2999_v39  ;;  %v2678_v39 = vunpack.c.l.bf16 %v2713_v23  ;;  %v2987_v29 = vpack.c.bf16 %v1112_v17, %v1111_v8  ;;  %v1113_v60 = vadd.f32 %v1097_v46, %v4207_v58  ;;  %v1265_v10 = vmul.f32 %v2682_v41, %v4240_v43 }
 0x115   : > { %2977 = vmatprep.subr.bf16.mxu0 %v4626_v54  ;;  %3001 = vmatprep.subr.bf16.mxu1 %v4626_v54  ;;  %v1114_v27 = vadd.f32 %v1098_v7, %v4214_v51  ;;  %v3011_v12 = vpack.c.bf16 %v1278_v55, %v1277_v24  ;;  %v1266_v21 = vmul.f32 %v2683_v13, %v4264_v37  ;;  %v793_v23 = vlaneseq  ;;  %v2518_v55 = vld [vmem:[%s3670_s27 + $0x2] sm:$0x1] }
 0x116   : > { %v1263_v15 = vmul.f32 %v2678_v39, %v4198_v40  ;;  %v1281_v9 = vadd.f32 %v1265_v10, %v4245_v45 }
 0x117   : > { %v2990_v30 = vpack.c.bf16 %v1114_v27, %v1113_v60  ;;  %v1282_v61 = vadd.f32 %v1266_v21, %v4270_v11  ;;  %v794_v32 = vshrl.u32 %v793_v23, 7 }
 0x118   : > { %2979 = vmatpush3.bf16.msra.mxu0 %v2978_v57  ;;  %3003 = vmatpush3.bf16.msra.mxu1 %v3002_v47  ;;  %v1264_v57 = vmul.f32 %v2679_v26, %v4204_v3  ;;  %v2650_v47 = vunpack.c.l.bf16 %v2706_v22  ;;  %v1279_v40 = vadd.f32 %v1263_v15, %v4207_v58  ;;  %v2535_v15 = vld [vmem:[%s3670_s27 + $0x3] sm:$0x1] }
 0x119   : > { %2980 = vmatprep.subr.bf16.mxu0 %v4626_v54  ;;  %3004 = vmatprep.subr.bf16.mxu1 %v4626_v54  ;;  %v795_v39 = vsub.s32 0, %v794_v32 }
 0x11a   : > { %v1280_v3 = vadd.f32 %v1264_v57, %v4214_v51 }
 0x11c   : > { %2982 = vmatpush3.bf16.msra.mxu0 %v2981_v34  ;;  %3006 = vmatpush3.bf16.msra.mxu1 %v3005_v1  ;;  %v1099_v34 = vmul.f32 %v2650_v47, %v4240_v43  ;;  %v1100_v1 = vmul.f32 %v2651_v38, %v4264_v37  ;;  %v3014_v36 = vpack.c.bf16 %v1280_v3, %v1279_v40  ;;  %v1283_v38 = vld [vmem:[%s3660_s29] sm:$0x1] }
 0x11d   : > { %2983 = vmatprep.subr.bf16.mxu0 %v4626_v54  ;;  %3007 = vmatprep.subr.bf16.mxu1 %v4626_v54  ;;  %v3017_v37 = vpack.c.bf16 %v1282_v61, %v1281_v9 }
 0x11e   : > { %v1115_v58 = vadd.f32 %v1099_v34, %v4245_v45  ;;  %v1116_v51 = vadd.f32 %v1100_v1, %v4270_v11  ;;  %v691_v45 = vld [vmem:[%s415_s17] sm:$0x1] }
 0x11f   : > { %v693_v11 = vand.u32 2147483647, %v691_v45  ;;  %v692_v63 = vmax.f32 %v691_v45, 0.0 }
 0x120   : > { %2985 = vmatpush3.bf16.msra.mxu0 %v2984_v5  ;;  %3009 = vmatpush3.bf16.msra.mxu1 %v3008_v53  ;;  %v2993_v43 = vpack.c.bf16 %v1116_v51, %v1115_v58  ;;  %v1117_v53 = vld [vmem:[%s3660_s29] sm:$0x1] }
 0x121   : > { %2986 = vmatprep.subr.bf16.mxu0 %v4626_v54  ;;  %3010 = vmatprep.subr.bf16.mxu1 %v4626_v54  ;;  %v694_v16 = vsub.f32 0.0, %v693_v11 }
 0x123   : > { %v695_v62 = vmul.f32 1.442695, %v694_v16 }
 0x124   : > { %2988 = vmatpush3.bf16.msra.mxu0 %v2987_v29  ;;  %3012 = vmatpush3.bf16.msra.mxu1 %v3011_v12 }
 0x125   : > { %2989 = vmatprep.subr.bf16.mxu0 %v4626_v54  ;;  %3013 = vmatprep.subr.bf16.mxu1 %v4626_v54  ;;  %3158 = vpow2.f32 %v695_v62 }
 0x128   : > { %2991 = vmatpush3.bf16.msra.mxu0 %v2990_v30  ;;  %3015 = vmatpush3.bf16.msra.mxu1 %v3014_v36 }
 0x129   : > { %2992 = vmatprep.subr.bf16.mxu0 %v4626_v54  ;;  %3016 = vmatprep.subr.bf16.mxu1 %v4626_v54 }
 0x12c   : > { %2994 = vmatpush3.bf16.msra.mxu0 %v2993_v43  ;;  %3018 = vmatpush3.bf16.msra.mxu1 %v3017_v37 }
 0x12f   : > { %2886 = vmatmul.mubr.f32.vlgmr.msra.gmra.mrb[2].mxu0 %v1123_v52  ;;  %2921 = vmatmul.mubr.f32.vlgmr.msra.gmra.mrb[2].mxu1 %v1289_v19  ;;  %v3159_v33 = vpop.eup %3158 }
 0x130   : > { %v697_v31 = vadd.f32 1.0, %v3159_v33  ;;  %v700_v54 = vmul.f32 -0.5, %v3159_v33  ;;  %v703_v2 = vand.u32 2147483647, %v3159_v33 }
 0x132   : > { %3160 = vlog2.f32 %v697_v31  ;;  %v701_v4 = vadd.f32 1.0, %v700_v54  ;;  %vm704_vm0 = vcmp.lt.f32.partialorder %v703_v2, 0.0004427343 }
 0x134   : > { %v702_v20 = vmul.f32 %v3159_v33, %v701_v4 }
 0x13c   : > { %v3161_v35 = vpop.eup %3160 }
 0x13d   : > { %v699_v42 = vmul.f32 0.6931472, %v3161_v35 }
 0x13f   : > { %v705_v56 = vsel %vm704_vm0, %v702_v20, %v699_v42 }
 0x140   : > { %v706_v48 = vadd.f32 %v705_v56, %v692_v63 }
 0x142   : > { %v789_v50 = vmul.f32 %v788_v6, %v706_v48  ;;  %v954_v14 = vmul.f32 %v2501_v49, %v706_v48  ;;  %v1120_v57 = vmul.f32 %v2518_v55, %v706_v48  ;;  %v1286_v47 = vmul.f32 %v2535_v15, %v706_v48 }
 0x144   : > { %v790_v0 = vadd.f32 %v789_v50, %v787_v59  ;;  %v955_v26 = vadd.f32 %v954_v14, %v951_v44  ;;  %v1121_v41 = vadd.f32 %v1120_v57, %v1117_v53  ;;  %v1287_v13 = vadd.f32 %v1286_v47, %v1283_v38 }
 0x146   : > { %v796_v25 = vrot.slane %v790_v0, %v795_v39  ;;  %v962_v28 = vrot.slane %v955_v26, %v795_v39  ;;  %v1128_v29 = vrot.slane %v1121_v41, %v795_v39  ;;  %v1294_v60 = vrot.slane %v1287_v13, %v795_v39 }
 0x1e2   : > { %v864_v22 = vpop.f32.mrb[0].mxu0  ;;  %v1030_v5 = vpop.f32.mrb[0].mxu1 }
 0x1e3   : > { %v865_v8 = vadd.f32 %v864_v22, %v796_v25  ;;  %v1031_v18 = vadd.f32 %v1030_v5, %v962_v28  ;;  %v2817_v17 = vpop.f32.mrb[1].mxu0  ;;  %v2852_v24 = vpop.f32.mrb[1].mxu1 }
 0x1e5   : > { %v868_v46 = vmax.f32 %v865_v8, 0.0  ;;  %v1034_v7 = vmax.f32 %v1031_v18, 0.0 }
 0x1e7   : > { %869 = vst [vmem:[#allocation2] sm:$0xff] %v868_v46  ;;  %1035 = vst [vmem:[#allocation2 + $0x8] sm:$0xff] %v1034_v7 }
 0x1ee   : > { %v4398_v30 = vld [vmem:[#allocation2] sm:$0xff] (!%p2536_p11)  ;;  %v4404_v58 = vld [vmem:[#allocation2 + $0x8] sm:$0xff] (!%p2536_p11) }
 0x1ef   : > { %1376 = vmax.xlane.f32.xlu0 (!%p2536_p11), %v4398_v30 }
 0x1f3   : > { %1378 = vmax.xlane.f32.xlu0 (!%p2536_p11), %v4404_v58 }
 0x201   : > { %1371 = sbr.rel (%p2536_p11) target bundleno = 4497 (0x1191), region = 72 }
 0x202   : > { %v1196_v27 = vpop.f32.mrb[2].mxu0  ;;  %v1362_v12 = vpop.f32.mrb[2].mxu1 }
 0x203   : > { %v1197_v40 = vadd.f32 %v1196_v27, %v1128_v29  ;;  %v1363_v3 = vadd.f32 %v1362_v12, %v1294_v60  ;;  %v2887_v34 = vpop.f32.mrb[3].mxu0  ;;  %v2922_v1 = vpop.f32.mrb[3].mxu1 }
 0x205   : > { %v1200_v10 = vmax.f32 %v1197_v40, 0.0  ;;  %v1366_v21 = vmax.f32 %v1363_v3, 0.0 }
 0x207   : > { %1201 = vst [vmem:[#allocation2 + $0x10] sm:$0xff] %v1200_v10  ;;  %1367 = vst [vmem:[#allocation2 + $0x18] sm:$0xff] %v1366_v21 }
 0x20e   : > { %v4400_v36 = vld [vmem:[#allocation2 + $0x10] sm:$0xff]  ;;  %v4406_v51 = vld [vmem:[#allocation2 + $0x18] sm:$0xff] }
 0x20f   : > { %1380 = vmax.xlane.f32.xlu1 %v4400_v36 }
 0x213   : > { %1382 = vmax.xlane.f32.xlu1 %v4406_v51 }
 0x27c   : > { %v1377_v9 = vpop.xlane.xlu0 %1376 }
 0x27d   : > { %v2537_v43 = vadd.f32 -1.0, %v1377_v9 }
 0x27f   : > { %v1388_v52 = vadd.f32 %v2537_v43, %v1377_v9 }
 0x280   : > { %v1379_v45 = vpop.xlane.xlu0 %1378 }
 0x281   : > { %v1392_v16 = vmul.f32 0.5, %v1388_v52  ;;  %v2538_v33 = vadd.f32 -1.0, %v1379_v45 }
 0x283   : > { %v1389_v54 = vadd.f32 %v2538_v33, %v1379_v45  ;;  %v1396_v35 = vsub.f32 %v4398_v30, %v1392_v16 }
 0x285   : > { %v1393_v2 = vmul.f32 0.5, %v1389_v54  ;;  %v1400_v20 = vmax.f32 %v1396_v35, 0.0 }
 0x287   : > { %1404 = vadd.xlane.f32.xlu0 %v1400_v20  ;;  %v1397_v56 = vsub.f32 %v4404_v58, %v1393_v2 }
 0x289   : > { %v1401_v23 = vmax.f32 %v1397_v56, 0.0 }
 0x28b   : > { %1406 = vadd.xlane.f32.xlu1 %v1401_v23 }
 0x29c   : > { %v1381_v61 = vpop.xlane.xlu1 %1380 }
 0x29d   : > { %v2539_v37 = vadd.f32 -1.0, %v1381_v61 }
 0x29f   : > { %v1390_v19 = vadd.f32 %v2539_v37, %v1381_v61 }
 0x2a0   : > { %v1383_v11 = vpop.xlane.xlu1 %1382 }
 0x2a1   : > { %v1394_v62 = vmul.f32 0.5, %v1390_v19  ;;  %v2540_v31 = vadd.f32 -1.0, %v1383_v11 }
 0x2a3   : > { %v1391_v4 = vadd.f32 %v2540_v31, %v1383_v11  ;;  %v1398_v63 = vsub.f32 %v4400_v36, %v1394_v62 }
 0x2a5   : > { %v1395_v42 = vmul.f32 0.5, %v1391_v4  ;;  %v1402_v48 = vmax.f32 %v1398_v63, 0.0 }
 0x2a7   : > { %v1399_v6 = vsub.f32 %v4406_v51, %v1395_v42  ;;  %1408 = vadd.xlane.f32.xlu0 %v1402_v48 }
 0x2a9   : > { %v1403_v49 = vmax.f32 %v1399_v6, 0.0 }
 0x2ab   : > { %1410 = vadd.xlane.f32.xlu1 %v1403_v49 }
 0x314   : > { %v1405_v50 = vpop.xlane.xlu0 %1404 }
 0x315   : > { %vm1412_vm2 = vcmp.gt.f32.partialorder %v1405_v50, 1.0 }
 0x316   : > { %v1416_v32 = vsel %vm1412_vm2, %v1392_v16, %v2537_v43  ;;  %v1420_v14 = vsel %vm1412_vm2, %v1377_v9, %v1392_v16 }
 0x317   : > { %v1424_v59 = vadd.f32 %v1420_v14, %v1416_v32 }
 0x318   : > { %v1407_v44 = vpop.xlane.xlu1 %1406 }
 0x319   : > { %v1428_v39 = vmul.f32 0.5, %v1424_v59  ;;  %vm1413_vm3 = vcmp.gt.f32.partialorder %v1407_v44, 1.0 }
 0x31a   : > { %v1417_v26 = vsel %vm1413_vm3, %v1393_v2, %v2538_v33  ;;  %v1421_v25 = vsel %vm1413_vm3, %v1379_v45, %v1393_v2 }
 0x31b   : > { %v1425_v5 = vadd.f32 %v1421_v25, %v1417_v26  ;;  %v1432_v18 = vsub.f32 %v4398_v30, %v1428_v39 }
 0x31d   : > { %v1429_v24 = vmul.f32 0.5, %v1425_v5  ;;  %v1436_v7 = vmax.f32 %v1432_v18, 0.0 }
 0x31f   : > { %1440 = vadd.xlane.f32.xlu0 %v1436_v7  ;;  %v1433_v47 = vsub.f32 %v4404_v58, %v1429_v24 }
 0x321   : > { %v1437_v41 = vmax.f32 %v1433_v47, 0.0 }
 0x323   : > { %1442 = vadd.xlane.f32.xlu1 %v1437_v41 }
 0x334   : > { %v1409_v0 = vpop.xlane.xlu0 %1408 }
 0x335   : > { %vm1414_vm4 = vcmp.gt.f32.partialorder %v1409_v0, 1.0 }
 0x336   : > { %v1418_v28 = vsel %vm1414_vm4, %v1394_v62, %v2539_v37  ;;  %v1422_v22 = vsel %vm1414_vm4, %v1381_v61, %v1394_v62 }
 0x337   : > { %v1426_v8 = vadd.f32 %v1422_v22, %v1418_v28 }
 0x338   : > { %v1411_v17 = vpop.xlane.xlu1 %1410 }
 0x339   : > { %v1430_v46 = vmul.f32 0.5, %v1426_v8  ;;  %vm1415_vm5 = vcmp.gt.f32.partialorder %v1411_v17, 1.0 }
 0x33a   : > { %v1419_v55 = vsel %vm1415_vm5, %v1395_v42, %v2540_v31  ;;  %v1423_v15 = vsel %vm1415_vm5, %v1383_v11, %v1395_v42 }
 0x33b   : > { %v1427_v57 = vadd.f32 %v1423_v15, %v1419_v55  ;;  %v1434_v53 = vsub.f32 %v4400_v36, %v1430_v46 }
 0x33d   : > { %v1431_v38 = vmul.f32 0.5, %v1427_v57  ;;  %v1438_v13 = vmax.f32 %v1434_v53, 0.0 }
 0x33f   : > { %1444 = vadd.xlane.f32.xlu0 %v1438_v13  ;;  %v1435_v29 = vsub.f32 %v4406_v51, %v1431_v38 }
 0x341   : > { %v1439_v60 = vmax.f32 %v1435_v29, 0.0 }
 0x343   : > { %1446 = vadd.xlane.f32.xlu1 %v1439_v60 }
 0x3ac   : > { %v1441_v27 = vpop.xlane.xlu0 %1440 }
 0x3ad   : > { %vm1448_vm6 = vcmp.gt.f32.partialorder %v1441_v27, 1.0 }
 0x3ae   : > { %v1452_v12 = vsel %vm1448_vm6, %v1428_v39, %v1416_v32  ;;  %v1456_v40 = vsel %vm1448_vm6, %v1420_v14, %v1428_v39 }
 0x3af   : > { %v1460_v3 = vadd.f32 %v1456_v40, %v1452_v12 }
 0x3b0   : > { %v1443_v34 = vpop.xlane.xlu1 %1442 }
 0x3b1   : > { %v1464_v10 = vmul.f32 0.5, %v1460_v3  ;;  %vm1449_vm7 = vcmp.gt.f32.partialorder %v1443_v34, 1.0 }
 0x3b2   : > { %v1453_v21 = vsel %vm1449_vm7, %v1429_v24, %v1417_v26  ;;  %v1457_v9 = vsel %vm1449_vm7, %v1421_v25, %v1429_v24 }
 0x3b3   : > { %v1461_v37 = vadd.f32 %v1457_v9, %v1453_v21  ;;  %v1468_v19 = vsub.f32 %v4398_v30, %v1464_v10 }
 0x3b5   : > { %v1465_v11 = vmul.f32 0.5, %v1461_v37  ;;  %v1472_v62 = vmax.f32 %v1468_v19, 0.0 }
 0x3b7   : > { %1476 = vadd.xlane.f32.xlu0 %v1472_v62  ;;  %v1469_v4 = vsub.f32 %v4404_v58, %v1465_v11 }
 0x3b9   : > { %v1473_v42 = vmax.f32 %v1469_v4, 0.0 }
 0x3bb   : > { %1478 = vadd.xlane.f32.xlu1 %v1473_v42 }
 0x3cc   : > { %v1445_v1 = vpop.xlane.xlu0 %1444 }
 0x3cd   : > { %vm1450_vm8 = vcmp.gt.f32.partialorder %v1445_v1, 1.0 }
 0x3ce   : > { %v1454_v61 = vsel %vm1450_vm8, %v1430_v46, %v1418_v28  ;;  %v1458_v43 = vsel %vm1450_vm8, %v1422_v22, %v1430_v46 }
 0x3cf   : > { %v1462_v52 = vadd.f32 %v1458_v43, %v1454_v61 }
 0x3d0   : > { %v1447_v45 = vpop.xlane.xlu1 %1446 }
 0x3d1   : > { %v1466_v16 = vmul.f32 0.5, %v1462_v52  ;;  %vm1451_vm9 = vcmp.gt.f32.partialorder %v1447_v45, 1.0 }
 0x3d2   : > { %v1455_v33 = vsel %vm1451_vm9, %v1431_v38, %v1419_v55  ;;  %v1459_v31 = vsel %vm1451_vm9, %v1423_v15, %v1431_v38 }
 0x3d3   : > { %v1463_v54 = vadd.f32 %v1459_v31, %v1455_v33  ;;  %v1470_v35 = vsub.f32 %v4400_v36, %v1466_v16 }
 0x3d5   : > { %v1467_v2 = vmul.f32 0.5, %v1463_v54  ;;  %v1474_v20 = vmax.f32 %v1470_v35, 0.0 }
 0x3d7   : > { %1480 = vadd.xlane.f32.xlu0 %v1474_v20  ;;  %v1471_v63 = vsub.f32 %v4406_v51, %v1467_v2 }
 0x3d9   : > { %v1475_v56 = vmax.f32 %v1471_v63, 0.0 }
 0x3db   : > { %1482 = vadd.xlane.f32.xlu1 %v1475_v56 }
 0x444   : > { %v1477_v48 = vpop.xlane.xlu0 %1476 }
 0x445   : > { %vm1484_vm10 = vcmp.gt.f32.partialorder %v1477_v48, 1.0 }
 0x446   : > { %v1488_v23 = vsel %vm1484_vm10, %v1464_v10, %v1452_v12  ;;  %v1492_v6 = vsel %vm1484_vm10, %v1456_v40, %v1464_v10 }
 0x447   : > { %v1496_v49 = vadd.f32 %v1492_v6, %v1488_v23 }
 0x448   : > { %v1479_v50 = vpop.xlane.xlu1 %1478 }
 0x449   : > { %v1500_v14 = vmul.f32 0.5, %v1496_v49  ;;  %vm1485_vm11 = vcmp.gt.f32.partialorder %v1479_v50, 1.0 }
 0x44a   : > { %v1489_v59 = vsel %vm1485_vm11, %v1465_v11, %v1453_v21  ;;  %v1493_v44 = vsel %vm1485_vm11, %v1457_v9, %v1465_v11 }
 0x44b   : > { %v1497_v26 = vadd.f32 %v1493_v44, %v1489_v59  ;;  %v1504_v28 = vsub.f32 %v4398_v30, %v1500_v14 }
 0x44d   : > { %v1501_v5 = vmul.f32 0.5, %v1497_v26  ;;  %v1508_v18 = vmax.f32 %v1504_v28, 0.0 }
 0x44f   : > { %1512 = vadd.xlane.f32.xlu0 %v1508_v18  ;;  %v1505_v7 = vsub.f32 %v4404_v58, %v1501_v5 }
 0x451   : > { %v1509_v57 = vmax.f32 %v1505_v7, 0.0 }
 0x453   : > { %1514 = vadd.xlane.f32.xlu1 %v1509_v57 }
 0x464   : > { %v1481_v32 = vpop.xlane.xlu0 %1480 }
 0x465   : > { %vm1486_vm12 = vcmp.gt.f32.partialorder %v1481_v32, 1.0 }
 0x466   : > { %v1490_v0 = vsel %vm1486_vm12, %v1466_v16, %v1454_v61  ;;  %v1494_v39 = vsel %vm1486_vm12, %v1458_v43, %v1466_v16 }
 0x467   : > { %v1498_v25 = vadd.f32 %v1494_v39, %v1490_v0 }
 0x468   : > { %v1483_v22 = vpop.xlane.xlu1 %1482 }
 0x469   : > { %v1502_v8 = vmul.f32 0.5, %v1498_v25  ;;  %vm1487_vm13 = vcmp.gt.f32.partialorder %v1483_v22, 1.0 }
 0x46a   : > { %v1491_v17 = vsel %vm1487_vm13, %v1467_v2, %v1455_v33  ;;  %v1495_v24 = vsel %vm1487_vm13, %v1459_v31, %v1467_v2 }
 0x46b   : > { %v1499_v46 = vadd.f32 %v1495_v24, %v1491_v17  ;;  %v1506_v55 = vsub.f32 %v4400_v36, %v1502_v8 }
 0x46d   : > { %v1503_v15 = vmul.f32 0.5, %v1499_v46  ;;  %v1510_v47 = vmax.f32 %v1506_v55, 0.0 }
 0x46f   : > { %1516 = vadd.xlane.f32.xlu0 %v1510_v47  ;;  %v1507_v53 = vsub.f32 %v4406_v51, %v1503_v15 }
 0x471   : > { %v1511_v38 = vmax.f32 %v1507_v53, 0.0 }
 0x473   : > { %1518 = vadd.xlane.f32.xlu1 %v1511_v38 }
 0x4dc   : > { %v1513_v41 = vpop.xlane.xlu0 %1512 }
 0x4dd   : > { %vm1520_vm14 = vcmp.gt.f32.partialorder %v1513_v41, 1.0 }
 0x4de   : > { %v1524_v13 = vsel %vm1520_vm14, %v1500_v14, %v1488_v23  ;;  %v1528_v29 = vsel %vm1520_vm14, %v1492_v6, %v1500_v14 }
 0x4df   : > { %v1532_v60 = vadd.f32 %v1528_v29, %v1524_v13 }
 0x4e0   : > { %v1515_v27 = vpop.xlane.xlu1 %1514 }
 0x4e1   : > { %v1536_v40 = vmul.f32 0.5, %v1532_v60  ;;  %vm1521_vm15 = vcmp.gt.f32.partialorder %v1515_v27, 1.0 }
 0x4e2   : > { %v1525_v3 = vsel %vm1521_vm15, %v1501_v5, %v1489_v59  ;;  %v1529_v34 = vsel %vm1521_vm15, %v1493_v44, %v1501_v5 }
 0x4e3   : > { %v1533_v21 = vadd.f32 %v1529_v34, %v1525_v3  ;;  %v1540_v61 = vsub.f32 %v4398_v30, %v1536_v40 }
 0x4e5   : > { %v1537_v37 = vmul.f32 0.5, %v1533_v21  ;;  %v1544_v19 = vmax.f32 %v1540_v61, 0.0 }
 0x4e7   : > { %1548 = vadd.xlane.f32.xlu0 %v1544_v19  ;;  %v1541_v62 = vsub.f32 %v4404_v58, %v1537_v37 }
 0x4e9   : > { %v1545_v54 = vmax.f32 %v1541_v62, 0.0 }
 0x4eb   : > { %1550 = vadd.xlane.f32.xlu1 %v1545_v54 }
 0x4fc   : > { %v1517_v12 = vpop.xlane.xlu0 %1516 }
 0x4fd   : > { %vm1522_vm1 = vcmp.gt.f32.partialorder %v1517_v12, 1.0 }
 0x4fe   : > { %v1526_v1 = vsel %vm1522_vm1, %v1502_v8, %v1490_v0  ;;  %v1530_v10 = vsel %vm1522_vm1, %v1494_v39, %v1502_v8 }
 0x4ff   : > { %v1534_v9 = vadd.f32 %v1530_v10, %v1526_v1 }
 0x500   : > { %v1519_v43 = vpop.xlane.xlu1 %1518 }
 0x501   : > { %v1538_v52 = vmul.f32 0.5, %v1534_v9  ;;  %vm1523_vm0 = vcmp.gt.f32.partialorder %v1519_v43, 1.0 }
 0x502   : > { %v1527_v45 = vsel %vm1523_vm0, %v1503_v15, %v1491_v17  ;;  %v1531_v11 = vsel %vm1523_vm0, %v1495_v24, %v1503_v15 }
 0x503   : > { %v1535_v16 = vadd.f32 %v1531_v11, %v1527_v45  ;;  %v1542_v33 = vsub.f32 %v4400_v36, %v1538_v52 }
 0x505   : > { %v1539_v31 = vmul.f32 0.5, %v1535_v16  ;;  %v1546_v4 = vmax.f32 %v1542_v33, 0.0 }
 0x507   : > { %1552 = vadd.xlane.f32.xlu0 %v1546_v4  ;;  %v1543_v35 = vsub.f32 %v4406_v51, %v1539_v31 }
 0x509   : > { %v1547_v2 = vmax.f32 %v1543_v35, 0.0 }
 0x50b   : > { %1554 = vadd.xlane.f32.xlu1 %v1547_v2 }
 0x574   : > { %v1549_v42 = vpop.xlane.xlu0 %1548 }
 0x575   : > { %vm1556_vm2 = vcmp.gt.f32.partialorder %v1549_v42, 1.0 }
 0x576   : > { %v1560_v20 = vsel %vm1556_vm2, %v1536_v40, %v1524_v13  ;;  %v1564_v63 = vsel %vm1556_vm2, %v1528_v29, %v1536_v40 }
 0x577   : > { %v1568_v56 = vadd.f32 %v1564_v63, %v1560_v20 }
 0x578   : > { %v1551_v48 = vpop.xlane.xlu1 %1550 }
 0x579   : > { %v1572_v6 = vmul.f32 0.5, %v1568_v56  ;;  %vm1557_vm3 = vcmp.gt.f32.partialorder %v1551_v48, 1.0 }
 0x57a   : > { %v1561_v49 = vsel %vm1557_vm3, %v1537_v37, %v1525_v3  ;;  %v1565_v50 = vsel %vm1557_vm3, %v1529_v34, %v1537_v37 }
 0x57b   : > { %v1569_v59 = vadd.f32 %v1565_v50, %v1561_v49  ;;  %v1576_v0 = vsub.f32 %v4398_v30, %v1572_v6 }
 0x57d   : > { %v1573_v26 = vmul.f32 0.5, %v1569_v59  ;;  %v1580_v28 = vmax.f32 %v1576_v0, 0.0 }
 0x57f   : > { %1584 = vadd.xlane.f32.xlu0 %v1580_v28  ;;  %v1577_v18 = vsub.f32 %v4404_v58, %v1573_v26 }
 0x581   : > { %v1581_v46 = vmax.f32 %v1577_v18, 0.0 }
 0x583   : > { %1586 = vadd.xlane.f32.xlu1 %v1581_v46 }
 0x594   : > { %v1553_v23 = vpop.xlane.xlu0 %1552 }
 0x595   : > { %vm1558_vm4 = vcmp.gt.f32.partialorder %v1553_v23, 1.0 }
 0x596   : > { %v1562_v32 = vsel %vm1558_vm4, %v1538_v52, %v1526_v1  ;;  %v1566_v14 = vsel %vm1558_vm4, %v1530_v10, %v1538_v52 }
 0x597   : > { %v1570_v44 = vadd.f32 %v1566_v14, %v1562_v32 }
 0x598   : > { %v1555_v39 = vpop.xlane.xlu1 %1554 }
 0x599   : > { %v1574_v25 = vmul.f32 0.5, %v1570_v44  ;;  %vm1559_vm5 = vcmp.gt.f32.partialorder %v1555_v39, 1.0 }
 0x59a   : > { %v1563_v22 = vsel %vm1559_vm5, %v1539_v31, %v1527_v45  ;;  %v1567_v5 = vsel %vm1559_vm5, %v1531_v11, %v1539_v31 }
 0x59b   : > { %v1571_v8 = vadd.f32 %v1567_v5, %v1563_v22  ;;  %v1578_v17 = vsub.f32 %v4400_v36, %v1574_v25 }
 0x59d   : > { %v1575_v24 = vmul.f32 0.5, %v1571_v8  ;;  %v1582_v7 = vmax.f32 %v1578_v17, 0.0 }
 0x59f   : > { %1588 = vadd.xlane.f32.xlu0 %v1582_v7  ;;  %v1579_v55 = vsub.f32 %v4406_v51, %v1575_v24 }
 0x5a1   : > { %v1583_v15 = vmax.f32 %v1579_v55, 0.0 }
 0x5a3   : > { %1590 = vadd.xlane.f32.xlu1 %v1583_v15 }
 0x60c   : > { %v1585_v57 = vpop.xlane.xlu0 %1584 }
 0x60d   : > { %vm1592_vm6 = vcmp.gt.f32.partialorder %v1585_v57, 1.0 }
 0x60e   : > { %v1596_v47 = vsel %vm1592_vm6, %v1572_v6, %v1560_v20  ;;  %v1600_v53 = vsel %vm1592_vm6, %v1564_v63, %v1572_v6 }
 0x60f   : > { %v1604_v38 = vadd.f32 %v1600_v53, %v1596_v47 }
 0x610   : > { %v1587_v41 = vpop.xlane.xlu1 %1586 }
 0x611   : > { %v1608_v29 = vmul.f32 0.5, %v1604_v38  ;;  %vm1593_vm7 = vcmp.gt.f32.partialorder %v1587_v41, 1.0 }
 0x612   : > { %v1597_v60 = vsel %vm1593_vm7, %v1573_v26, %v1561_v49  ;;  %v1601_v27 = vsel %vm1593_vm7, %v1565_v50, %v1573_v26 }
 0x613   : > { %v1605_v3 = vadd.f32 %v1601_v27, %v1597_v60  ;;  %v1612_v1 = vsub.f32 %v4398_v30, %v1608_v29 }
 0x615   : > { %v1609_v21 = vmul.f32 0.5, %v1605_v3  ;;  %v1616_v61 = vmax.f32 %v1612_v1, 0.0 }
 0x617   : > { %1620 = vadd.xlane.f32.xlu0 %v1616_v61  ;;  %v1613_v19 = vsub.f32 %v4404_v58, %v1609_v21 }
 0x619   : > { %v1617_v16 = vmax.f32 %v1613_v19, 0.0 }
 0x61b   : > { %1622 = vadd.xlane.f32.xlu1 %v1617_v16 }
 0x62c   : > { %v1589_v13 = vpop.xlane.xlu0 %1588 }
 0x62d   : > { %vm1594_vm8 = vcmp.gt.f32.partialorder %v1589_v13, 1.0 }
 0x62e   : > { %v1598_v12 = vsel %vm1594_vm8, %v1574_v25, %v1562_v32  ;;  %v1602_v40 = vsel %vm1594_vm8, %v1566_v14, %v1574_v25 }
 0x62f   : > { %v1606_v34 = vadd.f32 %v1602_v40, %v1598_v12 }
 0x630   : > { %v1591_v10 = vpop.xlane.xlu1 %1590 }
 0x631   : > { %v1610_v9 = vmul.f32 0.5, %v1606_v34  ;;  %vm1595_vm9 = vcmp.gt.f32.partialorder %v1591_v10, 1.0 }
 0x632   : > { %v1599_v43 = vsel %vm1595_vm9, %v1575_v24, %v1563_v22  ;;  %v1603_v37 = vsel %vm1595_vm9, %v1567_v5, %v1575_v24 }
 0x633   : > { %v1607_v52 = vadd.f32 %v1603_v37, %v1599_v43  ;;  %v1614_v45 = vsub.f32 %v4400_v36, %v1610_v9 }
 0x635   : > { %v1611_v11 = vmul.f32 0.5, %v1607_v52  ;;  %v1618_v62 = vmax.f32 %v1614_v45, 0.0 }
 0x637   : > { %1624 = vadd.xlane.f32.xlu0 %v1618_v62  ;;  %v1615_v33 = vsub.f32 %v4406_v51, %v1611_v11 }
 0x639   : > { %v1619_v31 = vmax.f32 %v1615_v33, 0.0 }
 0x63b   : > { %1626 = vadd.xlane.f32.xlu1 %v1619_v31 }
 0x6a4   : > { %v1621_v54 = vpop.xlane.xlu0 %1620 }
 0x6a5   : > { %vm1628_vm10 = vcmp.gt.f32.partialorder %v1621_v54, 1.0 }
 0x6a6   : > { %v1632_v4 = vsel %vm1628_vm10, %v1608_v29, %v1596_v47  ;;  %v1636_v35 = vsel %vm1628_vm10, %v1600_v53, %v1608_v29 }
 0x6a7   : > { %v1640_v2 = vadd.f32 %v1636_v35, %v1632_v4 }
 0x6a8   : > { %v1623_v42 = vpop.xlane.xlu1 %1622 }
 0x6a9   : > { %v1644_v63 = vmul.f32 0.5, %v1640_v2  ;;  %vm1629_vm11 = vcmp.gt.f32.partialorder %v1623_v42, 1.0 }
 0x6aa   : > { %v1633_v56 = vsel %vm1629_vm11, %v1609_v21, %v1597_v60  ;;  %v1637_v48 = vsel %vm1629_vm11, %v1601_v27, %v1609_v21 }
 0x6ab   : > { %v1641_v49 = vadd.f32 %v1637_v48, %v1633_v56  ;;  %v1648_v32 = vsub.f32 %v4398_v30, %v1644_v63 }
 0x6ad   : > { %v1645_v59 = vmul.f32 0.5, %v1641_v49  ;;  %v1652_v0 = vmax.f32 %v1648_v32, 0.0 }
 0x6af   : > { %1656 = vadd.xlane.f32.xlu0 %v1652_v0  ;;  %v1649_v28 = vsub.f32 %v4404_v58, %v1645_v59 }
 0x6b1   : > { %v1653_v8 = vmax.f32 %v1649_v28, 0.0 }
 0x6b3   : > { %1658 = vadd.xlane.f32.xlu1 %v1653_v8 }
 0x6c4   : > { %v1625_v20 = vpop.xlane.xlu0 %1624 }
 0x6c5   : > { %vm1630_vm12 = vcmp.gt.f32.partialorder %v1625_v20, 1.0 }
 0x6c6   : > { %v1634_v23 = vsel %vm1630_vm12, %v1610_v9, %v1598_v12  ;;  %v1638_v6 = vsel %vm1630_vm12, %v1602_v40, %v1610_v9 }
 0x6c7   : > { %v1642_v50 = vadd.f32 %v1638_v6, %v1634_v23 }
 0x6c8   : > { %v1627_v14 = vpop.xlane.xlu1 %1626 }
 0x6c9   : > { %v1646_v44 = vmul.f32 0.5, %v1642_v50  ;;  %vm1631_vm13 = vcmp.gt.f32.partialorder %v1627_v14, 1.0 }
 0x6ca   : > { %v1635_v39 = vsel %vm1631_vm13, %v1611_v11, %v1599_v43  ;;  %v1639_v26 = vsel %vm1631_vm13, %v1603_v37, %v1611_v11 }
 0x6cb   : > { %v1643_v25 = vadd.f32 %v1639_v26, %v1635_v39  ;;  %v1650_v22 = vsub.f32 %v4400_v36, %v1646_v44 }
 0x6cd   : > { %v1647_v5 = vmul.f32 0.5, %v1643_v25  ;;  %v1654_v18 = vmax.f32 %v1650_v22, 0.0 }
 0x6cf   : > { %1660 = vadd.xlane.f32.xlu0 %v1654_v18  ;;  %v1651_v17 = vsub.f32 %v4406_v51, %v1647_v5 }
 0x6d1   : > { %v1655_v24 = vmax.f32 %v1651_v17, 0.0 }
 0x6d3   : > { %1662 = vadd.xlane.f32.xlu1 %v1655_v24 }
 0x73c   : > { %v1657_v46 = vpop.xlane.xlu0 %1656 }
 0x73d   : > { %vm1664_vm14 = vcmp.gt.f32.partialorder %v1657_v46, 1.0 }
 0x73e   : > { %v1668_v7 = vsel %vm1664_vm14, %v1644_v63, %v1632_v4  ;;  %v1672_v55 = vsel %vm1664_vm14, %v1636_v35, %v1644_v63 }
 0x73f   : > { %v1676_v15 = vadd.f32 %v1672_v55, %v1668_v7 }
 0x740   : > { %v1659_v57 = vpop.xlane.xlu1 %1658 }
 0x741   : > { %v1680_v53 = vmul.f32 0.5, %v1676_v15  ;;  %vm1665_vm15 = vcmp.gt.f32.partialorder %v1659_v57, 1.0 }
 0x742   : > { %v1669_v38 = vsel %vm1665_vm15, %v1645_v59, %v1633_v56  ;;  %v1673_v41 = vsel %vm1665_vm15, %v1637_v48, %v1645_v59 }
 0x743   : > { %v1677_v60 = vadd.f32 %v1673_v41, %v1669_v38  ;;  %v1684_v12 = vsub.f32 %v4398_v30, %v1680_v53 }
 0x745   : > { %v1681_v3 = vmul.f32 0.5, %v1677_v60  ;;  %v1688_v1 = vmax.f32 %v1684_v12, 0.0 }
 0x747   : > { %1692 = vadd.xlane.f32.xlu0 %v1688_v1  ;;  %v1685_v61 = vsub.f32 %v4404_v58, %v1681_v3 }
 0x749   : > { %v1689_v52 = vmax.f32 %v1685_v61, 0.0 }
 0x74b   : > { %1694 = vadd.xlane.f32.xlu1 %v1689_v52 }
 0x75c   : > { %v1661_v47 = vpop.xlane.xlu0 %1660 }
 0x75d   : > { %vm1666_vm1 = vcmp.gt.f32.partialorder %v1661_v47, 1.0 }
 0x75e   : > { %v1670_v13 = vsel %vm1666_vm1, %v1646_v44, %v1634_v23  ;;  %v1674_v29 = vsel %vm1666_vm1, %v1638_v6, %v1646_v44 }
 0x75f   : > { %v1678_v27 = vadd.f32 %v1674_v29, %v1670_v13 }
 0x760   : > { %v1663_v40 = vpop.xlane.xlu1 %1662 }
 0x761   : > { %v1682_v34 = vmul.f32 0.5, %v1678_v27  ;;  %vm1667_vm0 = vcmp.gt.f32.partialorder %v1663_v40, 1.0 }
 0x762   : > { %v1671_v10 = vsel %vm1667_vm0, %v1647_v5, %v1635_v39  ;;  %v1675_v21 = vsel %vm1667_vm0, %v1639_v26, %v1647_v5 }
 0x763   : > { %v1679_v9 = vadd.f32 %v1675_v21, %v1671_v10  ;;  %v1686_v43 = vsub.f32 %v4400_v36, %v1682_v34 }
 0x765   : > { %v1683_v37 = vmul.f32 0.5, %v1679_v9  ;;  %v1690_v19 = vmax.f32 %v1686_v43, 0.0 }
 0x767   : > { %1696 = vadd.xlane.f32.xlu0 %v1690_v19  ;;  %v1687_v45 = vsub.f32 %v4406_v51, %v1683_v37 }
 0x769   : > { %v1691_v11 = vmax.f32 %v1687_v45, 0.0 }
 0x76b   : > { %1698 = vadd.xlane.f32.xlu1 %v1691_v11 }
 0x7d4   : > { %v1693_v16 = vpop.xlane.xlu0 %1692 }
 0x7d5   : > { %vm1700_vm2 = vcmp.gt.f32.partialorder %v1693_v16, 1.0 }
 0x7d6   : > { %v1704_v62 = vsel %vm1700_vm2, %v1680_v53, %v1668_v7  ;;  %v1708_v33 = vsel %vm1700_vm2, %v1672_v55, %v1680_v53 }
 0x7d7   : > { %v1712_v31 = vadd.f32 %v1708_v33, %v1704_v62 }
 0x7d8   : > { %v1695_v54 = vpop.xlane.xlu1 %1694 }
 0x7d9   : > { %v1716_v35 = vmul.f32 0.5, %v1712_v31  ;;  %vm1701_vm3 = vcmp.gt.f32.partialorder %v1695_v54, 1.0 }
 0x7da   : > { %v1705_v2 = vsel %vm1701_vm3, %v1681_v3, %v1669_v38  ;;  %v1709_v42 = vsel %vm1701_vm3, %v1673_v41, %v1681_v3 }
 0x7db   : > { %v1713_v56 = vadd.f32 %v1709_v42, %v1705_v2  ;;  %v1720_v23 = vsub.f32 %v4398_v30, %v1716_v35 }
 0x7dd   : > { %v1717_v49 = vmul.f32 0.5, %v1713_v56  ;;  %v1724_v32 = vmax.f32 %v1720_v23, 0.0 }
 0x7df   : > { %1728 = vadd.xlane.f32.xlu0 %v1724_v32  ;;  %v1721_v0 = vsub.f32 %v4404_v58, %v1717_v49 }
 0x7e1   : > { %v1725_v25 = vmax.f32 %v1721_v0, 0.0 }
 0x7e3   : > { %1730 = vadd.xlane.f32.xlu1 %v1725_v25 }
 0x7f4   : > { %v1697_v4 = vpop.xlane.xlu0 %1696 }
 0x7f5   : > { %vm1702_vm4 = vcmp.gt.f32.partialorder %v1697_v4, 1.0 }
 0x7f6   : > { %v1706_v20 = vsel %vm1702_vm4, %v1682_v34, %v1670_v13  ;;  %v1710_v63 = vsel %vm1702_vm4, %v1674_v29, %v1682_v34 }
 0x7f7   : > { %v1714_v48 = vadd.f32 %v1710_v63, %v1706_v20 }
 0x7f8   : > { %v1699_v6 = vpop.xlane.xlu1 %1698 }
 0x7f9   : > { %v1718_v50 = vmul.f32 0.5, %v1714_v48  ;;  %vm1703_vm5 = vcmp.gt.f32.partialorder %v1699_v6, 1.0 }
 0x7fa   : > { %v1707_v14 = vsel %vm1703_vm5, %v1683_v37, %v1671_v10  ;;  %v1711_v59 = vsel %vm1703_vm5, %v1675_v21, %v1683_v37 }
 0x7fb   : > { %v1715_v44 = vadd.f32 %v1711_v59, %v1707_v14  ;;  %v1722_v39 = vsub.f32 %v4400_v36, %v1718_v50 }
 0x7fd   : > { %v1719_v26 = vmul.f32 0.5, %v1715_v44  ;;  %v1726_v28 = vmax.f32 %v1722_v39, 0.0 }
 0x7ff   : > { %1732 = vadd.xlane.f32.xlu0 %v1726_v28  ;;  %v1723_v22 = vsub.f32 %v4406_v51, %v1719_v26 }
 0x801   : > { %v1727_v5 = vmax.f32 %v1723_v22, 0.0 }
 0x803   : > { %1734 = vadd.xlane.f32.xlu1 %v1727_v5 }
 0x86c   : > { %v1729_v8 = vpop.xlane.xlu0 %1728 }
 0x86d   : > { %vm1736_vm6 = vcmp.gt.f32.partialorder %v1729_v8, 1.0 }
 0x86e   : > { %v1740_v18 = vsel %vm1736_vm6, %v1716_v35, %v1704_v62  ;;  %v1744_v17 = vsel %vm1736_vm6, %v1708_v33, %v1716_v35 }
 0x86f   : > { %v1748_v24 = vadd.f32 %v1744_v17, %v1740_v18 }
 0x870   : > { %v1731_v46 = vpop.xlane.xlu1 %1730 }
 0x871   : > { %v1752_v55 = vmul.f32 0.5, %v1748_v24  ;;  %vm1737_vm7 = vcmp.gt.f32.partialorder %v1731_v46, 1.0 }
 0x872   : > { %v1741_v15 = vsel %vm1737_vm7, %v1717_v49, %v1705_v2  ;;  %v1745_v57 = vsel %vm1737_vm7, %v1709_v42, %v1717_v49 }
 0x873   : > { %v1749_v38 = vadd.f32 %v1745_v57, %v1741_v15  ;;  %v1756_v13 = vsub.f32 %v4398_v30, %v1752_v55 }
 0x875   : > { %v1753_v60 = vmul.f32 0.5, %v1749_v38  ;;  %v1760_v12 = vmax.f32 %v1756_v13, 0.0 }
 0x877   : > { %1764 = vadd.xlane.f32.xlu0 %v1760_v12  ;;  %v1757_v1 = vsub.f32 %v4404_v58, %v1753_v60 }
 0x879   : > { %v1761_v9 = vmax.f32 %v1757_v1, 0.0 }
 0x87b   : > { %1766 = vadd.xlane.f32.xlu1 %v1761_v9 }
 0x88c   : > { %v1733_v7 = vpop.xlane.xlu0 %1732 }
 0x88d   : > { %vm1738_vm8 = vcmp.gt.f32.partialorder %v1733_v7, 1.0 }
 0x88e   : > { %v1742_v47 = vsel %vm1738_vm8, %v1718_v50, %v1706_v20  ;;  %v1746_v53 = vsel %vm1738_vm8, %v1710_v63, %v1718_v50 }
 0x88f   : > { %v1750_v41 = vadd.f32 %v1746_v53, %v1742_v47 }
 0x890   : > { %v1735_v29 = vpop.xlane.xlu1 %1734 }
 0x891   : > { %v1754_v27 = vmul.f32 0.5, %v1750_v41  ;;  %vm1739_vm9 = vcmp.gt.f32.partialorder %v1735_v29, 1.0 }
 0x892   : > { %v1743_v40 = vsel %vm1739_vm9, %v1719_v26, %v1707_v14  ;;  %v1747_v3 = vsel %vm1739_vm9, %v1711_v59, %v1719_v26 }
 0x893   : > { %v1751_v34 = vadd.f32 %v1747_v3, %v1743_v40  ;;  %v1758_v10 = vsub.f32 %v4400_v36, %v1754_v27 }
 0x895   : > { %v1755_v21 = vmul.f32 0.5, %v1751_v34  ;;  %v1762_v61 = vmax.f32 %v1758_v10, 0.0 }
 0x897   : > { %1768 = vadd.xlane.f32.xlu0 %v1762_v61  ;;  %v1759_v43 = vsub.f32 %v4406_v51, %v1755_v21 }
 0x899   : > { %v1763_v37 = vmax.f32 %v1759_v43, 0.0 }
 0x89b   : > { %1770 = vadd.xlane.f32.xlu1 %v1763_v37 }
 0x904   : > { %v1765_v52 = vpop.xlane.xlu0 %1764 }
 0x905   : > { %vm1772_vm10 = vcmp.gt.f32.partialorder %v1765_v52, 1.0 }
 0x906   : > { %v1776_v19 = vsel %vm1772_vm10, %v1752_v55, %v1740_v18  ;;  %v1780_v45 = vsel %vm1772_vm10, %v1744_v17, %v1752_v55 }
 0x907   : > { %v1784_v11 = vadd.f32 %v1780_v45, %v1776_v19 }
 0x908   : > { %v1767_v16 = vpop.xlane.xlu1 %1766 }
 0x909   : > { %v1788_v33 = vmul.f32 0.5, %v1784_v11  ;;  %vm1773_vm11 = vcmp.gt.f32.partialorder %v1767_v16, 1.0 }
 0x90a   : > { %v1777_v31 = vsel %vm1773_vm11, %v1753_v60, %v1741_v15  ;;  %v1781_v54 = vsel %vm1773_vm11, %v1745_v57, %v1753_v60 }
 0x90b   : > { %v1785_v2 = vadd.f32 %v1781_v54, %v1777_v31  ;;  %v1792_v20 = vsub.f32 %v4398_v30, %v1788_v33 }
 0x90d   : > { %v1789_v56 = vmul.f32 0.5, %v1785_v2  ;;  %v1796_v23 = vmax.f32 %v1792_v20, 0.0 }
 0x90f   : > { %1800 = vadd.xlane.f32.xlu0 %v1796_v23  ;;  %v1793_v32 = vsub.f32 %v4404_v58, %v1789_v56 }
 0x911   : > { %v1797_v44 = vmax.f32 %v1793_v32, 0.0 }
 0x913   : > { %1802 = vadd.xlane.f32.xlu1 %v1797_v44 }
 0x924   : > { %v1769_v62 = vpop.xlane.xlu0 %1768 }
 0x925   : > { %vm1774_vm12 = vcmp.gt.f32.partialorder %v1769_v62, 1.0 }
 0x926   : > { %v1778_v4 = vsel %vm1774_vm12, %v1754_v27, %v1742_v47  ;;  %v1782_v35 = vsel %vm1774_vm12, %v1746_v53, %v1754_v27 }
 0x927   : > { %v1786_v42 = vadd.f32 %v1782_v35, %v1778_v4 }
 0x928   : > { %v1771_v63 = vpop.xlane.xlu1 %1770 }
 0x929   : > { %v1790_v48 = vmul.f32 0.5, %v1786_v42  ;;  %vm1775_vm13 = vcmp.gt.f32.partialorder %v1771_v63, 1.0 }
 0x92a   : > { %v1779_v6 = vsel %vm1775_vm13, %v1755_v21, %v1743_v40  ;;  %v1783_v49 = vsel %vm1775_vm13, %v1747_v3, %v1755_v21 }
 0x92b   : > { %v1787_v50 = vadd.f32 %v1783_v49, %v1779_v6  ;;  %v1794_v14 = vsub.f32 %v4400_v36, %v1790_v48 }
 0x92d   : > { %v1791_v59 = vmul.f32 0.5, %v1787_v50  ;;  %v1798_v0 = vmax.f32 %v1794_v14, 0.0 }
 0x92f   : > { %1804 = vadd.xlane.f32.xlu0 %v1798_v0  ;;  %v1795_v39 = vsub.f32 %v4406_v51, %v1791_v59 }
 0x931   : > { %v1799_v26 = vmax.f32 %v1795_v39, 0.0 }
 0x933   : > { %1806 = vadd.xlane.f32.xlu1 %v1799_v26 }
 0x99c   : > { %v1801_v25 = vpop.xlane.xlu0 %1800 }
 0x99d   : > { %vm1808_vm14 = vcmp.gt.f32.partialorder %v1801_v25, 1.0 }
 0x99e   : > { %v1812_v28 = vsel %vm1808_vm14, %v1788_v33, %v1776_v19  ;;  %v1816_v22 = vsel %vm1808_vm14, %v1780_v45, %v1788_v33 }
 0x99f   : > { %v1820_v5 = vadd.f32 %v1816_v22, %v1812_v28 }
 0x9a0   : > { %v1803_v8 = vpop.xlane.xlu1 %1802 }
 0x9a1   : > { %v1824_v17 = vmul.f32 0.5, %v1820_v5  ;;  %vm1809_vm15 = vcmp.gt.f32.partialorder %v1803_v8, 1.0 }
 0x9a2   : > { %v1813_v24 = vsel %vm1809_vm15, %v1789_v56, %v1777_v31  ;;  %v1817_v46 = vsel %vm1809_vm15, %v1781_v54, %v1789_v56 }
 0x9a3   : > { %v1821_v15 = vadd.f32 %v1817_v46, %v1813_v24  ;;  %v1828_v47 = vsub.f32 %v4398_v30, %v1824_v17 }
 0x9a5   : > { %v1825_v38 = vmul.f32 0.5, %v1821_v15  ;;  %v1832_v13 = vmax.f32 %v1828_v47, 0.0 }
 0x9a7   : > { %1836 = vadd.xlane.f32.xlu0 %v1832_v13  ;;  %v1829_v12 = vsub.f32 %v4404_v58, %v1825_v38 }
 0x9a9   : > { %v1833_v34 = vmax.f32 %v1829_v12, 0.0  ;;  %v4475_v12 = vld [vmem:[#allocation2 + $0x18] sm:$0xff] }
 0x9ab   : > { %1838 = vadd.xlane.f32.xlu1 %v1833_v34 }
 0x9bc   : > { %v1805_v18 = vpop.xlane.xlu0 %1804 }
 0x9bd   : > { %vm1810_vm1 = vcmp.gt.f32.partialorder %v1805_v18, 1.0 }
 0x9be   : > { %v1814_v7 = vsel %vm1810_vm1, %v1790_v48, %v1778_v4  ;;  %v1818_v55 = vsel %vm1810_vm1, %v1782_v35, %v1790_v48 }
 0x9bf   : > { %v1822_v57 = vadd.f32 %v1818_v55, %v1814_v7 }
 0x9c0   : > { %v1807_v53 = vpop.xlane.xlu1 %1806 }
 0x9c1   : > { %v1826_v41 = vmul.f32 0.5, %v1822_v57  ;;  %vm1811_vm0 = vcmp.gt.f32.partialorder %v1807_v53, 1.0  ;;  %v4469_v53 = vld [vmem:[#allocation2 + $0x8] sm:$0xff] }
 0x9c2   : > { %v1815_v29 = vsel %vm1811_vm0, %v1791_v59, %v1779_v6  ;;  %v1819_v60 = vsel %vm1811_vm0, %v1783_v49, %v1791_v59 }
 0x9c3   : > { %v1823_v27 = vadd.f32 %v1819_v60, %v1815_v29  ;;  %v1830_v40 = vsub.f32 %v4400_v36, %v1826_v41 }
 0x9c5   : > { %v1827_v3 = vmul.f32 0.5, %v1823_v27  ;;  %v1834_v1 = vmax.f32 %v1830_v40, 0.0 }
 0x9c7   : > { %1840 = vadd.xlane.f32.xlu0 %v1834_v1  ;;  %v1831_v10 = vsub.f32 %v4406_v51, %v1827_v3 }
 0x9c9   : > { %v1835_v21 = vmax.f32 %v1831_v10, 0.0 }
 0x9cb   : > { %1842 = vadd.xlane.f32.xlu1 %v1835_v21 }
 0xa34   : > { %v1837_v9 = vpop.xlane.xlu0 %1836 }
 0xa35   : > { %vm1844_vm2 = vcmp.gt.f32.partialorder %v1837_v9, 1.0 }
 0xa36   : > { %v1848_v61 = vsel %vm1844_vm2, %v1824_v17, %v1812_v28  ;;  %v1852_v43 = vsel %vm1844_vm2, %v1816_v22, %v1824_v17  ;;  %v4466_v17 = vld [vmem:[#allocation2] sm:$0xff] }
 0xa37   : > { %v1856_v37 = vadd.f32 %v1852_v43, %v1848_v61 }
 0xa38   : > { %v1839_v52 = vpop.xlane.xlu1 %1838 }
 0xa39   : > { %v1860_v45 = vmul.f32 0.5, %v1856_v37  ;;  %vm1845_vm3 = vcmp.gt.f32.partialorder %v1839_v52, 1.0 }
 0xa3a   : > { %v1849_v11 = vsel %vm1845_vm3, %v1825_v38, %v1813_v24  ;;  %v1853_v16 = vsel %vm1845_vm3, %v1817_v46, %v1825_v38 }
 0xa3b   : > { %v1857_v31 = vadd.f32 %v1853_v16, %v1849_v11  ;;  %v1864_v4 = vsub.f32 %v4398_v30, %v1860_v45 }
 0xa3d   : > { %v1861_v2 = vmul.f32 0.5, %v1857_v31  ;;  %v1868_v20 = vmax.f32 %v1864_v4, 0.0 }
 0xa3f   : > { %1872 = vadd.xlane.f32.xlu0 %v1868_v20  ;;  %v1865_v23 = vsub.f32 %v4404_v58, %v1861_v2 }
 0xa41   : > { %v1869_v50 = vmax.f32 %v1865_v23, 0.0 }
 0xa43   : > { %1874 = vadd.xlane.f32.xlu1 %v1869_v50 }
 0xa54   : > { %v1841_v19 = vpop.xlane.xlu0 %1840 }
 0xa55   : > { %vm1846_vm4 = vcmp.gt.f32.partialorder %v1841_v19, 1.0 }
 0xa56   : > { %v1850_v62 = vsel %vm1846_vm4, %v1826_v41, %v1814_v7  ;;  %v1854_v33 = vsel %vm1846_vm4, %v1818_v55, %v1826_v41  ;;  %v4472_v41 = vld [vmem:[#allocation2 + $0x10] sm:$0xff] }
 0xa57   : > { %v1858_v54 = vadd.f32 %v1854_v33, %v1850_v62 }
 0xa58   : > { %v1843_v35 = vpop.xlane.xlu1 %1842 }
 0xa59   : > { %v1862_v42 = vmul.f32 0.5, %v1858_v54  ;;  %vm1847_vm5 = vcmp.gt.f32.partialorder %v1843_v35, 1.0 }
 0xa5a   : > { %v1851_v63 = vsel %vm1847_vm5, %v1827_v3, %v1815_v29  ;;  %v1855_v56 = vsel %vm1847_vm5, %v1819_v60, %v1827_v3 }
 0xa5b   : > { %v1859_v48 = vadd.f32 %v1855_v56, %v1851_v63  ;;  %v1866_v6 = vsub.f32 %v4400_v36, %v1862_v42 }
 0xa5d   : > { %v1863_v49 = vmul.f32 0.5, %v1859_v48  ;;  %v1870_v32 = vmax.f32 %v1866_v6, 0.0 }
 0xa5f   : > { %1876 = vadd.xlane.f32.xlu0 %v1870_v32  ;;  %v1867_v30 = vsub.f32 %v4406_v51, %v1863_v49 }
 0xa61   : > { %v1871_v14 = vmax.f32 %v1867_v30, 0.0 }
 0xa63   : > { %1878 = vadd.xlane.f32.xlu1 %v1871_v14 }
 0xacc   : > { %v1873_v59 = vpop.xlane.xlu0 %1872 }
 0xacd   : > { %vm1880_vm6 = vcmp.gt.f32.partialorder %v1873_v59, 1.0 }
 0xace   : > { %v1884_v44 = vsel %vm1880_vm6, %v1860_v45, %v1848_v61  ;;  %v1888_v0 = vsel %vm1880_vm6, %v1852_v43, %v1860_v45 }
 0xacf   : > { %v1892_v39 = vadd.f32 %v1888_v0, %v1884_v44 }
 0xad0   : > { %v1875_v26 = vpop.xlane.xlu1 %1874 }
 0xad1   : > { %v1896_v28 = vmul.f32 0.5, %v1892_v39  ;;  %vm1881_vm7 = vcmp.gt.f32.partialorder %v1875_v26, 1.0 }
 0xad2   : > { %v1885_v36 = vsel %vm1881_vm7, %v1861_v2, %v1849_v11  ;;  %v1889_v58 = vsel %vm1881_vm7, %v1853_v16, %v1861_v2 }
 0xad3   : > { %v1893_v8 = vadd.f32 %v1889_v58, %v1885_v36  ;;  %v1900_v51 = vsub.f32 %v4466_v17, %v1896_v28 }
 0xad5   : > { %v1897_v46 = vmul.f32 0.5, %v1893_v8  ;;  %v1904_v55 = vmax.f32 %v1900_v51, 0.0 }
 0xad7   : > { %1908 = vadd.xlane.f32.xlu0 %v1904_v55  ;;  %v1901_v38 = vsub.f32 %v4469_v53, %v1897_v46 }
 0xad9   : > { %v1905_v60 = vmax.f32 %v1901_v38, 0.0 }
 0xadb   : > { %1910 = vadd.xlane.f32.xlu1 %v1905_v60 }
 0xaec   : > { %v1877_v25 = vpop.xlane.xlu0 %1876 }
 0xaed   : > { %vm1882_vm8 = vcmp.gt.f32.partialorder %v1877_v25, 1.0 }
 0xaee   : > { %v1886_v22 = vsel %vm1882_vm8, %v1862_v42, %v1850_v62  ;;  %v1890_v5 = vsel %vm1882_vm8, %v1854_v33, %v1862_v42 }
 0xaef   : > { %v1894_v18 = vadd.f32 %v1890_v5, %v1886_v22 }
 0xaf0   : > { %v1879_v24 = vpop.xlane.xlu1 %1878 }
 0xaf1   : > { %v1898_v7 = vmul.f32 0.5, %v1894_v18  ;;  %vm1883_vm9 = vcmp.gt.f32.partialorder %v1879_v24, 1.0 }
 0xaf2   : > { %v1887_v15 = vsel %vm1883_vm9, %v1863_v49, %v1851_v63  ;;  %v1891_v57 = vsel %vm1883_vm9, %v1855_v56, %v1863_v49 }
 0xaf3   : > { %v1895_v47 = vadd.f32 %v1891_v57, %v1887_v15  ;;  %v1902_v13 = vsub.f32 %v4472_v41, %v1898_v7 }
 0xaf5   : > { %v1899_v29 = vmul.f32 0.5, %v1895_v47  ;;  %v1906_v27 = vmax.f32 %v1902_v13, 0.0 }
 0xaf7   : > { %1912 = vadd.xlane.f32.xlu0 %v1906_v27  ;;  %v1903_v40 = vsub.f32 %v4475_v12, %v1899_v29 }
 0xaf9   : > { %v1907_v3 = vmax.f32 %v1903_v40, 0.0 }
 0xafb   : > { %1914 = vadd.xlane.f32.xlu1 %v1907_v3 }
 0xb64   : > { %v1909_v34 = vpop.xlane.xlu0 %1908 }
 0xb65   : > { %vm1916_vm10 = vcmp.gt.f32.partialorder %v1909_v34, 1.0 }
 0xb66   : > { %v1920_v1 = vsel %vm1916_vm10, %v1896_v28, %v1884_v44  ;;  %v1924_v10 = vsel %vm1916_vm10, %v1888_v0, %v1896_v28 }
 0xb67   : > { %v1928_v21 = vadd.f32 %v1924_v10, %v1920_v1 }
 0xb68   : > { %v1911_v9 = vpop.xlane.xlu1 %1910 }
 0xb69   : > { %v1932_v43 = vmul.f32 0.5, %v1928_v21  ;;  %vm1917_vm11 = vcmp.gt.f32.partialorder %v1911_v9, 1.0 }
 0xb6a   : > { %v1921_v37 = vsel %vm1917_vm11, %v1897_v46, %v1885_v36  ;;  %v1925_v52 = vsel %vm1917_vm11, %v1889_v58, %v1897_v46 }
 0xb6b   : > { %v1929_v11 = vadd.f32 %v1925_v52, %v1921_v37  ;;  %v1936_v62 = vsub.f32 %v4466_v17, %v1932_v43 }
 0xb6d   : > { %v1933_v31 = vmul.f32 0.5, %v1929_v11  ;;  %v1940_v4 = vmax.f32 %v1936_v62, 0.0 }
 0xb6f   : > { %1944 = vadd.xlane.f32.xlu0 %v1940_v4  ;;  %v1937_v20 = vsub.f32 %v4469_v53, %v1933_v31 }
 0xb71   : > { %v1941_v48 = vmax.f32 %v1937_v20, 0.0 }
 0xb73   : > { %1946 = vadd.xlane.f32.xlu1 %v1941_v48 }
 0xb84   : > { %v1913_v61 = vpop.xlane.xlu0 %1912 }
 0xb85   : > { %vm1918_vm12 = vcmp.gt.f32.partialorder %v1913_v61, 1.0 }
 0xb86   : > { %v1922_v19 = vsel %vm1918_vm12, %v1898_v7, %v1886_v22  ;;  %v1926_v45 = vsel %vm1918_vm12, %v1890_v5, %v1898_v7 }
 0xb87   : > { %v1930_v16 = vadd.f32 %v1926_v45, %v1922_v19 }
 0xb88   : > { %v1915_v33 = vpop.xlane.xlu1 %1914 }
 0xb89   : > { %v1934_v54 = vmul.f32 0.5, %v1930_v16  ;;  %vm1919_vm13 = vcmp.gt.f32.partialorder %v1915_v33, 1.0 }
 0xb8a   : > { %v1923_v35 = vsel %vm1919_vm13, %v1899_v29, %v1887_v15  ;;  %v1927_v2 = vsel %vm1919_vm13, %v1891_v57, %v1899_v29 }
 0xb8b   : > { %v1931_v42 = vadd.f32 %v1927_v2, %v1923_v35  ;;  %v1938_v63 = vsub.f32 %v4472_v41, %v1934_v54 }
 0xb8d   : > { %v1935_v56 = vmul.f32 0.5, %v1931_v42  ;;  %v1942_v23 = vmax.f32 %v1938_v63, 0.0 }
 0xb8f   : > { %1948 = vadd.xlane.f32.xlu0 %v1942_v23  ;;  %v1939_v6 = vsub.f32 %v4475_v12, %v1935_v56 }
 0xb91   : > { %v1943_v49 = vmax.f32 %v1939_v6, 0.0 }
 0xb93   : > { %1950 = vadd.xlane.f32.xlu1 %v1943_v49 }
 0xbfc   : > { %v1945_v50 = vpop.xlane.xlu0 %1944 }
 0xbfd   : > { %vm1952_vm14 = vcmp.gt.f32.partialorder %v1945_v50, 1.0 }
 0xbfe   : > { %v1956_v32 = vsel %vm1952_vm14, %v1932_v43, %v1920_v1  ;;  %v1960_v30 = vsel %vm1952_vm14, %v1924_v10, %v1932_v43 }
 0xbff   : > { %v1964_v14 = vadd.f32 %v1960_v30, %v1956_v32 }
 0xc00   : > { %v1947_v59 = vpop.xlane.xlu1 %1946 }
 0xc01   : > { %v1968_v0 = vmul.f32 0.5, %v1964_v14  ;;  %vm1953_vm15 = vcmp.gt.f32.partialorder %v1947_v59, 1.0 }
 0xc02   : > { %v1957_v39 = vsel %vm1953_vm15, %v1933_v31, %v1921_v37  ;;  %v1961_v26 = vsel %vm1953_vm15, %v1925_v52, %v1933_v31 }
 0xc03   : > { %v1965_v36 = vadd.f32 %v1961_v26, %v1957_v39  ;;  %v1972_v22 = vsub.f32 %v4466_v17, %v1968_v0 }
 0xc05   : > { %v1969_v8 = vmul.f32 0.5, %v1965_v36  ;;  %v1976_v51 = vmax.f32 %v1972_v22, 0.0 }
 0xc07   : > { %1980 = vadd.xlane.f32.xlu0 %v1976_v51  ;;  %v1973_v55 = vsub.f32 %v4469_v53, %v1969_v8 }
 0xc09   : > { %v1977_v47 = vmax.f32 %v1973_v55, 0.0 }
 0xc0b   : > { %1982 = vadd.xlane.f32.xlu1 %v1977_v47 }
 0xc1c   : > { %v1949_v44 = vpop.xlane.xlu0 %1948 }
 0xc1d   : > { %vm1954_vm1 = vcmp.gt.f32.partialorder %v1949_v44, 1.0 }
 0xc1e   : > { %v1958_v25 = vsel %vm1954_vm1, %v1934_v54, %v1922_v19  ;;  %v1962_v28 = vsel %vm1954_vm1, %v1926_v45, %v1934_v54 }
 0xc1f   : > { %v1966_v58 = vadd.f32 %v1962_v28, %v1958_v25 }
 0xc20   : > { %v1951_v5 = vpop.xlane.xlu1 %1950 }
 0xc21   : > { %v1970_v18 = vmul.f32 0.5, %v1966_v58  ;;  %vm1955_vm0 = vcmp.gt.f32.partialorder %v1951_v5, 1.0 }
 0xc22   : > { %v1959_v24 = vsel %vm1955_vm0, %v1935_v56, %v1923_v35  ;;  %v1963_v46 = vsel %vm1955_vm0, %v1927_v2, %v1935_v56 }
 0xc23   : > { %v1967_v7 = vadd.f32 %v1963_v46, %v1959_v24  ;;  %v1974_v15 = vsub.f32 %v4472_v41, %v1970_v18 }
 0xc25   : > { %v1971_v57 = vmul.f32 0.5, %v1967_v7  ;;  %v1978_v38 = vmax.f32 %v1974_v15, 0.0 }
 0xc27   : > { %1984 = vadd.xlane.f32.xlu0 %v1978_v38  ;;  %v1975_v13 = vsub.f32 %v4475_v12, %v1971_v57 }
 0xc29   : > { %v1979_v29 = vmax.f32 %v1975_v13, 0.0 }
 0xc2b   : > { %1986 = vadd.xlane.f32.xlu1 %v1979_v29 }
 0xc94   : > { %v1981_v60 = vpop.xlane.xlu0 %1980 }
 0xc95   : > { %vm1988_vm2 = vcmp.gt.f32.partialorder %v1981_v60, 1.0 }
 0xc96   : > { %v1992_v27 = vsel %vm1988_vm2, %v1968_v0, %v1956_v32  ;;  %v1996_v40 = vsel %vm1988_vm2, %v1960_v30, %v1968_v0 }
 0xc97   : > { %v2000_v3 = vadd.f32 %v1996_v40, %v1992_v27 }
 0xc98   : > { %v1983_v34 = vpop.xlane.xlu1 %1982 }
 0xc99   : > { %v2004_v10 = vmul.f32 0.5, %v2000_v3  ;;  %vm1989_vm3 = vcmp.gt.f32.partialorder %v1983_v34, 1.0 }
 0xc9a   : > { %v1993_v21 = vsel %vm1989_vm3, %v1969_v8, %v1957_v39  ;;  %v1997_v9 = vsel %vm1989_vm3, %v1961_v26, %v1969_v8 }
 0xc9b   : > { %v2001_v37 = vadd.f32 %v1997_v9, %v1993_v21  ;;  %v2008_v19 = vsub.f32 %v4466_v17, %v2004_v10 }
 0xc9d   : > { %v2005_v11 = vmul.f32 0.5, %v2001_v37  ;;  %v2012_v62 = vmax.f32 %v2008_v19, 0.0 }
 0xc9f   : > { %2016 = vadd.xlane.f32.xlu0 %v2012_v62  ;;  %v2009_v4 = vsub.f32 %v4469_v53, %v2005_v11 }
 0xca1   : > { %v2013_v42 = vmax.f32 %v2009_v4, 0.0 }
 0xca3   : > { %2018 = vadd.xlane.f32.xlu1 %v2013_v42 }
 0xcb4   : > { %v1985_v1 = vpop.xlane.xlu0 %1984 }
 0xcb5   : > { %vm1990_vm4 = vcmp.gt.f32.partialorder %v1985_v1, 1.0 }
 0xcb6   : > { %v1994_v61 = vsel %vm1990_vm4, %v1970_v18, %v1958_v25  ;;  %v1998_v43 = vsel %vm1990_vm4, %v1962_v28, %v1970_v18 }
 0xcb7   : > { %v2002_v52 = vadd.f32 %v1998_v43, %v1994_v61 }
 0xcb8   : > { %v1987_v45 = vpop.xlane.xlu1 %1986 }
 0xcb9   : > { %v2006_v16 = vmul.f32 0.5, %v2002_v52  ;;  %vm1991_vm5 = vcmp.gt.f32.partialorder %v1987_v45, 1.0 }
 0xcba   : > { %v1995_v33 = vsel %vm1991_vm5, %v1971_v57, %v1959_v24  ;;  %v1999_v31 = vsel %vm1991_vm5, %v1963_v46, %v1971_v57 }
 0xcbb   : > { %v2003_v54 = vadd.f32 %v1999_v31, %v1995_v33  ;;  %v2010_v35 = vsub.f32 %v4472_v41, %v2006_v16 }
 0xcbd   : > { %v2007_v2 = vmul.f32 0.5, %v2003_v54  ;;  %v2014_v20 = vmax.f32 %v2010_v35, 0.0 }
 0xcbf   : > { %2020 = vadd.xlane.f32.xlu0 %v2014_v20  ;;  %v2011_v63 = vsub.f32 %v4475_v12, %v2007_v2 }
 0xcc1   : > { %v2015_v56 = vmax.f32 %v2011_v63, 0.0 }
 0xcc3   : > { %2022 = vadd.xlane.f32.xlu1 %v2015_v56 }
 0xd2c   : > { %v2017_v48 = vpop.xlane.xlu0 %2016 }
 0xd2d   : > { %vm2024_vm6 = vcmp.gt.f32.partialorder %v2017_v48, 1.0 }
 0xd2e   : > { %v2028_v23 = vsel %vm2024_vm6, %v2004_v10, %v1992_v27  ;;  %v2032_v6 = vsel %vm2024_vm6, %v1996_v40, %v2004_v10 }
 0xd2f   : > { %v2036_v49 = vadd.f32 %v2032_v6, %v2028_v23 }
 0xd30   : > { %v2019_v50 = vpop.xlane.xlu1 %2018 }
 0xd31   : > { %v2040_v30 = vmul.f32 0.5, %v2036_v49  ;;  %vm2025_vm7 = vcmp.gt.f32.partialorder %v2019_v50, 1.0 }
 0xd32   : > { %v2029_v14 = vsel %vm2025_vm7, %v2005_v11, %v1993_v21  ;;  %v2033_v59 = vsel %vm2025_vm7, %v1997_v9, %v2005_v11 }
 0xd33   : > { %v2037_v39 = vadd.f32 %v2033_v59, %v2029_v14  ;;  %v2044_v25 = vsub.f32 %v4466_v17, %v2040_v30 }
 0xd35   : > { %v2041_v36 = vmul.f32 0.5, %v2037_v39  ;;  %v2048_v22 = vmax.f32 %v2044_v25, 0.0 }
 0xd37   : > { %2052 = vadd.xlane.f32.xlu0 %v2048_v22  ;;  %v2045_v51 = vsub.f32 %v4469_v53, %v2041_v36 }
 0xd39   : > { %v2049_v7 = vmax.f32 %v2045_v51, 0.0 }
 0xd3b   : > { %2054 = vadd.xlane.f32.xlu1 %v2049_v7 }
 0xd4c   : > { %v2021_v32 = vpop.xlane.xlu0 %2020 }
 0xd4d   : > { %vm2026_vm8 = vcmp.gt.f32.partialorder %v2021_v32, 1.0 }
 0xd4e   : > { %v2030_v44 = vsel %vm2026_vm8, %v2006_v16, %v1994_v61  ;;  %v2034_v0 = vsel %vm2026_vm8, %v1998_v43, %v2006_v16 }
 0xd4f   : > { %v2038_v26 = vadd.f32 %v2034_v0, %v2030_v44 }
 0xd50   : > { %v2023_v28 = vpop.xlane.xlu1 %2022 }
 0xd51   : > { %v2042_v58 = vmul.f32 0.5, %v2038_v26  ;;  %vm2027_vm9 = vcmp.gt.f32.partialorder %v2023_v28, 1.0 }
 0xd52   : > { %v2031_v5 = vsel %vm2027_vm9, %v2007_v2, %v1995_v33  ;;  %v2035_v8 = vsel %vm2027_vm9, %v1999_v31, %v2007_v2 }
 0xd53   : > { %v2039_v18 = vadd.f32 %v2035_v8, %v2031_v5  ;;  %v2046_v24 = vsub.f32 %v4472_v41, %v2042_v58 }
 0xd55   : > { %v2043_v46 = vmul.f32 0.5, %v2039_v18  ;;  %v2050_v55 = vmax.f32 %v2046_v24, 0.0 }
 0xd57   : > { %2056 = vadd.xlane.f32.xlu0 %v2050_v55  ;;  %v2047_v15 = vsub.f32 %v4475_v12, %v2043_v46 }
 0xd59   : > { %v2051_v57 = vmax.f32 %v2047_v15, 0.0 }
 0xd5b   : > { %2058 = vadd.xlane.f32.xlu1 %v2051_v57 }
 0xdc4   : > { %v2053_v47 = vpop.xlane.xlu0 %2052 }
 0xdc5   : > { %vm2060_vm10 = vcmp.gt.f32.partialorder %v2053_v47, 1.0 }
 0xdc6   : > { %v2064_v38 = vsel %vm2060_vm10, %v2040_v30, %v2028_v23  ;;  %v2068_v13 = vsel %vm2060_vm10, %v2032_v6, %v2040_v30 }
 0xdc7   : > { %v2072_v29 = vadd.f32 %v2068_v13, %v2064_v38 }
 0xdc8   : > { %v2055_v60 = vpop.xlane.xlu1 %2054 }
 0xdc9   : > { %v2076_v40 = vmul.f32 0.5, %v2072_v29  ;;  %vm2061_vm11 = vcmp.gt.f32.partialorder %v2055_v60, 1.0 }
 0xdca   : > { %v2065_v3 = vsel %vm2061_vm11, %v2041_v36, %v2029_v14  ;;  %v2069_v34 = vsel %vm2061_vm11, %v2033_v59, %v2041_v36 }
 0xdcb   : > { %v2073_v21 = vadd.f32 %v2069_v34, %v2065_v3  ;;  %v2080_v61 = vsub.f32 %v4466_v17, %v2076_v40 }
 0xdcd   : > { %v2077_v37 = vmul.f32 0.5, %v2073_v21  ;;  %v2084_v19 = vmax.f32 %v2080_v61, 0.0 }
 0xdcf   : > { %2088 = vadd.xlane.f32.xlu0 %v2084_v19  ;;  %v2081_v62 = vsub.f32 %v4469_v53, %v2077_v37 }
 0xdd1   : > { %v2085_v54 = vmax.f32 %v2081_v62, 0.0 }
 0xdd3   : > { %2090 = vadd.xlane.f32.xlu1 %v2085_v54 }
 0xde4   : > { %v2057_v27 = vpop.xlane.xlu0 %2056 }
 0xde5   : > { %vm2062_vm12 = vcmp.gt.f32.partialorder %v2057_v27, 1.0 }
 0xde6   : > { %v2066_v1 = vsel %vm2062_vm12, %v2042_v58, %v2030_v44  ;;  %v2070_v10 = vsel %vm2062_vm12, %v2034_v0, %v2042_v58 }
 0xde7   : > { %v2074_v9 = vadd.f32 %v2070_v10, %v2066_v1 }
 0xde8   : > { %v2059_v43 = vpop.xlane.xlu1 %2058 }
 0xde9   : > { %v2078_v52 = vmul.f32 0.5, %v2074_v9  ;;  %vm2063_vm13 = vcmp.gt.f32.partialorder %v2059_v43, 1.0 }
 0xdea   : > { %v2067_v45 = vsel %vm2063_vm13, %v2043_v46, %v2031_v5  ;;  %v2071_v11 = vsel %vm2063_vm13, %v2035_v8, %v2043_v46 }
 0xdeb   : > { %v2075_v16 = vadd.f32 %v2071_v11, %v2067_v45  ;;  %v2082_v33 = vsub.f32 %v4472_v41, %v2078_v52 }
 0xded   : > { %v2079_v31 = vmul.f32 0.5, %v2075_v16  ;;  %v2086_v4 = vmax.f32 %v2082_v33, 0.0 }
 0xdef   : > { %2092 = vadd.xlane.f32.xlu0 %v2086_v4  ;;  %v2083_v35 = vsub.f32 %v4475_v12, %v2079_v31 }
 0xdf1   : > { %v2087_v2 = vmax.f32 %v2083_v35, 0.0 }
 0xdf3   : > { %2094 = vadd.xlane.f32.xlu1 %v2087_v2 }
 0xe5c   : > { %v2089_v42 = vpop.xlane.xlu0 %2088 }
 0xe5d   : > { %vm2096_vm14 = vcmp.gt.f32.partialorder %v2089_v42, 1.0 }
 0xe5e   : > { %v2100_v20 = vsel %vm2096_vm14, %v2076_v40, %v2064_v38  ;;  %v2104_v63 = vsel %vm2096_vm14, %v2068_v13, %v2076_v40 }
 0xe5f   : > { %v2108_v56 = vadd.f32 %v2104_v63, %v2100_v20 }
 0xe60   : > { %v2091_v48 = vpop.xlane.xlu1 %2090 }
 0xe61   : > { %v2112_v6 = vmul.f32 0.5, %v2108_v56  ;;  %vm2097_vm15 = vcmp.gt.f32.partialorder %v2091_v48, 1.0 }
 0xe62   : > { %v2101_v49 = vsel %vm2097_vm15, %v2077_v37, %v2065_v3  ;;  %v2105_v50 = vsel %vm2097_vm15, %v2069_v34, %v2077_v37 }
 0xe63   : > { %v2109_v14 = vadd.f32 %v2105_v50, %v2101_v49  ;;  %v2116_v44 = vsub.f32 %v4466_v17, %v2112_v6 }
 0xe65   : > { %v2113_v39 = vmul.f32 0.5, %v2109_v14  ;;  %v2120_v25 = vmax.f32 %v2116_v44, 0.0 }
 0xe67   : > { %2124 = vadd.xlane.f32.xlu0 %v2120_v25  ;;  %v2117_v22 = vsub.f32 %v4469_v53, %v2113_v39 }
 0xe69   : > { %v2121_v18 = vmax.f32 %v2117_v22, 0.0 }
 0xe6b   : > { %2126 = vadd.xlane.f32.xlu1 %v2121_v18 }
 0xe7c   : > { %v2093_v23 = vpop.xlane.xlu0 %2092 }
 0xe7d   : > { %vm2098_vm1 = vcmp.gt.f32.partialorder %v2093_v23, 1.0 }
 0xe7e   : > { %v2102_v32 = vsel %vm2098_vm1, %v2078_v52, %v2066_v1  ;;  %v2106_v30 = vsel %vm2098_vm1, %v2070_v10, %v2078_v52 }
 0xe7f   : > { %v2110_v59 = vadd.f32 %v2106_v30, %v2102_v32 }
 0xe80   : > { %v2095_v0 = vpop.xlane.xlu1 %2094 }
 0xe81   : > { %v2114_v26 = vmul.f32 0.5, %v2110_v59  ;;  %vm2099_vm0 = vcmp.gt.f32.partialorder %v2095_v0, 1.0 }
 0xe82   : > { %v2103_v28 = vsel %vm2099_vm0, %v2079_v31, %v2067_v45  ;;  %v2107_v36 = vsel %vm2099_vm0, %v2071_v11, %v2079_v31 }
 0xe83   : > { %v2111_v58 = vadd.f32 %v2107_v36, %v2103_v28  ;;  %v2118_v5 = vsub.f32 %v4472_v41, %v2114_v26 }
 0xe85   : > { %v2115_v8 = vmul.f32 0.5, %v2111_v58  ;;  %v2122_v51 = vmax.f32 %v2118_v5, 0.0 }
 0xe87   : > { %2128 = vadd.xlane.f32.xlu0 %v2122_v51  ;;  %v2119_v24 = vsub.f32 %v4475_v12, %v2115_v8 }
 0xe89   : > { %v2123_v46 = vmax.f32 %v2119_v24, 0.0 }
 0xe8b   : > { %2130 = vadd.xlane.f32.xlu1 %v2123_v46 }
 0xef4   : > { %v2125_v7 = vpop.xlane.xlu0 %2124 }
 0xef5   : > { %vm2132_vm2 = vcmp.gt.f32.partialorder %v2125_v7, 1.0 }
 0xef6   : > { %v2136_v55 = vsel %vm2132_vm2, %v2112_v6, %v2100_v20  ;;  %v2140_v15 = vsel %vm2132_vm2, %v2104_v63, %v2112_v6 }
 0xef7   : > { %v2144_v57 = vadd.f32 %v2140_v15, %v2136_v55 }
 0xef8   : > { %v2127_v47 = vpop.xlane.xlu1 %2126 }
 0xef9   : > { %v2148_v13 = vmul.f32 0.5, %v2144_v57  ;;  %vm2133_vm3 = vcmp.gt.f32.partialorder %v2127_v47, 1.0 }
 0xefa   : > { %v2137_v29 = vsel %vm2133_vm3, %v2113_v39, %v2101_v49  ;;  %v2141_v60 = vsel %vm2133_vm3, %v2105_v50, %v2113_v39 }
 0xefb   : > { %v2145_v3 = vadd.f32 %v2141_v60, %v2137_v29  ;;  %v2152_v1 = vsub.f32 %v4466_v17, %v2148_v13 }
 0xefd   : > { %v2149_v21 = vmul.f32 0.5, %v2145_v3  ;;  %v2156_v61 = vmax.f32 %v2152_v1, 0.0 }
 0xeff   : > { %2160 = vadd.xlane.f32.xlu0 %v2156_v61  ;;  %v2153_v19 = vsub.f32 %v4469_v53, %v2149_v21 }
 0xf01   : > { %v2157_v16 = vmax.f32 %v2153_v19, 0.0 }
 0xf03   : > { %2162 = vadd.xlane.f32.xlu1 %v2157_v16 }
 0xf14   : > { %v2129_v38 = vpop.xlane.xlu0 %2128 }
 0xf15   : > { %vm2134_vm4 = vcmp.gt.f32.partialorder %v2129_v38, 1.0 }
 0xf16   : > { %v2138_v27 = vsel %vm2134_vm4, %v2114_v26, %v2102_v32  ;;  %v2142_v40 = vsel %vm2134_vm4, %v2106_v30, %v2114_v26 }
 0xf17   : > { %v2146_v34 = vadd.f32 %v2142_v40, %v2138_v27 }
 0xf18   : > { %v2131_v10 = vpop.xlane.xlu1 %2130 }
 0xf19   : > { %v2150_v9 = vmul.f32 0.5, %v2146_v34  ;;  %vm2135_vm5 = vcmp.gt.f32.partialorder %v2131_v10, 1.0 }
 0xf1a   : > { %v2139_v43 = vsel %vm2135_vm5, %v2115_v8, %v2103_v28  ;;  %v2143_v37 = vsel %vm2135_vm5, %v2107_v36, %v2115_v8 }
 0xf1b   : > { %v2147_v52 = vadd.f32 %v2143_v37, %v2139_v43  ;;  %v2154_v45 = vsub.f32 %v4472_v41, %v2150_v9 }
 0xf1d   : > { %v2151_v11 = vmul.f32 0.5, %v2147_v52  ;;  %v2158_v62 = vmax.f32 %v2154_v45, 0.0 }
 0xf1f   : > { %2164 = vadd.xlane.f32.xlu0 %v2158_v62  ;;  %v2155_v33 = vsub.f32 %v4475_v12, %v2151_v11 }
 0xf21   : > { %v2159_v31 = vmax.f32 %v2155_v33, 0.0 }
 0xf23   : > { %2166 = vadd.xlane.f32.xlu1 %v2159_v31 }
 0xf8c   : > { %v2161_v54 = vpop.xlane.xlu0 %2160 }
 0xf8d   : > { %vm2168_vm6 = vcmp.gt.f32.partialorder %v2161_v54, 1.0 }
 0xf8e   : > { %v2172_v4 = vsel %vm2168_vm6, %v2148_v13, %v2136_v55  ;;  %v2176_v35 = vsel %vm2168_vm6, %v2140_v15, %v2148_v13 }
 0xf8f   : > { %v2180_v2 = vadd.f32 %v2176_v35, %v2172_v4 }
 0xf90   : > { %v2163_v42 = vpop.xlane.xlu1 %2162 }
 0xf91   : > { %v2184_v63 = vmul.f32 0.5, %v2180_v2  ;;  %vm2169_vm7 = vcmp.gt.f32.partialorder %v2163_v42, 1.0 }
 0xf92   : > { %v2173_v56 = vsel %vm2169_vm7, %v2149_v21, %v2137_v29  ;;  %v2177_v48 = vsel %vm2169_vm7, %v2141_v60, %v2149_v21 }
 0xf93   : > { %v2181_v49 = vadd.f32 %v2177_v48, %v2173_v56  ;;  %v2188_v32 = vsub.f32 %v4466_v17, %v2184_v63 }
 0xf95   : > { %v2185_v14 = vmul.f32 0.5, %v2181_v49  ;;  %v2192_v44 = vmax.f32 %v2188_v32, 0.0 }
 0xf97   : > { %2196 = vadd.xlane.f32.xlu0 %v2192_v44  ;;  %v2189_v25 = vsub.f32 %v4469_v53, %v2185_v14 }
 0xf99   : > { %v2193_v58 = vmax.f32 %v2189_v25, 0.0 }
 0xf9b   : > { %2198 = vadd.xlane.f32.xlu1 %v2193_v58 }
 0xfac   : > { %v2165_v20 = vpop.xlane.xlu0 %2164 }
 0xfad   : > { %vm2170_vm8 = vcmp.gt.f32.partialorder %v2165_v20, 1.0 }
 0xfae   : > { %v2174_v23 = vsel %vm2170_vm8, %v2150_v9, %v2138_v27  ;;  %v2178_v6 = vsel %vm2170_vm8, %v2142_v40, %v2150_v9 }
 0xfaf   : > { %v2182_v50 = vadd.f32 %v2178_v6, %v2174_v23 }
 0xfb0   : > { %v2167_v30 = vpop.xlane.xlu1 %2166 }
 0xfb1   : > { %v2186_v59 = vmul.f32 0.5, %v2182_v50  ;;  %vm2171_vm9 = vcmp.gt.f32.partialorder %v2167_v30, 1.0 }
 0xfb2   : > { %v2175_v0 = vsel %vm2171_vm9, %v2151_v11, %v2139_v43  ;;  %v2179_v39 = vsel %vm2171_vm9, %v2143_v37, %v2151_v11 }
 0xfb3   : > { %v2183_v26 = vadd.f32 %v2179_v39, %v2175_v0  ;;  %v2190_v28 = vsub.f32 %v4472_v41, %v2186_v59 }
 0xfb5   : > { %v2187_v36 = vmul.f32 0.5, %v2183_v26  ;;  %v2194_v22 = vmax.f32 %v2190_v28, 0.0 }
 0xfb7   : > { %2200 = vadd.xlane.f32.xlu0 %v2194_v22  ;;  %v2191_v5 = vsub.f32 %v4475_v12, %v2187_v36 }
 0xfb9   : > { %v2195_v8 = vmax.f32 %v2191_v5, 0.0 }
 0xfbb   : > { %2202 = vadd.xlane.f32.xlu1 %v2195_v8 }
0x1024   : > { %v2197_v18 = vpop.xlane.xlu0 %2196 }
0x1025   : > { %vm2204_vm10 = vcmp.gt.f32.partialorder %v2197_v18, 1.0 }
0x1026   : > { %v2208_v51 = vsel %vm2204_vm10, %v2184_v63, %v2172_v4  ;;  %v2212_v24 = vsel %vm2204_vm10, %v2176_v35, %v2184_v63 }
0x1027   : > { %v2216_v46 = vadd.f32 %v2212_v24, %v2208_v51 }
0x1028   : > { %v2199_v7 = vpop.xlane.xlu1 %2198 }
0x1029   : > { %v2220_v15 = vmul.f32 0.5, %v2216_v46  ;;  %vm2205_vm11 = vcmp.gt.f32.partialorder %v2199_v7, 1.0 }
0x102a   : > { %v2209_v57 = vsel %vm2205_vm11, %v2185_v14, %v2173_v56  ;;  %v2213_v47 = vsel %vm2205_vm11, %v2177_v48, %v2185_v14 }
0x102b   : > { %v2217_v29 = vadd.f32 %v2213_v47, %v2209_v57  ;;  %v2224_v27 = vsub.f32 %v4466_v17, %v2220_v15 }
0x102d   : > { %v2221_v3 = vmul.f32 0.5, %v2217_v29  ;;  %v2228_v1 = vmax.f32 %v2224_v27, 0.0 }
0x102f   : > { %2232 = vadd.xlane.f32.xlu0 %v2228_v1  ;;  %v2225_v61 = vsub.f32 %v4469_v53, %v2221_v3 }
0x1031   : > { %v2229_v52 = vmax.f32 %v2225_v61, 0.0 }
0x1033   : > { %2234 = vadd.xlane.f32.xlu1 %v2229_v52 }
0x1044   : > { %v2201_v55 = vpop.xlane.xlu0 %2200 }
0x1045   : > { %vm2206_vm12 = vcmp.gt.f32.partialorder %v2201_v55, 1.0 }
0x1046   : > { %v2210_v38 = vsel %vm2206_vm12, %v2186_v59, %v2174_v23  ;;  %v2214_v13 = vsel %vm2206_vm12, %v2178_v6, %v2186_v59  ;;  %v3377_v6 = vmov 0.0  }
0x1047   : > { %v2218_v60 = vadd.f32 %v2214_v13, %v2210_v38 }
0x1048   : > { %v2203_v40 = vpop.xlane.xlu1 %2202 }
0x1049   : > { %v2222_v34 = vmul.f32 0.5, %v2218_v60  ;;  %vm2207_vm13 = vcmp.gt.f32.partialorder %v2203_v40, 1.0 }
0x104a   : > { %v2211_v10 = vsel %vm2207_vm13, %v2187_v36, %v2175_v0  ;;  %v2215_v21 = vsel %vm2207_vm13, %v2179_v39, %v2187_v36 }
0x104b   : > { %v2219_v9 = vadd.f32 %v2215_v21, %v2211_v10  ;;  %v2226_v43 = vsub.f32 %v4472_v41, %v2222_v34 }
0x104d   : > { %v2223_v37 = vmul.f32 0.5, %v2219_v9  ;;  %v2230_v19 = vmax.f32 %v2226_v43, 0.0 }
0x104f   : > { %2236 = vadd.xlane.f32.xlu0 %v2230_v19  ;;  %v2227_v45 = vsub.f32 %v4475_v12, %v2223_v37 }
0x1051   : > { %v2231_v11 = vmax.f32 %v2227_v45, 0.0 }
0x1053   : > { %2238 = vadd.xlane.f32.xlu1 %v2231_v11 }
0x10bc   : > { %v2233_v16 = vpop.xlane.xlu0 %2232 }
0x10bd   : > { %vm2240_vm14 = vcmp.gt.f32.partialorder %v2233_v16, 1.0 }
0x10be   : > { %v2244_v62 = vsel %vm2240_vm14, %v2220_v15, %v2208_v51  ;;  %v2248_v33 = vsel %vm2240_vm14, %v2212_v24, %v2220_v15 }
0x10bf   : > { %v2252_v31 = vadd.f32 %v2248_v33, %v2244_v62 }
0x10c0   : > { %v2235_v54 = vpop.xlane.xlu1 %2234 }
0x10c1   : > { %v2256_v35 = vmul.f32 0.5, %v2252_v31  ;;  %vm2241_vm15 = vcmp.gt.f32.partialorder %v2235_v54, 1.0  ;;  %v2320_v54 = vld [vmem:[#allocation3] sm:$0xff] }
0x10c2   : > { %v2245_v2 = vsel %vm2241_vm15, %v2221_v3, %v2209_v57  ;;  %v2249_v42 = vsel %vm2241_vm15, %v2213_v47, %v2221_v3 }
0x10c3   : > { %v2253_v56 = vadd.f32 %v2249_v42, %v2245_v2  ;;  %vm2260_vm0 = vcmp.gt.f32.partialorder %v4466_v17, %v2256_v35 }
0x10c4   : > { %v2541_v49 = vsel %vm2260_vm0, 1.0, %v3377_v6 }
0x10c5   : > { %v2257_v50 = vmul.f32 0.5, %v2253_v56  ;;  %2272 = vadd.xlane.f32.xlu0 %v2541_v49  ;;  %v2280_v26 = vmul.f32 %v4466_v17, %v2541_v49 }
0x10c7   : > { %vm2261_vm3 = vcmp.gt.f32.partialorder %v4469_v53, %v2257_v50 }
0x10c8   : > { %v2542_v44 = vsel %vm2261_vm3, 1.0, %v3377_v6 }
0x10c9   : > { %2274 = vadd.xlane.f32.xlu1 %v2542_v44  ;;  %v2281_v28 = vmul.f32 %v4469_v53, %v2542_v44 }
0x10dc   : > { %v2237_v4 = vpop.xlane.xlu0 %2236 }
0x10dd   : > { %vm2242_vm1 = vcmp.gt.f32.partialorder %v2237_v4, 1.0 }
0x10de   : > { %v2246_v20 = vsel %vm2242_vm1, %v2222_v34, %v2210_v38  ;;  %v2250_v63 = vsel %vm2242_vm1, %v2214_v13, %v2222_v34 }
0x10df   : > { %v2254_v48 = vadd.f32 %v2250_v63, %v2246_v20 }
0x10e0   : > { %v2239_v23 = vpop.xlane.xlu1 %2238 }
0x10e1   : > { %v2258_v32 = vmul.f32 0.5, %v2254_v48  ;;  %vm2243_vm2 = vcmp.gt.f32.partialorder %v2239_v23, 1.0 }
0x10e2   : > { %v2247_v30 = vsel %vm2243_vm2, %v2223_v37, %v2211_v10  ;;  %v2251_v14 = vsel %vm2243_vm2, %v2215_v21, %v2223_v37 }
0x10e3   : > { %v2255_v59 = vadd.f32 %v2251_v14, %v2247_v30  ;;  %vm2262_vm4 = vcmp.gt.f32.partialorder %v4472_v41, %v2258_v32 }
0x10e4   : > { %v2543_v0 = vsel %vm2262_vm4, 1.0, %v3377_v6 }
0x10e5   : > { %v2259_v39 = vmul.f32 0.5, %v2255_v59  ;;  %2276 = vadd.xlane.f32.xlu0 %v2543_v0  ;;  %v2282_v36 = vmul.f32 %v4472_v41, %v2543_v0 }
0x10e7   : > { %vm2263_vm5 = vcmp.gt.f32.partialorder %v4475_v12, %v2259_v39 }
0x10e8   : > { %v2544_v25 = vsel %vm2263_vm5, 1.0, %v3377_v6 }
0x10e9   : > { %2278 = vadd.xlane.f32.xlu1 %v2544_v25  ;;  %2284 = vadd.xlane.f32.xlu0 %v2280_v26  ;;  %v2283_v58 = vmul.f32 %v4475_v12, %v2544_v25 }
0x10ed   : > { %2286 = vadd.xlane.f32.xlu1 %v2281_v28  ;;  %2288 = vadd.xlane.f32.xlu0 %v2282_v36 }
0x10f1   : > { %2290 = vadd.xlane.f32.xlu1 %v2283_v58 }
0x1152   : > { %v2273_v22 = vpop.xlane.xlu0 %2272 }
0x1153   : > { %v2296_v5 = vmax.f32 %v2273_v22, 1.0 }
0x1155   : > { %3162 = vrcp.f32 %v2296_v5 }
0x1156   : > { %v2275_v8 = vpop.xlane.xlu1 %2274 }
0x1157   : > { %v2297_v51 = vmax.f32 %v2275_v8, 1.0 }
0x1159   : > { %3164 = vrcp.f32 %v2297_v51 }
0x115f   : > { %v3163_v47 = vpop.eup %3162 }
0x1163   : > { %v3165_v60 = vpop.eup %3164 }
0x1172   : > { %v2277_v18 = vpop.xlane.xlu0 %2276 }
0x1173   : > { %v2298_v24 = vmax.f32 %v2277_v18, 1.0 }
0x1175   : > { %3166 = vrcp.f32 %v2298_v24 }
0x1176   : > { %v2279_v46 = vpop.xlane.xlu1 %2278  ;;  %v2285_v7 = vpop.xlane.xlu0 %2284 }
0x1177   : > { %v2299_v55 = vmax.f32 %v2279_v46, 1.0  ;;  %v2545_v15 = vadd.f32 -1.0, %v2285_v7 }
0x1179   : > { %3168 = vrcp.f32 %v2299_v55  ;;  %v2301_v38 = vmul.f32 %v3163_v47, %v2545_v15 }
0x117a   : > { %v2287_v57 = vpop.xlane.xlu1 %2286  ;;  %v2289_v13 = vpop.xlane.xlu0 %2288 }
0x117b   : > { %v2546_v29 = vadd.f32 -1.0, %v2287_v57  ;;  %v2547_v27 = vadd.f32 -1.0, %v2289_v13  ;;  %v2308_v34 = vsub.f32 %v4466_v17, %v2301_v38 }
0x117d   : > { %v2303_v1 = vmul.f32 %v3165_v60, %v2546_v29  ;;  %v2312_v37 = vmax.f32 %v2308_v34, 0.0 }
0x117e   : > { %v2291_v40 = vpop.xlane.xlu1 %2290 }
0x117f   : > { %v3167_v3 = vpop.eup %3166  ;;  %v2309_v21 = vsub.f32 %v4469_v53, %v2303_v1  ;;  %v2548_v9 = vadd.f32 -1.0, %v2291_v40 }
0x1180   : > { %v2305_v10 = vmul.f32 %v3167_v3, %v2547_v27 }
0x1181   : > { %v2313_v52 = vmax.f32 %v2309_v21, 0.0 }
0x1182   : > { %v2310_v43 = vsub.f32 %v4472_v41, %v2305_v10 }
0x1183   : > { %v3169_v61 = vpop.eup %3168  ;;  %v2316_v45 = vadd.f32 %v2313_v52, %v2312_v37 }
0x1184   : > { %v2307_v19 = vmul.f32 %v3169_v61, %v2548_v9  ;;  %v2314_v11 = vmax.f32 %v2310_v43, 0.0 }
0x1186   : > { %v2311_v16 = vsub.f32 %v4475_v12, %v2307_v19  ;;  %v2317_v62 = vadd.f32 %v2316_v45, %v2314_v11 }
0x1188   : > { %v2315_v33 = vmax.f32 %v2311_v16, 0.0 }
0x118a   : > { %v2318_v31 = vadd.f32 %v2317_v62, %v2315_v33 }
0x118c   : > { %v2319_v17 = vmul.f32 0.25, %v2318_v31 }
0x118e   : > { %v2321_v4 = vadd.f32 %v2320_v54, %v2319_v17 }
0x1190   : > { %2322 = vst [vmem:[#allocation11] sm:$0xff] %v2321_v4 }
0x1191 PF: > { %p3050_p9 = scmp.eq.s32.totalorder %s3518_s16, 2  ;;  %s3378_s21 = smov [#allocation11]  }
0x1192   : > { %s2330_s26 = sshll.u32 %s3378_s21, 4  ;;  %s2331_s26 = int_to_ptr.vmem [resolvable:$true] %s2330_s26 }
0x1193   : > { %s3292_s8 = scalar_lea.vmem %s2331_s26, 128  ;;  %p3299_p7 = scmp.lt.s32.totalorder %s2331_s26, %s2331_s26 }
0x1194   : > { %p3293_p12 = scmp.ne.s32.totalorder %s2331_s26, %s3292_s8  ;;  %p3300_p3 = scmp.lt.s32.totalorder %s3292_s8, %s3292_s8 }
0x1196   : > { %p3294_p10 = pnand %p3293_p12, %p3050_p9  ;;  %p3301_p2 = por %p3300_p3, %p3299_p7 }
0x1198   : > { %p3295_p1 = pneg %p3294_p10 }
0x119a   : > { %p3302_p5 = pnand %p3301_p2, %p3295_p1 }
0x119c   : > { %3305 = shalt.err (!%p3302_p5)
}
0x119d   : > { %s3306_s2 = scalar_lea.hbm %s4569_s7, 128 }
0x119e   : > { %p3307_p4 = scmp.ne.s32.totalorder %s4569_s7, %s3306_s2  ;;  %p3312_p13 = scmp.lt.u32.totalorder %s3306_s2, %s4569_s7 }
0x11a0   : > { %p3308_p0 = pnand %p3307_p4, %p3050_p9 }
0x11a2   : > { %p3309_p6 = pneg %p3308_p0 }
0x11a4   : > { %p3314_p8 = pnand %p3312_p13, %p3309_p6 }
0x11a6   : > { %3317 = shalt.err (!%p3314_p8)
}
0x11a7   : > { %3030 = dma.vmem_to_hbm [thread:$0]  (%p3050_p9), %s2331_s26, 128, %s4569_s7, [#allocation5]  }
0x11a8   : > { %3347 = dma.done.wait (%p3050_p9), [#allocation5], 128  }
0x11a9   : > { %3349 = vsyncadd (%p3050_p9), [#allocation5], 4294967168 }
0x11aa PF: > { %s4680_s29 = sld [smem:[#allocation16_spill]]  ;;  %s4681_s26 = sld [smem:[#allocation17_spill]] }
0x11ab   : > { %p22_p11 = scmp.ge.s32.totalorder %s3440_s28, 5   ;;  %s4682_s24 = smov %s3356_s25 }
0x11ac   : > { %s4684_s27 = smov %s3440_s28 }
0x11ad   :  { %24 = sbr.rel (!%p22_p11) target bundleno = 10 (0xa), region = 143 }
0x11b0   : > { %s4683_s25 = smov %s4680_s29 }
0x11b4   :  { %2343 = vsyncpa [#allocation4], 1 }
0x11b5   :  { %2345 = vsyncpa [#allocation4 + $0x1], 1 }
0x11b6   :  { %2346 = vsyncpa [#allocation7], 1 }
0x11b7   :  { %2348 = vsyncpa [#allocation7 + $0x1], 1 }
0x11b8   :  { %2349 = vsyncpa [#allocation10], 1 }
0x11b9   :  { %2351 = vsyncpa [#allocation10 + $0x1], 1 }
0x11ba   :  { %2352 = vsyncpa [#allocation5], 1 }
0x11bb   :  { %2354 = vsyncpa [#allocation5 + $0x1], 1 }

</bundles_post_ra>
